<compile_context>
chip_gen: v7x
topology: tpu7x:2x2x1
jax: 0.10.0
libtpu: 0.0.40
codegen_flags: <defaults>
</compile_context>

<pallas_src>
import math

import numpy as np
import jax
import jax.numpy as jnp
from jax.experimental import pallas as pl
from jax.experimental.pallas import tpu as pltpu


CPAD = 128  # hidden-channel padding: one full lane block


# ----------------------- host-side weight / matrix packing (done once) -----------------------

def _tap_weights_padded(w, cout_pad, cin_pad=None):
    """ConvTranspose2d weight (Cin, Cout, 4, 4) -> (cin_pad|Cin, 16*cout_pad).

    Tap-major, channel-minor, with each tap's channel block zero-padded to `cout_pad`
    lanes so in-kernel per-tap slices are lane-aligned.  Optionally pads Cin rows.
    """
    w = np.asarray(w, np.float32)
    cin, cout = w.shape[0], w.shape[1]
    rows = cin if cin_pad is None else cin_pad
    m = np.zeros((rows, 16 * cout_pad), np.float32)
    for kh in range(4):
        for kw in range(4):
            t = kh * 4 + kw
            m[:cin, t * cout_pad:t * cout_pad + cout] = w[:, :, kh, kw]
    return m


def _tap_weights_last_t(w, cout_pad, cin_pad):
    """Last-layer tap weights in channel-major (transposed) form: (16*cout_pad, cin_pad)."""
    w = np.asarray(w, np.float32)
    cin, cout = w.shape[0], w.shape[1]
    m = np.zeros((16 * cout_pad, cin_pad), np.float32)
    for kh in range(4):
        for kw in range(4):
            t = kh * 4 + kw
            m[t * cout_pad:t * cout_pad + cout, :cin] = w[:, :, kh, kw].T
    return m


def _scatter_first(n_batch, pad_rows):
    """ConvTranspose2d(k=4, s=1, p=0) on a 1x1 input: (N*16, 16*pad_rows) 0/1 scatter."""
    m = np.zeros((n_batch * 16, 16 * pad_rows), np.float32)
    for n in range(n_batch):
        for k in range(16):
            m[n * 16 + k, k * pad_rows + n] = 1.0
    return m


def _scatter_up(n_batch, h, w):
    """ConvTranspose2d(k=4, s=2, p=1) scatter: (N*2h*2w, 16*N*h*w) 0/1 matrix.

    Column (kh*4+kw)*N*h*w + (n*h+ih)*w + iw feeds output row (n*2h+oh)*2w + ow with
    oh = 2*ih - 1 + kh, ow = 2*iw - 1 + kw; out-of-range taps are dropped (padding=1).
    """
    r_in = n_batch * h * w
    m = np.zeros((n_batch * 4 * h * w, 16 * r_in), np.float32)
    for n in range(n_batch):
        for ih in range(h):
            for iw in range(w):
                i = (n * h + ih) * w + iw
                for kh in range(4):
                    oh = 2 * ih - 1 + kh
                    if not 0 <= oh < 2 * h:
                        continue
                    for kw in range(4):
                        ow = 2 * iw - 1 + kw
                        if not 0 <= ow < 2 * w:
                            continue
                        m[(n * 2 * h + oh) * 2 * w + ow, (kh * 4 + kw) * r_in + i] = 1.0
    return m


def _inorm_mats(n_batch, spatial):
    """Per-sample averaging (N, N*spatial) and broadcast-back (N*spatial, N) matrices."""
    avg = np.zeros((n_batch, n_batch * spatial), np.float32)
    bc = np.zeros((n_batch * spatial, n_batch), np.float32)
    for n in range(n_batch):
        avg[n, n * spatial:(n + 1) * spatial] = 1.0 / spatial
        bc[n * spatial:(n + 1) * spatial, n] = 1.0
    return jnp.asarray(avg), jnp.asarray(bc)


def _bf16(np_mat):
    return jnp.asarray(np_mat).astype(jnp.bfloat16)


# ----------------------------- fused whole-generator kernel -----------------------------

def _make_g_kernel(n_batch, n_mid, cpad_last, image_size):
    hw = image_size * image_size
    cpad = CPAD

    def kernel(*refs):
        z_ref, wf_ref, bf_ref, sc0_ref, av0_ref, bc0_ref = refs[0:6]
        mid_refs = refs[6:6 + 4 * n_mid]
        wl_ref = refs[6 + 4 * n_mid]
        sl_ref = refs[6 + 4 * n_mid + 1]
        out_ref = refs[6 + 4 * n_mid + 2]

        def stack_taps(u, c):
            # Row-stack the 16 lane-aligned per-tap blocks: (R, 16*c) -> (16*R, c).
            return jnp.concatenate([u[:, t * c:(t + 1) * c] for t in range(16)], axis=0)

        def inorm_relu(a, av_ref, bc_ref):
            # InstanceNorm2d(affine=False, eps=1e-8; matches Network_v1.py) + ReLU.
            # One-pass per-sample stats via a tiny f32 matmul, broadcast-back via a 0/1 matmul.
            stats = jnp.dot(av_ref[...], jnp.concatenate([a, a * a], axis=1),
                            preferred_element_type=jnp.float32)           # (N, 2*cpad)
            m, m2 = stats[:, :cpad], stats[:, cpad:]
            inv = jax.lax.rsqrt(jnp.maximum(m2 - m * m, 0.0) + 1e-8)      # rsqrt -> EUP slot
            full = jnp.dot(bc_ref[...], jnp.concatenate([inv, -m * inv], axis=1),
                           preferred_element_type=jnp.float32)            # (N*spatial, 2*cpad)
            return jnp.maximum(a * full[:, :cpad] + full[:, cpad:], 0.0)

        # fc1 -> fc2 -> first ConvT(4,1,0) taps, folded into one bf16 matmul + f32 bias.
        u = jnp.dot(z_ref[...].astype(jnp.bfloat16), wf_ref[...],
                    preferred_element_type=jnp.float32) + bf_ref[...]     # (pad_rows, 16*cpad)
        a = jnp.dot(sc0_ref[...], stack_taps(u, cpad).astype(jnp.bfloat16),
                    preferred_element_type=jnp.float32)                   # (N*16, cpad)
        a = inorm_relu(a, av0_ref, bc0_ref)

        # Upsampling ConvT(4,2,1) + InstanceNorm + ReLU stack (channel-last, padded to 128).
        for j in range(n_mid):
            wtap_ref, scat_ref, av_ref, bc_ref = mid_refs[4 * j:4 * j + 4]
            u = jnp.dot(a.astype(jnp.bfloat16), wtap_ref[...],
                        preferred_element_type=jnp.float32)               # (R_in, 16*cpad)
            a = jnp.dot(scat_ref[...], stack_taps(u, cpad).astype(jnp.bfloat16),
                        preferred_element_type=jnp.float32)               # (R_out, cpad)
            a = inorm_relu(a, av_ref, bc_ref)

        # Final ConvT(4,2,1) + Tanh in channel-major (transposed) form: lane-dense output.
        ut = jnp.dot(wl_ref[...], a.T.astype(jnp.bfloat16),
                     preferred_element_type=jnp.float32)                  # (16*cpad_last, R_in)
        vt = jnp.concatenate([ut[t * cpad_last:(t + 1) * cpad_last, :] for t in range(16)],
                             axis=1)                                      # (cpad_last, 16*R_in)
        yt = jnp.dot(vt.astype(jnp.bfloat16), sl_ref[...],
                     preferred_element_type=jnp.float32)                  # (cpad_last, N*hw)
        out = jnp.concatenate([yt[:, n * hw:(n + 1) * hw] for n in range(n_batch)], axis=0)
        out_ref[...] = jnp.tanh(out)                                      # (N*cpad_last, hw)

    return kernel


# ------------------------------ params + forward ------------------------------

def init_g_params(key, input_dim=32, output_dim=3, image_size=16,
                  Gscale=2, hidden_scale=2, fc_hidden_dim=64):
    up_times = int(math.log(image_size, 2) - 3)
    first_hidden_dim = image_size * Gscale
    keys = iter(jax.random.split(key, 16))

    def nrm(shape, scale=0.05):
        return scale * jax.random.normal(next(keys), shape, jnp.float32)

    params = {
        "fc1_w": nrm((fc_hidden_dim, input_dim)),   # PyTorch Linear weight layout (out, in)
        "fc1_b": nrm((fc_hidden_dim,)),
        "fc2_w": nrm((input_dim, fc_hidden_dim)),
        "fc2_b": nrm((input_dim,)),
    }
    convs = [nrm((input_dim, first_hidden_dim, 4, 4))]   # ConvTranspose2d weight (Cin, Cout, 4, 4)
    hidden = first_hidden_dim
    for _ in range(up_times):
        convs.append(nrm((hidden, int(hidden / hidden_scale), 4, 4)))
        hidden //= 2
    convs.append(nrm((hidden, output_dim, 4, 4)))
    params["convs"] = convs
    return params


def prep_kernel_params(params, batch):
    """One-time packing of PyTorch-layout params into kernel operands (no per-forward prep)."""
    pad_rows = max(8, ((batch + 7) // 8) * 8)
    convs = params["convs"]
    n_mid = len(convs) - 2
    out_dim = convs[-1].shape[1]
    cpad_last = max(8, ((out_dim + 7) // 8) * 8)

    # Fold fc1 -> fc2 -> first ConvT taps (all linear, no nonlinearity in between): exact.
    w_fc = params["fc1_w"].T @ params["fc2_w"].T                          # (in, in)
    b_fc = params["fc1_b"] @ params["fc2_w"].T + params["fc2_b"]          # (in,)
    wtap0 = jnp.asarray(_tap_weights_padded(convs[0], CPAD))              # (in, 16*CPAD)
    w_fused = (w_fc @ wtap0).astype(jnp.bfloat16)
    b_fused = (b_fc @ wtap0).reshape(1, -1).astype(jnp.float32)

    ops = [w_fused, b_fused, _bf16(_scatter_first(batch, pad_rows))]
    av, bc = _inorm_mats(batch, 16)
    ops += [av, bc]

    h = w = 4
    for wconv in convs[1:-1]:
        ops.append(_bf16(_tap_weights_padded(wconv, CPAD, cin_pad=CPAD)))
        ops.append(_bf16(_scatter_up(batch, h, w)))
        h, w = 2 * h, 2 * w
        av, bc = _inorm_mats(batch, h * w)
        ops += [av, bc]

    ops.append(_bf16(_tap_weights_last_t(convs[-1], cpad_last, CPAD)))
    ops.append(_bf16(_scatter_up(batch, h, w).T))
    h, w = 2 * h, 2 * w
    assert (h * w) % 128 == 0, "per-batch output slabs must be lane-aligned"

    packed = {"ops": ops}
    meta = {"batch": batch, "pad_rows": pad_rows, "n_mid": n_mid,
            "image_size": h, "out_dim": out_dim, "cpad_last": cpad_last}
    return packed, meta


def g_forward(packed, meta, z):
    """Entire generator forward in one fused Pallas kernel (channel-last inside)."""
    n = meta["batch"]
    assert z.shape[0] == n, (z.shape, n)
    s, cout, cpl = meta["image_size"], meta["out_dim"], meta["cpad_last"]
    # Pad the batch rows to a sublane multiple so the first conv's tap stacking is aligned;
    # the padded rows are never selected by the scatter matrix.
    z_pad = jnp.pad(z.astype(jnp.float32), ((0, meta["pad_rows"] - n), (0, 0)))
    inputs = [z_pad] + packed["ops"]
    out = pl.pallas_call(
        _make_g_kernel(n, meta["n_mid"], cpl, s),
        out_shape=jax.ShapeDtypeStruct((n * cpl, s * s), jnp.float32),
        in_specs=[pl.BlockSpec(memory_space=pltpu.MemorySpace.VMEM) for _ in inputs],
        out_specs=pl.BlockSpec(memory_space=pltpu.MemorySpace.VMEM),
    )(*inputs)
    # Kernel output is already (N, channel, H, W)-ordered: pure reshape + channel slice,
    # no post-kernel transpose.
    return out.reshape(n, cpl, s, s)[:, :cout]


# ------------------------------ pure-JAX reference ------------------------------

def _ref_conv_transpose(x, w, stride, pad):
    k = w.shape[2]
    w_flip = w[:, :, ::-1, ::-1]
    return jax.lax.conv_general_dilated(
        x, w_flip, window_strides=(1, 1),
        padding=[(k - 1 - pad, k - 1 - pad)] * 2,
        lhs_dilation=(stride, stride),
        dimension_numbers=("NCHW", "IOHW", "NCHW"))


def _ref_inorm_relu(x):
    mean = x.mean(axis=(2, 3), keepdims=True)
    var = ((x - mean) ** 2).mean(axis=(2, 3), keepdims=True)
    return jnp.maximum((x - mean) / jnp.sqrt(var + 1e-8), 0.0)


def g_forward_ref(params, z):
    h = z @ params["fc1_w"].T + params["fc1_b"]
    x = h @ params["fc2_w"].T + params["fc2_b"]
    B, D = z.shape
    x = x.reshape(B, D, 1, 1)
    y = _ref_inorm_relu(_ref_conv_transpose(x, params["convs"][0], 1, 0))
    for w in params["convs"][1:-1]:
        y = _ref_inorm_relu(_ref_conv_transpose(y, w, 2, 1))
    y = jnp.tanh(_ref_conv_transpose(y, params["convs"][-1], 2, 1))
    return y


# ----------------------------------- main -----------------------------------

if __name__ == "__main__":
    key = jax.random.PRNGKey(0)
    kp, kz = jax.random.split(key)

    input_dim, output_dim, image_size = 32, 3, 16
    params = init_g_params(kp, input_dim=input_dim, output_dim=output_dim,
                           image_size=image_size, Gscale=2, hidden_scale=2,
                           fc_hidden_dim=64)

    B = 2
    z = jax.random.normal(kz, (B, input_dim), jnp.float32)

    packed, meta = prep_kernel_params(params, B)
    y = g_forward(packed, meta, z)
    y = jax.block_until_ready(y)

    assert y.shape == (B, output_dim, image_size, image_size), y.shape
    assert bool(jnp.all(jnp.isfinite(y)))

    y_ref = g_forward_ref(params, z)
    # bf16 matmul operands introduce ~0.2-1% relative error vs the f32 reference.
    assert bool(jnp.allclose(y, y_ref, rtol=2e-2, atol=2e-2)), \
        float(jnp.max(jnp.abs(y - y_ref)))

    print("KERNEL_OK")
</pallas_src>

<mosaic_0001>
module attributes {stable_mosaic.version = 11 : i64} {
  func.func @kernel(%arg0: memref<8x32xf32, #tpu.memory_space<vmem>>, %arg1: memref<32x2048xbf16, #tpu.memory_space<vmem>>, %arg2: memref<1x2048xf32, #tpu.memory_space<vmem>>, %arg3: memref<32x128xbf16, #tpu.memory_space<vmem>>, %arg4: memref<2x32xf32, #tpu.memory_space<vmem>>, %arg5: memref<32x2xf32, #tpu.memory_space<vmem>>, %arg6: memref<128x2048xbf16, #tpu.memory_space<vmem>>, %arg7: memref<128x512xbf16, #tpu.memory_space<vmem>>, %arg8: memref<2x128xf32, #tpu.memory_space<vmem>>, %arg9: memref<128x2xf32, #tpu.memory_space<vmem>>, %arg10: memref<128x128xbf16, #tpu.memory_space<vmem>>, %arg11: memref<2048x512xbf16, #tpu.memory_space<vmem>>, %arg12: memref<16x256xf32, #tpu.memory_space<vmem>>) attributes {dimension_semantics = [], scalar_prefetch = 0 : i64, scratch_operands = 0 : i64, tpu.core_type = #tpu.core_type<tc>} {
    %c0 = arith.constant 0 : index
    %c0_0 = arith.constant 0 : index
    %0 = vector.load %arg0[%c0, %c0_0] : memref<8x32xf32, #tpu.memory_space<vmem>>, vector<8x32xf32>
    %1 = arith.truncf %0 : vector<8x32xf32> to vector<8x32xbf16>
    %c0_1 = arith.constant 0 : index
    %c0_2 = arith.constant 0 : index
    %2 = vector.load %arg1[%c0_1, %c0_2] : memref<32x2048xbf16, #tpu.memory_space<vmem>>, vector<32x2048xbf16>
    %cst = arith.constant dense<0.000000e+00> : vector<8x2048xf32>
    %3 = tpu.matmul %1, %2, %cst {dimension_numbers = #tpu.dot_dimension_numbers<[1], [0], [0], [1], [0, 0, 1, 1], [], []>} : vector<8x32xbf16>, vector<32x2048xbf16>, vector<8x2048xf32> -> vector<8x2048xf32>
    %c0_3 = arith.constant 0 : index
    %c0_4 = arith.constant 0 : index
    %4 = vector.load %arg2[%c0_3, %c0_4] : memref<1x2048xf32, #tpu.memory_space<vmem>>, vector<1x2048xf32>
    %5 = vector.broadcast %4 : vector<1x2048xf32> to vector<8x2048xf32>
    %6 = arith.addf %3, %5 : vector<8x2048xf32>
    %c0_5 = arith.constant 0 : index
    %c0_6 = arith.constant 0 : index
    %7 = vector.load %arg3[%c0_5, %c0_6] : memref<32x128xbf16, #tpu.memory_space<vmem>>, vector<32x128xbf16>
    %8 = vector.extract_strided_slice %6 {offsets = [0, 0], sizes = [8, 128], strides = [1, 1]} : vector<8x2048xf32> to vector<8x128xf32>
    %9 = vector.extract_strided_slice %6 {offsets = [0, 128], sizes = [8, 128], strides = [1, 1]} : vector<8x2048xf32> to vector<8x128xf32>
    %10 = vector.extract_strided_slice %6 {offsets = [0, 256], sizes = [8, 128], strides = [1, 1]} : vector<8x2048xf32> to vector<8x128xf32>
    %11 = vector.extract_strided_slice %6 {offsets = [0, 384], sizes = [8, 128], strides = [1, 1]} : vector<8x2048xf32> to vector<8x128xf32>
    %12 = vector.extract_strided_slice %6 {offsets = [0, 512], sizes = [8, 128], strides = [1, 1]} : vector<8x2048xf32> to vector<8x128xf32>
    %13 = vector.extract_strided_slice %6 {offsets = [0, 640], sizes = [8, 128], strides = [1, 1]} : vector<8x2048xf32> to vector<8x128xf32>
    %14 = vector.extract_strided_slice %6 {offsets = [0, 768], sizes = [8, 128], strides = [1, 1]} : vector<8x2048xf32> to vector<8x128xf32>
    %15 = vector.extract_strided_slice %6 {offsets = [0, 896], sizes = [8, 128], strides = [1, 1]} : vector<8x2048xf32> to vector<8x128xf32>
    %16 = vector.extract_strided_slice %6 {offsets = [0, 1024], sizes = [8, 128], strides = [1, 1]} : vector<8x2048xf32> to vector<8x128xf32>
    %17 = vector.extract_strided_slice %6 {offsets = [0, 1152], sizes = [8, 128], strides = [1, 1]} : vector<8x2048xf32> to vector<8x128xf32>
    %18 = vector.extract_strided_slice %6 {offsets = [0, 1280], sizes = [8, 128], strides = [1, 1]} : vector<8x2048xf32> to vector<8x128xf32>
    %19 = vector.extract_strided_slice %6 {offsets = [0, 1408], sizes = [8, 128], strides = [1, 1]} : vector<8x2048xf32> to vector<8x128xf32>
    %20 = vector.extract_strided_slice %6 {offsets = [0, 1536], sizes = [8, 128], strides = [1, 1]} : vector<8x2048xf32> to vector<8x128xf32>
    %21 = vector.extract_strided_slice %6 {offsets = [0, 1664], sizes = [8, 128], strides = [1, 1]} : vector<8x2048xf32> to vector<8x128xf32>
    %22 = vector.extract_strided_slice %6 {offsets = [0, 1792], sizes = [8, 128], strides = [1, 1]} : vector<8x2048xf32> to vector<8x128xf32>
    %23 = vector.extract_strided_slice %6 {offsets = [0, 1920], sizes = [8, 128], strides = [1, 1]} : vector<8x2048xf32> to vector<8x128xf32>
    %24 = tpu.concatenate %8, %9, %10, %11, %12, %13, %14, %15, %16, %17, %18, %19, %20, %21, %22, %23 in 0 : vector<8x128xf32>, vector<8x128xf32>, vector<8x128xf32>, vector<8x128xf32>, vector<8x128xf32>, vector<8x128xf32>, vector<8x128xf32>, vector<8x128xf32>, vector<8x128xf32>, vector<8x128xf32>, vector<8x128xf32>, vector<8x128xf32>, vector<8x128xf32>, vector<8x128xf32>, vector<8x128xf32>, vector<8x128xf32> -> vector<128x128xf32>
    %25 = arith.truncf %24 : vector<128x128xf32> to vector<128x128xbf16>
    %cst_7 = arith.constant dense<0.000000e+00> : vector<32x128xf32>
    %26 = tpu.matmul %7, %25, %cst_7 {dimension_numbers = #tpu.dot_dimension_numbers<[1], [0], [0], [1], [0, 0, 1, 1], [], []>} : vector<32x128xbf16>, vector<128x128xbf16>, vector<32x128xf32> -> vector<32x128xf32>
    %c0_8 = arith.constant 0 : index
    %c0_9 = arith.constant 0 : index
    %27 = vector.load %arg4[%c0_8, %c0_9] : memref<2x32xf32, #tpu.memory_space<vmem>>, vector<2x32xf32>
    %28 = arith.mulf %26, %26 : vector<32x128xf32>
    %29 = tpu.concatenate %26, %28 in 1 : vector<32x128xf32>, vector<32x128xf32> -> vector<32x256xf32>
    %cst_10 = arith.constant dense<0.000000e+00> : vector<2x256xf32>
    %30 = tpu.matmul %27, %29, %cst_10 {dimension_numbers = #tpu.dot_dimension_numbers<[1], [0], [0], [1], [0, 0, 1, 1], [], []>} : vector<2x32xf32>, vector<32x256xf32>, vector<2x256xf32> -> vector<2x256xf32>
    %31 = vector.extract_strided_slice %30 {offsets = [0, 0], sizes = [2, 128], strides = [1, 1]} : vector<2x256xf32> to vector<2x128xf32>
    %32 = vector.extract_strided_slice %30 {offsets = [0, 128], sizes = [2, 128], strides = [1, 1]} : vector<2x256xf32> to vector<2x128xf32>
    %33 = arith.mulf %31, %31 : vector<2x128xf32>
    %34 = arith.subf %32, %33 : vector<2x128xf32>
    %cst_11 = arith.constant 0.000000e+00 : f32
    %35 = vector.broadcast %cst_11 : f32 to vector<2x128xf32>
    %36 = arith.maximumf %34, %35 : vector<2x128xf32>
    %cst_12 = arith.constant 9.99999993E-9 : f32
    %37 = vector.broadcast %cst_12 : f32 to vector<2x128xf32>
    %38 = arith.addf %36, %37 : vector<2x128xf32>
    %39 = math.rsqrt %38 : vector<2x128xf32>
    %c0_13 = arith.constant 0 : index
    %c0_14 = arith.constant 0 : index
    %40 = vector.load %arg5[%c0_13, %c0_14] : memref<32x2xf32, #tpu.memory_space<vmem>>, vector<32x2xf32>
    %cst_15 = arith.constant 0.000000e+00 : f32
    %41 = vector.broadcast %cst_15 : f32 to vector<2x128xf32>
    %42 = arith.subf %41, %31 : vector<2x128xf32>
    %43 = arith.mulf %42, %39 : vector<2x128xf32>
    %44 = tpu.concatenate %39, %43 in 1 : vector<2x128xf32>, vector<2x128xf32> -> vector<2x256xf32>
    %cst_16 = arith.constant dense<0.000000e+00> : vector<32x256xf32>
    %45 = tpu.matmul %40, %44, %cst_16 {dimension_numbers = #tpu.dot_dimension_numbers<[1], [0], [0], [1], [0, 0, 1, 1], [], []>} : vector<32x2xf32>, vector<2x256xf32>, vector<32x256xf32> -> vector<32x256xf32>
    %46 = vector.extract_strided_slice %45 {offsets = [0, 0], sizes = [32, 128], strides = [1, 1]} : vector<32x256xf32> to vector<32x128xf32>
    %47 = arith.mulf %26, %46 : vector<32x128xf32>
    %48 = vector.extract_strided_slice %45 {offsets = [0, 128], sizes = [32, 128], strides = [1, 1]} : vector<32x256xf32> to vector<32x128xf32>
    %49 = arith.addf %47, %48 : vector<32x128xf32>
    %cst_17 = arith.constant 0.000000e+00 : f32
    %50 = vector.broadcast %cst_17 : f32 to vector<32x128xf32>
    %51 = arith.maximumf %49, %50 : vector<32x128xf32>
    %52 = arith.truncf %51 : vector<32x128xf32> to vector<32x128xbf16>
    %c0_18 = arith.constant 0 : index
    %c0_19 = arith.constant 0 : index
    %53 = vector.load %arg6[%c0_18, %c0_19] : memref<128x2048xbf16, #tpu.memory_space<vmem>>, vector<128x2048xbf16>
    %cst_20 = arith.constant dense<0.000000e+00> : vector<32x2048xf32>
    %54 = tpu.matmul %52, %53, %cst_20 {dimension_numbers = #tpu.dot_dimension_numbers<[1], [0], [0], [1], [0, 0, 1, 1], [], []>} : vector<32x128xbf16>, vector<128x2048xbf16>, vector<32x2048xf32> -> vector<32x2048xf32>
    %c0_21 = arith.constant 0 : index
    %c0_22 = arith.constant 0 : index
    %55 = vector.load %arg7[%c0_21, %c0_22] : memref<128x512xbf16, #tpu.memory_space<vmem>>, vector<128x512xbf16>
    %56 = vector.extract_strided_slice %54 {offsets = [0, 0], sizes = [32, 128], strides = [1, 1]} : vector<32x2048xf32> to vector<32x128xf32>
    %57 = vector.extract_strided_slice %54 {offsets = [0, 128], sizes = [32, 128], strides = [1, 1]} : vector<32x2048xf32> to vector<32x128xf32>
    %58 = vector.extract_strided_slice %54 {offsets = [0, 256], sizes = [32, 128], strides = [1, 1]} : vector<32x2048xf32> to vector<32x128xf32>
    %59 = vector.extract_strided_slice %54 {offsets = [0, 384], sizes = [32, 128], strides = [1, 1]} : vector<32x2048xf32> to vector<32x128xf32>
    %60 = vector.extract_strided_slice %54 {offsets = [0, 512], sizes = [32, 128], strides = [1, 1]} : vector<32x2048xf32> to vector<32x128xf32>
    %61 = vector.extract_strided_slice %54 {offsets = [0, 640], sizes = [32, 128], strides = [1, 1]} : vector<32x2048xf32> to vector<32x128xf32>
    %62 = vector.extract_strided_slice %54 {offsets = [0, 768], sizes = [32, 128], strides = [1, 1]} : vector<32x2048xf32> to vector<32x128xf32>
    %63 = vector.extract_strided_slice %54 {offsets = [0, 896], sizes = [32, 128], strides = [1, 1]} : vector<32x2048xf32> to vector<32x128xf32>
    %64 = vector.extract_strided_slice %54 {offsets = [0, 1024], sizes = [32, 128], strides = [1, 1]} : vector<32x2048xf32> to vector<32x128xf32>
    %65 = vector.extract_strided_slice %54 {offsets = [0, 1152], sizes = [32, 128], strides = [1, 1]} : vector<32x2048xf32> to vector<32x128xf32>
    %66 = vector.extract_strided_slice %54 {offsets = [0, 1280], sizes = [32, 128], strides = [1, 1]} : vector<32x2048xf32> to vector<32x128xf32>
    %67 = vector.extract_strided_slice %54 {offsets = [0, 1408], sizes = [32, 128], strides = [1, 1]} : vector<32x2048xf32> to vector<32x128xf32>
    %68 = vector.extract_strided_slice %54 {offsets = [0, 1536], sizes = [32, 128], strides = [1, 1]} : vector<32x2048xf32> to vector<32x128xf32>
    %69 = vector.extract_strided_slice %54 {offsets = [0, 1664], sizes = [32, 128], strides = [1, 1]} : vector<32x2048xf32> to vector<32x128xf32>
    %70 = vector.extract_strided_slice %54 {offsets = [0, 1792], sizes = [32, 128], strides = [1, 1]} : vector<32x2048xf32> to vector<32x128xf32>
    %71 = vector.extract_strided_slice %54 {offsets = [0, 1920], sizes = [32, 128], strides = [1, 1]} : vector<32x2048xf32> to vector<32x128xf32>
    %72 = tpu.concatenate %56, %57, %58, %59, %60, %61, %62, %63, %64, %65, %66, %67, %68, %69, %70, %71 in 0 : vector<32x128xf32>, vector<32x128xf32>, vector<32x128xf32>, vector<32x128xf32>, vector<32x128xf32>, vector<32x128xf32>, vector<32x128xf32>, vector<32x128xf32>, vector<32x128xf32>, vector<32x128xf32>, vector<32x128xf32>, vector<32x128xf32>, vector<32x128xf32>, vector<32x128xf32>, vector<32x128xf32>, vector<32x128xf32> -> vector<512x128xf32>
    %73 = arith.truncf %72 : vector<512x128xf32> to vector<512x128xbf16>
    %cst_23 = arith.constant dense<0.000000e+00> : vector<128x128xf32>
    %74 = tpu.matmul %55, %73, %cst_23 {dimension_numbers = #tpu.dot_dimension_numbers<[1], [0], [0], [1], [0, 0, 1, 1], [], []>} : vector<128x512xbf16>, vector<512x128xbf16>, vector<128x128xf32> -> vector<128x128xf32>
    %c0_24 = arith.constant 0 : index
    %c0_25 = arith.constant 0 : index
    %75 = vector.load %arg8[%c0_24, %c0_25] : memref<2x128xf32, #tpu.memory_space<vmem>>, vector<2x128xf32>
    %76 = arith.mulf %74, %74 : vector<128x128xf32>
    %77 = tpu.concatenate %74, %76 in 1 : vector<128x128xf32>, vector<128x128xf32> -> vector<128x256xf32>
    %cst_26 = arith.constant dense<0.000000e+00> : vector<2x256xf32>
    %78 = tpu.matmul %75, %77, %cst_26 {dimension_numbers = #tpu.dot_dimension_numbers<[1], [0], [0], [1], [0, 0, 1, 1], [], []>} : vector<2x128xf32>, vector<128x256xf32>, vector<2x256xf32> -> vector<2x256xf32>
    %79 = vector.extract_strided_slice %78 {offsets = [0, 0], sizes = [2, 128], strides = [1, 1]} : vector<2x256xf32> to vector<2x128xf32>
    %80 = vector.extract_strided_slice %78 {offsets = [0, 128], sizes = [2, 128], strides = [1, 1]} : vector<2x256xf32> to vector<2x128xf32>
    %81 = arith.mulf %79, %79 : vector<2x128xf32>
    %82 = arith.subf %80, %81 : vector<2x128xf32>
    %cst_27 = arith.constant 0.000000e+00 : f32
    %83 = vector.broadcast %cst_27 : f32 to vector<2x128xf32>
    %84 = arith.maximumf %82, %83 : vector<2x128xf32>
    %cst_28 = arith.constant 9.99999993E-9 : f32
    %85 = vector.broadcast %cst_28 : f32 to vector<2x128xf32>
    %86 = arith.addf %84, %85 : vector<2x128xf32>
    %87 = math.rsqrt %86 : vector<2x128xf32>
    %c0_29 = arith.constant 0 : index
    %c0_30 = arith.constant 0 : index
    %88 = vector.load %arg9[%c0_29, %c0_30] : memref<128x2xf32, #tpu.memory_space<vmem>>, vector<128x2xf32>
    %cst_31 = arith.constant 0.000000e+00 : f32
    %89 = vector.broadcast %cst_31 : f32 to vector<2x128xf32>
    %90 = arith.subf %89, %79 : vector<2x128xf32>
    %91 = arith.mulf %90, %87 : vector<2x128xf32>
    %92 = tpu.concatenate %87, %91 in 1 : vector<2x128xf32>, vector<2x128xf32> -> vector<2x256xf32>
    %cst_32 = arith.constant dense<0.000000e+00> : vector<128x256xf32>
    %93 = tpu.matmul %88, %92, %cst_32 {dimension_numbers = #tpu.dot_dimension_numbers<[1], [0], [0], [1], [0, 0, 1, 1], [], []>} : vector<128x2xf32>, vector<2x256xf32>, vector<128x256xf32> -> vector<128x256xf32>
    %94 = vector.extract_strided_slice %93 {offsets = [0, 0], sizes = [128, 128], strides = [1, 1]} : vector<128x256xf32> to vector<128x128xf32>
    %95 = arith.mulf %74, %94 : vector<128x128xf32>
    %96 = vector.extract_strided_slice %93 {offsets = [0, 128], sizes = [128, 128], strides = [1, 1]} : vector<128x256xf32> to vector<128x128xf32>
    %97 = arith.addf %95, %96 : vector<128x128xf32>
    %cst_33 = arith.constant 0.000000e+00 : f32
    %98 = vector.broadcast %cst_33 : f32 to vector<128x128xf32>
    %99 = arith.maximumf %97, %98 : vector<128x128xf32>
    %c0_34 = arith.constant 0 : index
    %c0_35 = arith.constant 0 : index
    %100 = vector.load %arg10[%c0_34, %c0_35] : memref<128x128xbf16, #tpu.memory_space<vmem>>, vector<128x128xbf16>
    %101 = tpu.transpose %99, [1, 0] : vector<128x128xf32> -> vector<128x128xf32>
    %102 = arith.truncf %101 : vector<128x128xf32> to vector<128x128xbf16>
    %cst_36 = arith.constant dense<0.000000e+00> : vector<128x128xf32>
    %103 = tpu.matmul %100, %102, %cst_36 {dimension_numbers = #tpu.dot_dimension_numbers<[1], [0], [0], [1], [0, 0, 1, 1], [], []>} : vector<128x128xbf16>, vector<128x128xbf16>, vector<128x128xf32> -> vector<128x128xf32>
    %104 = vector.extract_strided_slice %103 {offsets = [0, 0], sizes = [8, 128], strides = [1, 1]} : vector<128x128xf32> to vector<8x128xf32>
    %105 = vector.extract_strided_slice %103 {offsets = [8, 0], sizes = [8, 128], strides = [1, 1]} : vector<128x128xf32> to vector<8x128xf32>
    %106 = vector.extract_strided_slice %103 {offsets = [16, 0], sizes = [8, 128], strides = [1, 1]} : vector<128x128xf32> to vector<8x128xf32>
    %107 = vector.extract_strided_slice %103 {offsets = [24, 0], sizes = [8, 128], strides = [1, 1]} : vector<128x128xf32> to vector<8x128xf32>
    %108 = vector.extract_strided_slice %103 {offsets = [32, 0], sizes = [8, 128], strides = [1, 1]} : vector<128x128xf32> to vector<8x128xf32>
    %109 = vector.extract_strided_slice %103 {offsets = [40, 0], sizes = [8, 128], strides = [1, 1]} : vector<128x128xf32> to vector<8x128xf32>
    %110 = vector.extract_strided_slice %103 {offsets = [48, 0], sizes = [8, 128], strides = [1, 1]} : vector<128x128xf32> to vector<8x128xf32>
    %111 = vector.extract_strided_slice %103 {offsets = [56, 0], sizes = [8, 128], strides = [1, 1]} : vector<128x128xf32> to vector<8x128xf32>
    %112 = vector.extract_strided_slice %103 {offsets = [64, 0], sizes = [8, 128], strides = [1, 1]} : vector<128x128xf32> to vector<8x128xf32>
    %113 = vector.extract_strided_slice %103 {offsets = [72, 0], sizes = [8, 128], strides = [1, 1]} : vector<128x128xf32> to vector<8x128xf32>
    %114 = vector.extract_strided_slice %103 {offsets = [80, 0], sizes = [8, 128], strides = [1, 1]} : vector<128x128xf32> to vector<8x128xf32>
    %115 = vector.extract_strided_slice %103 {offsets = [88, 0], sizes = [8, 128], strides = [1, 1]} : vector<128x128xf32> to vector<8x128xf32>
    %116 = vector.extract_strided_slice %103 {offsets = [96, 0], sizes = [8, 128], strides = [1, 1]} : vector<128x128xf32> to vector<8x128xf32>
    %117 = vector.extract_strided_slice %103 {offsets = [104, 0], sizes = [8, 128], strides = [1, 1]} : vector<128x128xf32> to vector<8x128xf32>
    %118 = vector.extract_strided_slice %103 {offsets = [112, 0], sizes = [8, 128], strides = [1, 1]} : vector<128x128xf32> to vector<8x128xf32>
    %119 = vector.extract_strided_slice %103 {offsets = [120, 0], sizes = [8, 128], strides = [1, 1]} : vector<128x128xf32> to vector<8x128xf32>
    %120 = tpu.concatenate %104, %105, %106, %107, %108, %109, %110, %111, %112, %113, %114, %115, %116, %117, %118, %119 in 1 : vector<8x128xf32>, vector<8x128xf32>, vector<8x128xf32>, vector<8x128xf32>, vector<8x128xf32>, vector<8x128xf32>, vector<8x128xf32>, vector<8x128xf32>, vector<8x128xf32>, vector<8x128xf32>, vector<8x128xf32>, vector<8x128xf32>, vector<8x128xf32>, vector<8x128xf32>, vector<8x128xf32>, vector<8x128xf32> -> vector<8x2048xf32>
    %121 = arith.truncf %120 : vector<8x2048xf32> to vector<8x2048xbf16>
    %c0_37 = arith.constant 0 : index
    %c0_38 = arith.constant 0 : index
    %122 = vector.load %arg11[%c0_37, %c0_38] : memref<2048x512xbf16, #tpu.memory_space<vmem>>, vector<2048x512xbf16>
    %cst_39 = arith.constant dense<0.000000e+00> : vector<8x512xf32>
    %123 = tpu.matmul %121, %122, %cst_39 {dimension_numbers = #tpu.dot_dimension_numbers<[1], [0], [0], [1], [0, 0, 1, 1], [], []>} : vector<8x2048xbf16>, vector<2048x512xbf16>, vector<8x512xf32> -> vector<8x512xf32>
    %124 = vector.extract_strided_slice %123 {offsets = [0, 0], sizes = [8, 256], strides = [1, 1]} : vector<8x512xf32> to vector<8x256xf32>
    %125 = vector.extract_strided_slice %123 {offsets = [0, 256], sizes = [8, 256], strides = [1, 1]} : vector<8x512xf32> to vector<8x256xf32>
    %126 = tpu.concatenate %124, %125 in 0 : vector<8x256xf32>, vector<8x256xf32> -> vector<16x256xf32>
    %127 = math.tanh %126 : vector<16x256xf32>
    %c0_40 = arith.constant 0 : index
    %c0_41 = arith.constant 0 : index
    %128 = vector.load %arg12[%c0_40, %c0_41] : memref<16x256xf32, #tpu.memory_space<vmem>>, vector<16x256xf32>
    tpu.vector_store %arg12[%c0_40, %c0_41], %127 {strides = array<i32>} : memref<16x256xf32, #tpu.memory_space<vmem>>, vector<16x256xf32>,
    return
  }
}

</mosaic_0001>

<bundles_post_ra>
// kernel: tpu_custom_call.1
= control target key start
LH: loop header
LB: loop body
LE: loop exit
PB: predicated region body
PF: predicated region fallthrough
CT: control target
= control target key end

     0   :  { %17 = vsyncpa [#allocation3], 0  ;;  %s9861_s0 = inlined_call_operand.hbm [shape: f32[8,32], index: 0, kind: input, shape index: {}]   ;;  %s9862_s1 = inlined_call_operand.hbm [shape: bf16[32,2048], index: 1, kind: input, shape index: {}]   ;;  %s9863_s2 = inlined_call_operand.hbm [shape: f32[1,2048], index: 2, kind: input, shape index: {}]   ;;  %s9864_s3 = inlined_call_operand.hbm [shape: bf16[32,128], index: 3, kind: input, shape index: {}]   ;;  %s9865_s4 = inlined_call_operand.hbm [shape: f32[2,32], index: 4, kind: input, shape index: {}]   ;;  %s9866_s5 = inlined_call_operand.vmem [shape: f32[32,2], index: 5, kind: input, shape index: {}]   ;;  %s9867_s6 = inlined_call_operand.hbm [shape: bf16[128,2048], index: 6, kind: input, shape index: {}]   ;;  %s9868_s7 = inlined_call_operand.hbm [shape: bf16[128,512], index: 7, kind: input, shape index: {}]   ;;  %s9869_s8 = inlined_call_operand.hbm [shape: f32[2,128], index: 8, kind: input, shape index: {}]   ;;  %s9870_s9 = inlined_call_operand.vmem [shape: f32[128,2], index: 9, kind: input, shape index: {}]   ;;  %s9871_s10 = inlined_call_operand.hbm [shape: bf16[128,128], index: 10, kind: input, shape index: {}]   ;;  %s9872_s11 = inlined_call_operand.hbm [shape: bf16[2048,512], index: 11, kind: input, shape index: {}]   ;;  %s9873_s12 = inlined_call_operand.hbm [shape: f32[16,256], index: 12, kind: output, shape index: {}]  }
   0x1   :  { %18 = vsyncpa [#allocation6], 0 }
   0x2   :  { %19 = vsyncpa [#allocation9], 0 }
   0x3   :  { %20 = vsyncpa [#allocation12], 0 }
   0x4   :  { %21 = vsyncpa [#allocation15], 0 }
   0x5   :  { %22 = vsyncpa [#allocation18], 0 }
   0x6   :  { %23 = vsyncpa [#allocation4], 0  ;;  %s9187_s21 = smov [#allocation5]   ;;  %s8931_s25 = scalar_lea.hbm %s9862_s1, 4096 }
   0x7   :  { %s39_s22 = sshll.u32 %s9187_s21, 4  ;;  %p8932_p0 = scmp.ne.s32.totalorder %s9862_s1, %s8931_s25  ;;  %s40_s22 = int_to_ptr.vmem [resolvable:$true] %s39_s22 }
   0x8   :  { %p8935_p1 = scmp.lt.u32.totalorder %s8931_s25, %s9862_s1 }
   0xa   :  { %p8937_p2 = pnand %p8935_p1, %p8932_p0 }
   0xc   :  { %8940 = shalt.err (!%p8937_p2)
}
   0xd   :  { %s8941_s30 = scalar_lea.vmem %s40_s22, 4096  ;;  %p8946_p4 = scmp.lt.s32.totalorder %s40_s22, %s40_s22 }
   0xe   :  { %p8942_p3 = scmp.ne.s32.totalorder %s40_s22, %s8941_s30  ;;  %p8947_p5 = scmp.lt.s32.totalorder %s8941_s30, %s8941_s30 }
  0x10   :  { %p8948_p6 = por %p8947_p5, %p8946_p4 }
  0x12   :  { %p8949_p7 = pnand %p8948_p6, %p8942_p3 }
  0x14   :  { %8952 = shalt.err (!%p8949_p7)
}
  0x15   :  { %s9188_s13 = smov 1024   ;;  %s9189_s14 = smov 64  }
  0x16   :  { %45 = dma.hbm_to_vmem [thread:$0]  %s9862_s1, 4096, %s40_s22, [#allocation6], %s9188_s13, %s9188_s13, %s9189_s14  }
  0x17   :  { %s9190_s17 = smov [#allocation8]   ;;  %s8953_s21 = scalar_lea.hbm %s9864_s3, 256 }
  0x18   :  { %s61_s18 = sshll.u32 %s9190_s17, 4  ;;  %p8954_p8 = scmp.ne.s32.totalorder %s9864_s3, %s8953_s21  ;;  %s62_s18 = int_to_ptr.vmem [resolvable:$true] %s61_s18 }
  0x19   :  { %p8957_p9 = scmp.lt.u32.totalorder %s8953_s21, %s9864_s3 }
  0x1b   :  { %p8959_p10 = pnand %p8957_p9, %p8954_p8 }
  0x1d   :  { %8962 = shalt.err (!%p8959_p10)
}
  0x1e   :  { %s8963_s27 = scalar_lea.vmem %s62_s18, 256  ;;  %p8968_p12 = scmp.lt.s32.totalorder %s62_s18, %s62_s18 }
  0x1f   :  { %p8964_p11 = scmp.ne.s32.totalorder %s62_s18, %s8963_s27  ;;  %p8969_p13 = scmp.lt.s32.totalorder %s8963_s27, %s8963_s27 }
  0x21   :  { %p8970_p0 = por %p8969_p13, %p8968_p12 }
  0x23   :  { %p8971_p1 = pnand %p8970_p0, %p8964_p11 }
  0x25   :  { %8974 = shalt.err (!%p8971_p1)
}
  0x26   :  { %s9191_s1 = smov 4   ;;  %s9192_s29 = smov [#allocation11]  }
  0x27   :  { %67 = dma.hbm_to_vmem [thread:$0]  %s9864_s3, 256, %s62_s18, [#allocation9], %s9189_s14, %s9189_s14, %s9191_s1  }
  0x28   :  { %s85_s30 = sshll.u32 %s9192_s29, 4  ;;  %s9193_s15 = smov [#allocation14]   ;;  %s86_s30 = int_to_ptr.vmem [resolvable:$true] %s85_s30 }
  0x29   :  { %s110_s16 = sshll.u32 %s9193_s15, 4  ;;  %s8975_s20 = scalar_lea.hbm %s9867_s6, 16384  ;;  %s111_s16 = int_to_ptr.vmem [resolvable:$true] %s110_s16 }
  0x2a   :  { %p8976_p2 = scmp.ne.s32.totalorder %s9867_s6, %s8975_s20  ;;  %p8979_p3 = scmp.lt.u32.totalorder %s8975_s20, %s9867_s6 }
  0x2c   :  { %p8981_p4 = pnand %p8979_p3, %p8976_p2 }
  0x2e   :  { %8984 = shalt.err (!%p8981_p4)
}
  0x2f   :  { %s8985_s3 = scalar_lea.vmem %s86_s30, 16384  ;;  %p8990_p6 = scmp.lt.s32.totalorder %s86_s30, %s86_s30 }
  0x30   :  { %p8986_p5 = scmp.ne.s32.totalorder %s86_s30, %s8985_s3  ;;  %p8991_p7 = scmp.lt.s32.totalorder %s8985_s3, %s8985_s3 }
  0x32   :  { %p8992_p8 = por %p8991_p7, %p8990_p6 }
  0x34   :  { %p8993_p9 = pnand %p8992_p8, %p8986_p5 }
  0x36   :  { %8996 = shalt.err (!%p8993_p9)
}
  0x37   :  { %91 = dma.hbm_to_vmem [thread:$0]  %s9867_s6, 16384, %s86_s30, [#allocation12], %s9188_s13, %s9188_s13, %s9189_s14  }
  0x38   :  { %s8997_s28 = scalar_lea.hbm %s9869_s8, 32 }
  0x39   :  { %p8998_p10 = scmp.ne.s32.totalorder %s9869_s8, %s8997_s28  ;;  %p9001_p11 = scmp.lt.u32.totalorder %s8997_s28, %s9869_s8 }
  0x3b   :  { %p9003_p12 = pnand %p9001_p11, %p8998_p10 }
  0x3d   :  { %9006 = shalt.err (!%p9003_p12)
}
  0x3e   :  { %s9007_s20 = scalar_lea.vmem %s111_s16, 32  ;;  %p9012_p0 = scmp.lt.s32.totalorder %s111_s16, %s111_s16 }
  0x3f   :  { %p9008_p13 = scmp.ne.s32.totalorder %s111_s16, %s9007_s20  ;;  %p9013_p1 = scmp.lt.s32.totalorder %s9007_s20, %s9007_s20 }
  0x41   :  { %p9014_p2 = por %p9013_p1, %p9012_p0 }
  0x43   :  { %p9015_p3 = pnand %p9014_p2, %p9008_p13 }
  0x45   :  { %9018 = shalt.err (!%p9015_p3)
}
  0x46   :  { %113 = dma.hbm_to_vmem [thread:$0]  %s9869_s8, 32, %s111_s16, [#allocation15]  }
  0x47   :  { %s9194_s30 = smov [#allocation2]   ;;  %s9195_s23 = smov [#allocation7]  }
  0x48   :  { %s30_s21 = sshll.u32 %s9194_s30, 4  ;;  %s52_s24 = sshll.u32 %s9195_s23, 4  ;;  %s31_s21 = int_to_ptr.vmem [resolvable:$true] %s30_s21  ;;  %s53_s24 = int_to_ptr.vmem [resolvable:$true] %s52_s24 }
  0x49   :  { %s9019_s18 = scalar_lea.hbm %s9861_s0, 128 }
  0x4a   :  { %p9020_p4 = scmp.ne.s32.totalorder %s9861_s0, %s9019_s18  ;;  %p9023_p5 = scmp.lt.u32.totalorder %s9019_s18, %s9861_s0 }
  0x4c   :  { %p9025_p6 = pnand %p9023_p5, %p9020_p4 }
  0x4e   :  { %9028 = shalt.err (!%p9025_p6)
}
  0x4f   :  { %s9029_s8 = scalar_lea.vmem %s31_s21, 128  ;;  %p9034_p8 = scmp.lt.s32.totalorder %s31_s21, %s31_s21 }
  0x50   :  { %p9030_p7 = scmp.ne.s32.totalorder %s31_s21, %s9029_s8  ;;  %p9035_p9 = scmp.lt.s32.totalorder %s9029_s8, %s9029_s8 }
  0x52   :  { %p9036_p10 = por %p9035_p9, %p9034_p8 }
  0x54   :  { %p9037_p11 = pnand %p9036_p10, %p9030_p7 }
  0x56   :  { %9040 = shalt.err (!%p9037_p11)
}
  0x57   :  { %33 = dma.hbm_to_vmem [thread:$0]  %s9861_s0, 128, %s31_s21, [#allocation3]  }
  0x58   :  { %s9041_s19 = scalar_lea.hbm %s9863_s2, 256 }
  0x59   :  { %p9042_p12 = scmp.ne.s32.totalorder %s9863_s2, %s9041_s19  ;;  %p9045_p13 = scmp.lt.u32.totalorder %s9041_s19, %s9863_s2 }
  0x5b   :  { %p9047_p0 = pnand %p9045_p13, %p9042_p12 }
  0x5d   :  { %9050 = shalt.err (!%p9047_p0)
}
  0x5e   :  { %s9051_s23 = scalar_lea.vmem %s53_s24, 256  ;;  %p9056_p2 = scmp.lt.s32.totalorder %s53_s24, %s53_s24 }
  0x5f   :  { %p9052_p1 = scmp.ne.s32.totalorder %s53_s24, %s9051_s23  ;;  %p9057_p3 = scmp.lt.s32.totalorder %s9051_s23, %s9051_s23 }
  0x61   :  { %p9058_p4 = por %p9057_p3, %p9056_p2 }
  0x63   :  { %p9059_p5 = pnand %p9058_p4, %p9052_p1 }
  0x65   :  { %9062 = shalt.err (!%p9059_p5)
}
  0x66   :  { %55 = dma.hbm_to_vmem [thread:$0]  %s9863_s2, 256, %s53_s24, [#allocation6]  }
  0x67   :  { %s9196_s25 = smov [#allocation10]   ;;  %s9197_s18 = smov [#allocation13]  }
  0x68   :  { %s74_s3 = sshll.u32 %s9196_s25, 4  ;;  %s97_s26 = sshll.u32 %s9197_s18, 4  ;;  %s75_s3 = int_to_ptr.vmem [resolvable:$true] %s74_s3  ;;  %s98_s26 = int_to_ptr.vmem [resolvable:$true] %s97_s26 }
  0x69   :  { %s9063_s28 = scalar_lea.hbm %s9865_s4, 32 }
  0x6a   :  { %p9064_p6 = scmp.ne.s32.totalorder %s9865_s4, %s9063_s28  ;;  %p9067_p7 = scmp.lt.u32.totalorder %s9063_s28, %s9865_s4 }
  0x6c   :  { %p9069_p8 = pnand %p9067_p7, %p9064_p6 }
  0x6e   :  { %9072 = shalt.err (!%p9069_p8)
}
  0x6f   :  { %s9073_s2 = scalar_lea.vmem %s75_s3, 32  ;;  %p9078_p10 = scmp.lt.s32.totalorder %s75_s3, %s75_s3 }
  0x70   :  { %p9074_p9 = scmp.ne.s32.totalorder %s75_s3, %s9073_s2  ;;  %p9079_p11 = scmp.lt.s32.totalorder %s9073_s2, %s9073_s2 }
  0x72   :  { %p9080_p12 = por %p9079_p11, %p9078_p10 }
  0x74   :  { %p9081_p13 = pnand %p9080_p12, %p9074_p9 }
  0x76   :  { %9084 = shalt.err (!%p9081_p13)
}
  0x77   :  { %77 = dma.hbm_to_vmem [thread:$0]  %s9865_s4, 32, %s75_s3, [#allocation9]  }
  0x78   :  { %s9085_s6 = scalar_lea.hbm %s9868_s7, 4096 }
  0x79   :  { %p9086_p0 = scmp.ne.s32.totalorder %s9868_s7, %s9085_s6  ;;  %p9089_p1 = scmp.lt.u32.totalorder %s9085_s6, %s9868_s7 }
  0x7b   :  { %p9091_p2 = pnand %p9089_p1, %p9086_p0 }
  0x7d   :  { %9094 = shalt.err (!%p9091_p2)
}
  0x7e   :  { %s9095_s21 = scalar_lea.vmem %s98_s26, 4096  ;;  %p9100_p4 = scmp.lt.s32.totalorder %s98_s26, %s98_s26 }
  0x7f   :  { %p9096_p3 = scmp.ne.s32.totalorder %s98_s26, %s9095_s21  ;;  %p9101_p5 = scmp.lt.s32.totalorder %s9095_s21, %s9095_s21 }
  0x81   :  { %p9102_p6 = por %p9101_p5, %p9100_p4 }
  0x83   :  { %p9103_p7 = pnand %p9102_p6, %p9096_p3 }
  0x85   :  { %9106 = shalt.err (!%p9103_p7)
}
  0x86   :  { %s9198_s4 = smov 256   ;;  %s9199_s25 = smov 16  }
  0x87   :  { %103 = dma.hbm_to_vmem [thread:$0]  %s9868_s7, 4096, %s98_s26, [#allocation12], %s9198_s4, %s9198_s4, %s9199_s25  }
  0x88   :  { %s9200_s27 = smov [#allocation16]   ;;  %s9201_s28 = smov [#allocation17]  }
  0x89   :  { %s121_s22 = sshll.u32 %s9200_s27, 4  ;;  %s133_s8 = sshll.u32 %s9201_s28, 4  ;;  %s122_s22 = int_to_ptr.vmem [resolvable:$true] %s121_s22  ;;  %s134_s8 = int_to_ptr.vmem [resolvable:$true] %s133_s8 }
  0x8a   :  { %s9107_s15 = scalar_lea.hbm %s9871_s10, 1024 }
  0x8b   :  { %p9108_p8 = scmp.ne.s32.totalorder %s9871_s10, %s9107_s15  ;;  %p9111_p9 = scmp.lt.u32.totalorder %s9107_s15, %s9871_s10 }
  0x8d   :  { %p9113_p10 = pnand %p9111_p9, %p9108_p8 }
  0x8f   :  { %9116 = shalt.err (!%p9113_p10)
}
  0x90   :  { %s9117_s7 = scalar_lea.vmem %s122_s22, 1024  ;;  %p9122_p12 = scmp.lt.s32.totalorder %s122_s22, %s122_s22 }
  0x91   :  { %p9118_p11 = scmp.ne.s32.totalorder %s122_s22, %s9117_s7  ;;  %p9123_p13 = scmp.lt.s32.totalorder %s9117_s7, %s9117_s7 }
  0x93   :  { %p9124_p0 = por %p9123_p13, %p9122_p12 }
  0x95   :  { %p9125_p1 = pnand %p9124_p0, %p9118_p11 }
  0x97   :  { %9128 = shalt.err (!%p9125_p1)
}
  0x98   :  { %127 = dma.hbm_to_vmem [thread:$0]  %s9871_s10, 1024, %s122_s22, [#allocation15], %s9189_s14, %s9189_s14, %s9191_s1  }
  0x99   :  { %s9129_s30 = scalar_lea.hbm %s9872_s11, 65536 }
  0x9a   :  { %p9130_p2 = scmp.ne.s32.totalorder %s9872_s11, %s9129_s30  ;;  %p9133_p3 = scmp.lt.u32.totalorder %s9129_s30, %s9872_s11 }
  0x9c   :  { %p9135_p4 = pnand %p9133_p3, %p9130_p2 }
  0x9e   :  { %9138 = shalt.err (!%p9135_p4)
}
  0x9f   :  { %s9139_s18 = scalar_lea.vmem %s134_s8, 65536  ;;  %p9144_p6 = scmp.lt.s32.totalorder %s134_s8, %s134_s8 }
  0xa0   :  { %p9140_p5 = scmp.ne.s32.totalorder %s134_s8, %s9139_s18  ;;  %p9145_p7 = scmp.lt.s32.totalorder %s9139_s18, %s9139_s18 }
  0xa2   :  { %p9146_p8 = por %p9145_p7, %p9144_p6 }
  0xa4   :  { %p9147_p9 = pnand %p9146_p8, %p9140_p5 }
  0xa6   :  { %9150 = shalt.err (!%p9147_p9)
}
  0xa7   :  { %139 = dma.hbm_to_vmem [thread:$0]  %s9872_s11, 65536, %s134_s8, [#allocation18], %s9198_s4, %s9198_s4, %s9199_s25  }
  0xa8   :  { %9173 = dma.done.wait [#allocation3], 128  }
  0xa9   :  { %9174 = vsyncadd [#allocation3], 4294967168 }
  0xaa   :  { %9175 = dma.done.wait [#allocation6], 4352  }
  0xab   :  { %9176 = vsyncadd [#allocation6], 4294962944 }
  0xac   :  { %9177 = dma.done.wait [#allocation9], 288  }
  0xad   :  { %9178 = vsyncadd [#allocation9], 4294967008 }
  0xae   :  { %9179 = dma.done.wait [#allocation12], 20480  }
  0xaf   :  { %9180 = vsyncadd [#allocation12], 4294946816 }
  0xb0   :  { %9181 = dma.done.wait [#allocation15], 1056  }
  0xb1   :  { %9182 = vsyncadd [#allocation15], 4294966240 }
  0xb2   :  { %9183 = dma.done.wait [#allocation18], 65536  }
  0xb3   :  { %9184 = vsyncadd [#allocation18], 4294901760  ;;  %v9202_v0 = vmov 0   ;;  %v173_v1 = vld [vmem:[#allocation5] sm:$0xff]  ;;  %v174_v7 = vld [vmem:[#allocation5 + $0x8] sm:$0xff]  ;;  %vm449_vm0 = vcmask 261120  }
  0xb4   :  { %485 = vmatprep.mubr.bf16.mxu1 %v9202_v0  ;;  %567 = vmatprep.mubr.bf16.mxu0 %v9202_v0  ;;  %v181_v2 = vld [vmem:[#allocation5 + $0x40] sm:$0xff]  ;;  %v182_v9 = vld [vmem:[#allocation5 + $0x48] sm:$0xff]  ;;  %v175_v10 = vld [vmem:[#allocation5 + $0x10] sm:$0xff]  ;;  %vm957_vm1 = vcmask 1041408   ;;  %vm944_vm2 = vcmask 15360  }
  0xb5   :  { %v189_v3 = vld [vmem:[#allocation5 + $0x80] sm:$0xff]  ;;  %v7027_v4 = vcombine.high %v173_v1, %v181_v2  ;;  %v7026_v5 = vcombine.low %v173_v1, %v181_v2  ;;  %v183_v11 = vld [vmem:[#allocation5 + $0x50] sm:$0xff]  ;;  %v171_v16 = vld [vmem:[#allocation2] sm:$0xff]  ;;  %v7029_v18 = vcombine.high %v174_v7, %v182_v9  ;;  %v7028_v27 = vcombine.low %v174_v7, %v182_v9 }
  0xb6   :  { %v197_v6 = vld [vmem:[#allocation5 + $0xc0] sm:$0xff]  ;;  %v7031_v12 = vcombine.high %v175_v10, %v183_v11  ;;  %v7030_v13 = vcombine.low %v175_v10, %v183_v11  ;;  %v191_v14 = vld [vmem:[#allocation5 + $0x90] sm:$0xff]  ;;  %v190_v22 = vld [vmem:[#allocation5 + $0x88] sm:$0xff]  ;;  %v9410_v25 = vpack.c.bf16 %v171_v16, %v171_v16 }
  0xb7   :  { %v7043_v8 = vcombine.high %v189_v3, %v197_v6  ;;  %453 = vmatprep.subr.bf16.mxu1 %v7027_v4  ;;  %v7042_v15 = vcombine.low %v189_v3, %v197_v6  ;;  %v199_v17 = vld [vmem:[#allocation5 + $0xd0] sm:$0xff]  ;;  %v177_v20 = vld [vmem:[#allocation5 + $0x20] sm:$0xff]  ;;  %v198_v23 = vld [vmem:[#allocation5 + $0xc8] sm:$0xff] }
  0xb8   :  { %454 = vmatpush1.bf16.msra.mxu1 %v7026_v5  ;;  %535 = vmatprep.subr.bf16.mxu0 %v7031_v12  ;;  %v7047_v19 = vcombine.high %v191_v14, %v199_v17  ;;  %v185_v21 = vld [vmem:[#allocation5 + $0x60] sm:$0xff]  ;;  %v7046_v24 = vcombine.low %v191_v14, %v199_v17  ;;  %v7045_v30 = vcombine.high %v190_v22, %v198_v23  ;;  %v176_v31 = vld [vmem:[#allocation5 + $0x18] sm:$0xff]  ;;  %v179_v34 = vld [vmem:[#allocation5 + $0x30] sm:$0xff]  ;;  %v209_v5 = vlaneseq }
  0xb9   :  { %455 = vmatprep.subr.bf16.mxu1 %v7043_v8  ;;  %536 = vmatpush1.bf16.msra.mxu0 %v7030_v13  ;;  %v7035_v26 = vcombine.high %v177_v20, %v185_v21  ;;  %v193_v28 = vld [vmem:[#allocation5 + $0xa0] sm:$0xff]  ;;  %v184_v32 = vld [vmem:[#allocation5 + $0x58] sm:$0xff]  ;;  %v7034_v33 = vcombine.low %v177_v20, %v185_v21  ;;  %v187_v36 = vld [vmem:[#allocation5 + $0x70] sm:$0xff]  ;;  %v7044_v37 = vcombine.low %v190_v22, %v198_v23 }
  0xba   :  { %537 = vmatprep.subr.bf16.mxu0 %v7047_v19  ;;  %v201_v29 = vld [vmem:[#allocation5 + $0xe0] sm:$0xff]  ;;  %v192_v38 = vld [vmem:[#allocation5 + $0x98] sm:$0xff]  ;;  %v7033_v40 = vcombine.high %v176_v31, %v184_v32  ;;  %v195_v42 = vld [vmem:[#allocation5 + $0xb0] sm:$0xff]  ;;  %v7039_v44 = vcombine.high %v179_v34, %v187_v36  ;;  %v7032_v45 = vcombine.low %v176_v31, %v184_v32  ;;  %v7038_v49 = vcombine.low %v179_v34, %v187_v36 }
  0xbb   :  { %v7051_v35 = vcombine.high %v193_v28, %v201_v29  ;;  %v200_v39 = vld [vmem:[#allocation5 + $0xd8] sm:$0xff]  ;;  %v7050_v41 = vcombine.low %v193_v28, %v201_v29  ;;  %v203_v43 = vld [vmem:[#allocation5 + $0xf0] sm:$0xff]  ;;  %v178_v46 = vld [vmem:[#allocation5 + $0x28] sm:$0xff]  ;;  %v9434_v6 = vshrl.u32 %v209_v5, 7 }
  0xbc   :  { %456 = vmatpush1.bf16.msra.mxu1 %v7042_v15  ;;  %v186_v47 = vld [vmem:[#allocation5 + $0x68] sm:$0xff]  ;;  %v7049_v48 = vcombine.high %v192_v38, %v200_v39  ;;  %v7055_v50 = vcombine.high %v195_v42, %v203_v43  ;;  %v7048_v51 = vcombine.low %v192_v38, %v200_v39  ;;  %v7054_v55 = vcombine.low %v195_v42, %v203_v43  ;;  %v180_v57 = vld [vmem:[#allocation5 + $0x38] sm:$0xff]  ;;  %v8093_v4 = vld [vmem:[#allocation8] sm:$0xff]  }
  0xbd   :  { %494 = vmatprep.subr.bf16.mxu1 %v7029_v18  ;;  %538 = vmatpush1.bf16.msra.mxu0 %v7046_v24  ;;  %v194_v52 = vld [vmem:[#allocation5 + $0xa8] sm:$0xff]  ;;  %v7037_v54 = vcombine.high %v178_v46, %v186_v47  ;;  %v7036_v56 = vcombine.low %v178_v46, %v186_v47  ;;  %v188_v58 = vld [vmem:[#allocation5 + $0x78] sm:$0xff]  ;;  %v211_v7 = vsub.s32 0, %v9434_v6  ;;  %v205_v8 = vld [vmem:[#allocation7] sm:$0xff]  ;;  %v215_v9 = vsub.s32 1, %v9434_v6 }
  0xbe   :  { %617 = vmatprep.subr.bf16.mxu0 %v7035_v26  ;;  %v202_v53 = vld [vmem:[#allocation5 + $0xe8] sm:$0xff]  ;;  %v196_v61 = vld [vmem:[#allocation5 + $0xb8] sm:$0xff]  ;;  %v7041_v63 = vcombine.high %v180_v57, %v188_v58  ;;  %v7040_v1 = vcombine.low %v180_v57, %v188_v58  ;;  %v227_v10 = vsub.s32 4, %v9434_v6  ;;  %v231_v11 = vsub.s32 5, %v9434_v6 }
  0xbf   :  { %7058 = vmatmul.mubr.msk.bf16.vlgmr.msra.gmra.mrb[0].mxu1 %vm449_vm0, %v9410_v25  ;;  %v7053_v59 = vcombine.high %v194_v52, %v202_v53  ;;  %v7052_v60 = vcombine.low %v194_v52, %v202_v53  ;;  %v204_v62 = vld [vmem:[#allocation5 + $0xf8] sm:$0xff]  ;;  %v212_v12 = vrot.slane %v205_v8, %v211_v7  ;;  %v216_v13 = vrot.slane %v205_v8, %v215_v9 }
  0xc0   :  { %495 = vmatpush1.bf16.msra.mxu1 %v7028_v27  ;;  %526 = vmatprep.mubr.bf16.mxu1 %v9202_v0  ;;  %v7057_v2 = vcombine.high %v196_v61, %v204_v62  ;;  %v7056_v3 = vcombine.low %v196_v61, %v204_v62  ;;  %v228_v14 = vrot.slane %v205_v8, %v227_v10  ;;  %v219_v19 = vsub.s32 2, %v9434_v6 }
  0xc1   :  { %496 = vmatprep.subr.bf16.mxu1 %v7045_v30  ;;  %7060 = vmatmul.mubr.msk.bf16.vlgmr.msra.gmra.mrb[0].mxu0 %vm449_vm0, %v9410_v25  ;;  %v232_v16 = vrot.slane %v205_v8, %v231_v11  ;;  %v223_v22 = vsub.s32 3, %v9434_v6  ;;  %v206_v30 = vld [vmem:[#allocation7 + $0x8] sm:$0xff]  ;;  %v239_v43 = vsub.s32 7, %v9434_v6 }
  0xc2   :  { %618 = vmatpush1.bf16.msra.mxu0 %v7034_v33  ;;  %649 = vmatprep.mubr.bf16.mxu0 %v9202_v0  ;;  %v220_v31 = vrot.slane %v205_v8, %v219_v19  ;;  %v264_v57 = vrot.slane %v206_v30, %v231_v11 }
  0xc3   :  { %619 = vmatprep.subr.bf16.mxu0 %v7051_v35  ;;  %v224_v33 = vrot.slane %v205_v8, %v223_v22  ;;  %v244_v35 = vrot.slane %v206_v30, %v211_v7  ;;  %v240_v53 = vrot.slane %v205_v8, %v239_v43 }
  0xc4   :  { %497 = vmatpush1.bf16.msra.mxu1 %v7044_v37  ;;  %v248_v37 = vrot.slane %v206_v30, %v215_v9 }
  0xc5   :  { %576 = vmatprep.subr.bf16.mxu1 %v7033_v40  ;;  %v235_v40 = vsub.s32 6, %v9434_v6  ;;  %v252_v6 = vrot.slane %v206_v30, %v219_v19 }
  0xc6   :  { %620 = vmatpush1.bf16.msra.mxu0 %v7050_v41 }
  0xc7   :  { %7059 = vmatmul.mubr.msk.bf16.vlgmr.msra.gmra.mrb[4].mxu1 %vm449_vm0, %v9410_v25  ;;  %699 = vmatprep.subr.bf16.mxu0 %v7039_v44 }
  0xc8   :  { %577 = vmatpush1.bf16.msra.mxu1 %v7032_v45  ;;  %608 = vmatprep.mubr.bf16.mxu1 %v9202_v0 }
  0xc9   :  { %578 = vmatprep.subr.bf16.mxu1 %v7049_v48  ;;  %7062 = vmatmul.mubr.msk.bf16.vlgmr.msra.gmra.mrb[4].mxu0 %vm449_vm0, %v9410_v25 }
  0xca   :  { %700 = vmatpush1.bf16.msra.mxu0 %v7038_v49  ;;  %731 = vmatprep.mubr.bf16.mxu0 %v9202_v0 }
  0xcb   :  { %701 = vmatprep.subr.bf16.mxu0 %v7055_v50 }
  0xcc   :  { %579 = vmatpush1.bf16.msra.mxu1 %v7048_v51  ;;  %v236_v51 = vrot.slane %v205_v8, %v235_v40  ;;  %v256_v8 = vrot.slane %v206_v30, %v223_v22 }
  0xcd   :  { %658 = vmatprep.subr.bf16.mxu1 %v7037_v54 }
  0xce   :  { %702 = vmatpush1.bf16.msra.mxu0 %v7054_v55  ;;  %v260_v55 = vrot.slane %v206_v30, %v227_v10 }
  0xcf   :  { %7061 = vmatmul.mubr.msk.bf16.vlgmr.msra.gmra.mrb[8].mxu1 %vm449_vm0, %v9410_v25 }
  0xd0   :  { %659 = vmatpush1.bf16.msra.mxu1 %v7036_v56  ;;  %690 = vmatprep.mubr.bf16.mxu1 %v9202_v0 }
  0xd1   :  { %660 = vmatprep.subr.bf16.mxu1 %v7053_v59  ;;  %7064 = vmatmul.mubr.msk.bf16.vlgmr.msra.gmra.mrb[8].mxu0 %vm449_vm0, %v9410_v25 }
  0xd2   :  { %7943 = vmatprep.mubr.bf16.mxu0 %v8093_v4 }
  0xd4   :  { %661 = vmatpush1.bf16.msra.mxu1 %v7052_v60 }
  0xd5   :  { %740 = vmatprep.subr.bf16.mxu1 %v7041_v63 }
  0xd7   :  { %7063 = vmatmul.mubr.msk.bf16.vlgmr.msra.gmra.mrb[12].mxu1 %vm449_vm0, %v9410_v25 }
  0xd8   :  { %741 = vmatpush1.bf16.msra.mxu1 %v7040_v1  ;;  %772 = vmatprep.mubr.bf16.mxu1 %v9202_v0 }
  0xd9   :  { %742 = vmatprep.subr.bf16.mxu1 %v7057_v2 }
  0xdc   :  { %743 = vmatpush1.bf16.msra.mxu1 %v7056_v3 }
  0xdf   :  { %7065 = vmatmul.mubr.msk.bf16.vlgmr.msra.gmra.mrb[16].mxu1 %vm449_vm0, %v9410_v25 }
 0x192   :  { %v487_v15 = vpop.f32.mrb[0].mxu1 }
 0x193   :  { %v488_v17 = vadd.f32 %v487_v15, %v212_v12  ;;  %v489_v18 = vpop.f32.mrb[1].mxu1 }
 0x194   :  { %v490_v20 = vadd.f32 %v489_v18, %v216_v13  ;;  %v491_v21 = vpop.f32.mrb[2].mxu1  ;;  %v569_v23 = vpop.f32.mrb[0].mxu0  ;;  %v272_v18 = vrot.slane %v206_v30, %v239_v43 }
 0x195   :  { %v492_v24 = vpop.f32.mrb[3].mxu1  ;;  %v570_v25 = vadd.f32 %v569_v23, %v228_v14  ;;  %v571_v26 = vpop.f32.mrb[1].mxu0 }
 0x196   :  { %v785_v27 = vpack.c.bf16 %v490_v20, %v488_v17  ;;  %v572_v28 = vadd.f32 %v571_v26, %v232_v16  ;;  %v573_v29 = vpop.f32.mrb[2].mxu0  ;;  %v268_v17 = vrot.slane %v206_v30, %v235_v40  ;;  %v8094_v26 = vld [vmem:[#allocation8 + $0x8] sm:$0xff]   ;;  %v854_v40 = vld [vmem:[#allocation10] sm:$0x3] }
 0x197   :  { %v574_v32 = vpop.f32.mrb[3].mxu0 }
 0x198   :  { %7927 = vmatprep.subr.bf16.mxu0 %v785_v27  ;;  %v787_v34 = vpack.c.bf16 %v572_v28, %v570_v25 }
 0x199   :  { %7928 = vmatpush3.bf16.msra.mxu0 %v785_v27  ;;  %v9203_v27 = vmov 0.0  }
 0x19a   :  { %v528_v36 = vpop.f32.mrb[4].mxu1  ;;  %926 = vmatprep.mubr.f32.mxu1 %v9203_v27 }
 0x19b   :  { %v529_v38 = vadd.f32 %v528_v36, %v220_v31  ;;  %v530_v39 = vpop.f32.mrb[5].mxu1 }
 0x19c   :  { %v531_v41 = vadd.f32 %v530_v39, %v224_v33  ;;  %v532_v42 = vpop.f32.mrb[6].mxu1  ;;  %v651_v44 = vpop.f32.mrb[4].mxu0 }
 0x19d   :  { %v533_v45 = vpop.f32.mrb[7].mxu1  ;;  %v652_v46 = vadd.f32 %v651_v44, %v244_v35  ;;  %v653_v47 = vpop.f32.mrb[5].mxu0  ;;  %v1076_v42 = vld [vmem:[#allocation11 + $0x48] sm:$0xff] }
 0x19e   :  { %v786_v48 = vpack.c.bf16 %v531_v41, %v529_v38  ;;  %v654_v49 = vadd.f32 %v653_v47, %v248_v37  ;;  %v655_v50 = vpop.f32.mrb[6].mxu0  ;;  %v1068_v41 = vld [vmem:[#allocation11 + $0x8] sm:$0xff] }
 0x19f   :  { %v656_v52 = vpop.f32.mrb[7].mxu0  ;;  %v7077_v43 = vcombine.low %v1068_v41, %v1076_v42  ;;  %v7078_v44 = vcombine.high %v1068_v41, %v1076_v42  ;;  %v1084_v45 = vld [vmem:[#allocation11 + $0x88] sm:$0xff] }
 0x1a0   :  { %7929 = vmatprep.subr.bf16.mxu0 %v786_v48  ;;  %v789_v54 = vpack.c.bf16 %v654_v49, %v652_v46  ;;  %v1092_v46 = vld [vmem:[#allocation11 + $0xc8] sm:$0xff] }
 0x1a1   :  { %7930 = vmatpush3.bf16.msra.mxu0 %v786_v48  ;;  %v7094_v47 = vcombine.high %v1084_v45, %v1092_v46  ;;  %v1100_v48 = vld [vmem:[#allocation11 + $0x108] sm:$0xff]  ;;  %v7093_v50 = vcombine.low %v1084_v45, %v1092_v46  ;;  %v1171_v45 = vld [vmem:[#allocation11 + $0x340] sm:$0xff] }
 0x1a2   :  { %v610_v56 = vpop.f32.mrb[8].mxu1  ;;  %7931 = vmatprep.subr.bf16.mxu0 %v787_v34  ;;  %v1108_v49 = vld [vmem:[#allocation11 + $0x148] sm:$0xff] }
 0x1a3   :  { %v611_v58 = vadd.f32 %v610_v56, %v236_v51  ;;  %v612_v59 = vpop.f32.mrb[9].mxu1  ;;  %v7110_v51 = vcombine.high %v1100_v48, %v1108_v49  ;;  %v1116_v52 = vld [vmem:[#allocation11 + $0x188] sm:$0xff] }
 0x1a4   :  { %v613_v60 = vadd.f32 %v612_v59, %v240_v53  ;;  %v614_v61 = vpop.f32.mrb[10].mxu1  ;;  %v733_v62 = vpop.f32.mrb[8].mxu0  ;;  %v1124_v53 = vld [vmem:[#allocation11 + $0x1c8] sm:$0xff] }
 0x1a5   :  { %v615_v63 = vpop.f32.mrb[11].mxu1  ;;  %7932 = vmatpush3.bf16.msra.mxu0 %v787_v34  ;;  %v734_v1 = vadd.f32 %v733_v62, %v260_v55  ;;  %v735_v2 = vpop.f32.mrb[9].mxu0  ;;  %v7126_v55 = vcombine.high %v1116_v52, %v1124_v53  ;;  %v1132_v56 = vld [vmem:[#allocation11 + $0x208] sm:$0xff] }
 0x1a6   :  { %v788_v3 = vpack.c.bf16 %v613_v60, %v611_v58  ;;  %v736_v4 = vadd.f32 %v735_v2, %v264_v57  ;;  %v737_v5 = vpop.f32.mrb[10].mxu0  ;;  %v1140_v57 = vld [vmem:[#allocation11 + $0x248] sm:$0xff]  ;;  %v7125_v58 = vcombine.low %v1116_v52, %v1124_v53  ;;  %v1179_v52 = vld [vmem:[#allocation11 + $0x380] sm:$0xff] }
 0x1a7   :  { %v738_v7 = vpop.f32.mrb[11].mxu0  ;;  %v7142_v59 = vcombine.high %v1132_v56, %v1140_v57  ;;  %v7141_v60 = vcombine.low %v1132_v56, %v1140_v57  ;;  %v1075_v5 = vld [vmem:[#allocation11 + $0x40] sm:$0xff]  ;;  %v1164_v46 = vld [vmem:[#allocation11 + $0x308] sm:$0xff] }
 0x1a8   :  { %7933 = vmatprep.subr.bf16.mxu0 %v788_v3  ;;  %v791_v9 = vpack.c.bf16 %v736_v4, %v734_v1  ;;  %v1067_v4 = vld [vmem:[#allocation11] sm:$0xff]  ;;  %v1188_v56 = vld [vmem:[#allocation11 + $0x3c8] sm:$0xff] }
 0x1a9   :  { %7934 = vmatpush3.bf16.msra.mxu0 %v788_v3  ;;  %v1187_v53 = vld [vmem:[#allocation11 + $0x3c0] sm:$0xff] }
 0x1aa   :  { %v692_v10 = vpop.f32.mrb[12].mxu1  ;;  %7935 = vmatprep.subr.bf16.mxu0 %v789_v54  ;;  %v7187_v57 = vcombine.low %v1179_v52, %v1187_v53 }
 0x1ab   :  { %v693_v11 = vadd.f32 %v692_v10, %v252_v6  ;;  %v694_v12 = vpop.f32.mrb[13].mxu1 }
 0x1ac   :  { %v695_v13 = vadd.f32 %v694_v12, %v256_v8  ;;  %v696_v14 = vpop.f32.mrb[14].mxu1  ;;  %v1083_v8 = vld [vmem:[#allocation11 + $0x80] sm:$0xff]  ;;  %v938_v12 = vld [vmem:[%s9866_s5] sm:$0xff] }
 0x1ad   :  { %v697_v15 = vpop.f32.mrb[15].mxu1  ;;  %7936 = vmatpush3.bf16.msra.mxu0 %v789_v54  ;;  %v7109_v54 = vcombine.low %v1100_v48, %v1108_v49  ;;  %v1172_v48 = vld [vmem:[#allocation11 + $0x348] sm:$0xff] }
 0x1ae   :  { %v790_v16 = vpack.c.bf16 %v695_v13, %v693_v11  ;;  %v7076_v11 = vcombine.high %v1067_v4, %v1075_v5  ;;  %v7075_v13 = vcombine.low %v1067_v4, %v1075_v5  ;;  %v1099_v15 = vld [vmem:[#allocation11 + $0x100] sm:$0xff] }
 0x1b0   :  { %7937 = vmatprep.subr.bf16.mxu0 %v790_v16 }
 0x1b1   :  { %7938 = vmatpush3.bf16.msra.mxu0 %v790_v16  ;;  %v1107_v16 = vld [vmem:[#allocation11 + $0x140] sm:$0xff] }
 0x1b2   :  { %v774_v20 = vpop.f32.mrb[16].mxu1  ;;  %7939 = vmatprep.subr.bf16.mxu0 %v791_v9 }
 0x1b3   :  { %v775_v19 = vadd.f32 %v774_v20, %v268_v17  ;;  %v776_v21 = vpop.f32.mrb[17].mxu1  ;;  %v939_v17 = vld [vmem:[%s9866_s5 + $0x8] sm:$0xff]  ;;  %v7108_v20 = vcombine.high %v1099_v15, %v1107_v16 }
 0x1b4   :  { %v777_v22 = vadd.f32 %v776_v21, %v272_v18  ;;  %v778_v23 = vpop.f32.mrb[18].mxu1  ;;  %v1123_v21 = vld [vmem:[#allocation11 + $0x1c0] sm:$0xff] }
 0x1b5   :  { %v779_v24 = vpop.f32.mrb[19].mxu1  ;;  %7940 = vmatpush3.bf16.msra.mxu0 %v791_v9  ;;  %v1091_v9 = vld [vmem:[#allocation11 + $0xc0] sm:$0xff]  ;;  %v7107_v23 = vcombine.low %v1099_v15, %v1107_v16  ;;  %v1093_v15 = vld [vmem:[#allocation11 + $0xd0] sm:$0xff]  ;;  %v1086_v16 = vld [vmem:[#allocation11 + $0x98] sm:$0xff] }
 0x1b6   :  { %v792_v25 = vpack.c.bf16 %v777_v22, %v775_v19  ;;  %v7092_v14 = vcombine.high %v1083_v8, %v1091_v9  ;;  %v7091_v18 = vcombine.low %v1083_v8, %v1091_v9  ;;  %v1115_v19 = vld [vmem:[#allocation11 + $0x180] sm:$0xff] }
 0x1b7   :  { %v940_v22 = vld [vmem:[%s9866_s5 + $0x10] sm:$0xff]  ;;  %v7124_v24 = vcombine.high %v1115_v19, %v1123_v21 }
 0x1b8   :  { %7941 = vmatprep.subr.bf16.mxu0 %v792_v25 }
 0x1b9   :  { %7942 = vmatpush3.bf16.msra.mxu0 %v792_v25  ;;  %v1131_v25 = vld [vmem:[#allocation11 + $0x200] sm:$0xff] }
 0x1ba   :  { %1888 = vmatprep.subr.bf16.mxu0 %v7078_v44  ;;  %v1163_v44 = vld [vmem:[#allocation11 + $0x300] sm:$0xff] }
 0x1bb   :  { %v7171_v49 = vcombine.low %v1163_v44, %v1171_v45 }
 0x1bc   :  { %7944 = vmatmul.mubr.bf16.vlgmr.msra.gmra.mrb[12].mxu0 %v8094_v26  ;;  %v1139_v26 = vld [vmem:[#allocation11 + $0x240] sm:$0xff] }
 0x1bd   :  { %1920 = vmatprep.mubr.bf16.mxu0 %v9202_v0  ;;  %1889 = vmatpush1.bf16.msra.mxu0 %v7077_v43 }
 0x1be   :  { %1890 = vmatprep.subr.bf16.mxu0 %v7094_v47  ;;  %v7172_v47 = vcombine.high %v1163_v44, %v1171_v45 }
 0x1c1   :  { %1891 = vmatpush1.bf16.msra.mxu0 %v7093_v50  ;;  %v7173_v50 = vcombine.low %v1164_v46, %v1172_v48 }
 0x1c2   :  { %1892 = vmatprep.subr.bf16.mxu0 %v7110_v51  ;;  %v7174_v51 = vcombine.high %v1164_v46, %v1172_v48 }
 0x1c5   :  { %1893 = vmatpush1.bf16.msra.mxu0 %v7109_v54  ;;  %v1180_v54 = vld [vmem:[#allocation11 + $0x388] sm:$0xff] }
 0x1c6   :  { %1894 = vmatprep.subr.bf16.mxu0 %v7126_v55  ;;  %v7188_v55 = vcombine.high %v1179_v52, %v1187_v53  ;;  %v1134_v52 = vld [vmem:[#allocation11 + $0x218] sm:$0xff] }
 0x1c7   :  { %v1142_v53 = vld [vmem:[#allocation11 + $0x258] sm:$0xff] }
 0x1c9   :  { %1895 = vmatpush1.bf16.msra.mxu0 %v7125_v58  ;;  %v7189_v58 = vcombine.low %v1180_v54, %v1188_v56 }
 0x1ca   :  { %1896 = vmatprep.subr.bf16.mxu0 %v7142_v59  ;;  %v7190_v59 = vcombine.high %v1180_v54, %v1188_v56 }
 0x1cd   :  { %1897 = vmatpush1.bf16.msra.mxu0 %v7141_v60  ;;  %v1069_v60 = vld [vmem:[#allocation11 + $0x10] sm:$0xff] }
 0x28f   :  { %v9446_v28 = vpop.f32.mrb[12].mxu0 }
 0x290   :  { %v9448_v29 = vpop.f32.mrb[13].mxu0  ;;  %v857_v31 = vmul.f32 %v9446_v28, %v9446_v28 }
 0x291   :  { %v9450_v30 = vpop.f32.mrb[14].mxu0  ;;  %v855_v35 = vmul.f32 %v9448_v29, %v9448_v29 }
 0x292   :  { %v858_v32 = vmul.f32 %v9450_v30, %v9450_v30  ;;  %v7985_v33 = vpack.c.bf16 %v9450_v30, %v9446_v28  ;;  %v9458_v34 = vpop.f32.mrb[15].mxu0 }
 0x293   :  { %v856_v36 = vmul.f32 %v9458_v34, %v9458_v34  ;;  %v7981_v37 = vpack.c.bf16 %v9458_v34, %v9448_v29 }
 0x294   :  { %v7983_v38 = vpack.c.bf16 %v858_v32, %v857_v31  ;;  %v941_v31 = vld [vmem:[%s9866_s5 + $0x18] sm:$0xff]  ;;  %v7123_v32 = vcombine.low %v1115_v19, %v1123_v21 }
 0x295   :  { %v7979_v39 = vpack.c.bf16 %v856_v36, %v855_v35  ;;  %v7139_v35 = vcombine.low %v1131_v25, %v1139_v26  ;;  %v1147_v36 = vld [vmem:[#allocation11 + $0x280] sm:$0xff] }
 0x297   :  { %7980 = vmatprep.subr.bf16.mxu1 %v7979_v39 }
 0x298   :  { %7982 = vmatpush1.bf16.msra.mxu1 %v7981_v37  ;;  %v1155_v37 = vld [vmem:[#allocation11 + $0x2c0] sm:$0xff] }
 0x299   :  { %7984 = vmatprep.subr.bf16.mxu1 %v7983_v38  ;;  %v1148_v38 = vld [vmem:[#allocation11 + $0x288] sm:$0xff]  ;;  %v7156_v39 = vcombine.high %v1147_v36, %v1155_v37  ;;  %v7155_v41 = vcombine.low %v1147_v36, %v1155_v37 }
 0x29c   :  { %7986 = vmatpush1.bf16.msra.mxu1 %v7985_v33  ;;  %v7140_v33 = vcombine.high %v1131_v25, %v1139_v26  ;;  %v1101_v25 = vld [vmem:[#allocation11 + $0x110] sm:$0xff] }
 0x29f   :  { %7068 = vmatmul.mubr.msk.f32.vlgmr.msra.gmra.mrb[20].mxu1 %vm449_vm0, %v854_v40  ;;  %v1156_v40 = vld [vmem:[#allocation11 + $0x2c8] sm:$0xff] }
 0x2a0   :  { %1028 = vmatprep.mubr.f32.mxu1 %v9203_v27  ;;  %v7157_v42 = vcombine.low %v1148_v38, %v1156_v40  ;;  %v7158_v43 = vcombine.high %v1148_v38, %v1156_v40  ;;  %v1117_v40 = vld [vmem:[#allocation11 + $0x190] sm:$0xff] }
 0x2a2   :  { %1898 = vmatprep.subr.bf16.mxu0 %v7158_v43 }
 0x2a3   :  { %1899 = vmatpush1.bf16.msra.mxu0 %v7157_v42  ;;  %v1126_v42 = vld [vmem:[#allocation11 + $0x1d8] sm:$0xff] }
 0x2a4   :  { %1900 = vmatprep.subr.bf16.mxu0 %v7174_v51  ;;  %v1141_v51 = vld [vmem:[#allocation11 + $0x250] sm:$0xff] }
 0x2a7   :  { %1901 = vmatpush1.bf16.msra.mxu0 %v7173_v50  ;;  %v1133_v50 = vld [vmem:[#allocation11 + $0x210] sm:$0xff] }
 0x2a8   :  { %1902 = vmatprep.subr.bf16.mxu0 %v7190_v59  ;;  %v7144_v56 = vcombine.high %v1133_v50, %v1141_v51  ;;  %v1157_v59 = vld [vmem:[#allocation11 + $0x2d0] sm:$0xff] }
 0x2ab   :  { %1903 = vmatpush1.bf16.msra.mxu0 %v7189_v58  ;;  %v1149_v58 = vld [vmem:[#allocation11 + $0x290] sm:$0xff] }
 0x372   :  { %v928_v61 = vpop.f32.mrb[20].mxu1 }
 0x373   :  { %v933_v62 = vmul.f32 %v928_v61, %v928_v61  ;;  %v930_v63 = vpop.f32.mrb[21].mxu1  ;;  %v942_v6 = vsub.f32 0.0, %v928_v61  ;;  %v1077_v61 = vld [vmem:[#allocation11 + $0x50] sm:$0xff] }
 0x375   :  { %v934_v1 = vsub.f32 %v930_v63, %v933_v62  ;;  %v1070_v62 = vld [vmem:[#allocation11 + $0x18] sm:$0xff]  ;;  %v7080_v63 = vcombine.high %v1069_v60, %v1077_v61 }
 0x377   :  { %v935_v2 = vmax.f32 %v934_v1, 0.0  ;;  %v1078_v1 = vld [vmem:[#allocation11 + $0x58] sm:$0xff] }
 0x378   :  { %v7082_v4 = vcombine.high %v1070_v62, %v1078_v1 }
 0x379   :  { %v936_v3 = vadd.f32 1e-08, %v935_v2  ;;  %v7079_v2 = vcombine.low %v1069_v60, %v1077_v61  ;;  %v1150_v60 = vld [vmem:[#allocation11 + $0x298] sm:$0xff] }
 0x37a   :  { %1994 = vmatprep.subr.bf16.mxu0 %v7082_v4  ;;  %v1158_v61 = vld [vmem:[#allocation11 + $0x2d8] sm:$0xff]  ;;  %v1173_v4 = vld [vmem:[#allocation11 + $0x350] sm:$0xff] }
 0x37b   :  { %8919 = vrsqrt.f32 %v936_v3  ;;  %v7081_v3 = vcombine.low %v1070_v62, %v1078_v1  ;;  %v7143_v62 = vcombine.low %v1133_v50, %v1141_v51  ;;  %v7160_v1 = vcombine.high %v1149_v58, %v1157_v59 }
 0x385   :  { %v8920_v7 = vpop.eup %8919 }
 0x386   :  { %v943_v10 = vmul.f32 %v8920_v7, %v942_v6 }
 0x388   :  { %7069 = vmatprep.subr.msk.mxu1 %vm957_vm1, %v943_v10 }
 0x389   :  { %7070 = vmatpush1.msk.msra.mxu1 %vm957_vm1, %v8920_v7 }
 0x38a   :  { %7071 = vmatmul.mubr.msk.f32.vlgmr.msra.gmra.mrb[22].mxu1 %vm944_vm2, %v938_v12  ;;  %1835 = vmatprep.subr.bf16.mxu1 %v7076_v11 }
 0x38b   :  { %1034 = vmatprep.mubr.f32.mxu1 %v9203_v27  ;;  %1836 = vmatpush1.bf16.msra.mxu1 %v7075_v13  ;;  %v1085_v13 = vld [vmem:[#allocation11 + $0x90] sm:$0xff] }
 0x38c   :  { %1837 = vmatprep.subr.bf16.mxu1 %v7092_v14 }
 0x38e   :  { %7072 = vmatmul.mubr.msk.f32.gmra.mrb[24].mxu1 %vm944_vm2, %v939_v17  ;;  %v1094_v17 = vld [vmem:[#allocation11 + $0xd8] sm:$0xff] }
 0x38f   :  { %1040 = vmatprep.mubr.f32.mxu1 %v9203_v27  ;;  %1838 = vmatpush1.bf16.msra.mxu1 %v7091_v18  ;;  %v7097_v36 = vcombine.low %v1086_v16, %v1094_v17 }
 0x390   :  { %1839 = vmatprep.subr.bf16.mxu1 %v7108_v20 }
 0x392   :  { %7073 = vmatmul.mubr.msk.f32.gmra.mrb[26].mxu1 %vm944_vm2, %v940_v22 }
 0x393   :  { %1046 = vmatprep.mubr.f32.mxu1 %v9203_v27  ;;  %1840 = vmatpush1.bf16.msra.mxu1 %v7107_v23  ;;  %v7096_v23 = vcombine.high %v1085_v13, %v1093_v15 }
 0x394   :  { %1841 = vmatprep.subr.bf16.mxu1 %v7124_v24  ;;  %v7098_v24 = vcombine.high %v1086_v16, %v1094_v17 }
 0x396   :  { %7074 = vmatmul.mubr.msk.f32.gmra.mrb[28].mxu1 %vm944_vm2, %v941_v31  ;;  %v1102_v31 = vld [vmem:[#allocation11 + $0x118] sm:$0xff] }
 0x397   :  { %1842 = vmatpush1.bf16.msra.mxu1 %v7123_v32  ;;  %1867 = vmatprep.mubr.bf16.mxu1 %v9202_v0  ;;  %v1110_v32 = vld [vmem:[#allocation11 + $0x158] sm:$0xff] }
 0x398   :  { %1843 = vmatprep.subr.bf16.mxu1 %v7140_v33  ;;  %v7113_v46 = vcombine.low %v1102_v31, %v1110_v32 }
 0x39b   :  { %1844 = vmatpush1.bf16.msra.mxu1 %v7139_v35 }
 0x39c   :  { %1845 = vmatprep.subr.bf16.mxu1 %v7156_v39  ;;  %v7114_v39 = vcombine.high %v1102_v31, %v1110_v32  ;;  %v1095_v31 = vld [vmem:[#allocation11 + $0xe0] sm:$0xff]  ;;  %v1088_v32 = vld [vmem:[#allocation11 + $0xa8] sm:$0xff] }
 0x39f   :  { %1846 = vmatpush1.bf16.msra.mxu1 %v7155_v41  ;;  %v1118_v41 = vld [vmem:[#allocation11 + $0x198] sm:$0xff] }
 0x3a0   :  { %1847 = vmatprep.subr.bf16.mxu1 %v7172_v47 }
 0x3a3   :  { %1848 = vmatpush1.bf16.msra.mxu1 %v7171_v49  ;;  %v7130_v49 = vcombine.high %v1118_v41, %v1126_v42 }
 0x3a4   :  { %1849 = vmatprep.subr.bf16.mxu1 %v7188_v55  ;;  %v7129_v55 = vcombine.low %v1118_v41, %v1126_v42 }
 0x3a7   :  { %1850 = vmatpush1.bf16.msra.mxu1 %v7187_v57  ;;  %v7146_v57 = vcombine.high %v1134_v52, %v1142_v53 }
 0x3a8   :  { %1941 = vmatprep.subr.bf16.mxu1 %v7080_v63  ;;  %v7145_v63 = vcombine.low %v1134_v52, %v1142_v53 }
 0x45d   :  { %v1030_v5 = vpop.f32.mrb[22].mxu1 }
 0x45e   :  { %v1053_v6 = vmul.f32 %v1030_v5, %v9448_v29  ;;  %v1032_v7 = vpop.f32.mrb[23].mxu1  ;;  %v1166_v5 = vld [vmem:[#allocation11 + $0x318] sm:$0xff] }
 0x460   :  { %v1057_v8 = vadd.f32 %v1053_v6, %v1032_v7  ;;  %v1174_v6 = vld [vmem:[#allocation11 + $0x358] sm:$0xff]  ;;  %v7159_v7 = vcombine.low %v1149_v58, %v1157_v59 }
 0x461   :  { %v1036_v9 = vpop.f32.mrb[24].mxu1  ;;  %v7177_v16 = vcombine.low %v1166_v5, %v1174_v6 }
 0x462   :  { %v1054_v10 = vmul.f32 %v1036_v9, %v9458_v34  ;;  %v1038_v11 = vpop.f32.mrb[25].mxu1  ;;  %v1061_v18 = vmax.f32 %v1057_v8, 0.0  ;;  %v1109_v34 = vld [vmem:[#allocation11 + $0x150] sm:$0xff]  ;;  %v7161_v8 = vcombine.low %v1150_v60, %v1158_v61 }
 0x463   :  { %v7112_v38 = vcombine.high %v1101_v25, %v1109_v34  ;;  %v7111_v45 = vcombine.low %v1101_v25, %v1109_v34  ;;  %v1087_v34 = vld [vmem:[#allocation11 + $0xa0] sm:$0xff] }
 0x464   :  { %v1058_v12 = vadd.f32 %v1054_v10, %v1038_v11  ;;  %v7178_v10 = vcombine.high %v1166_v5, %v1174_v6  ;;  %v1181_v11 = vld [vmem:[#allocation11 + $0x390] sm:$0xff]  ;;  %v7099_v41 = vcombine.low %v1087_v34, %v1095_v31 }
 0x465   :  { %v1042_v14 = vpop.f32.mrb[26].mxu1 }
 0x466   :  { %v1062_v20 = vmax.f32 %v1058_v12, 0.0  ;;  %v1055_v19 = vmul.f32 %v9446_v28, %v1042_v14  ;;  %v1044_v21 = vpop.f32.mrb[27].mxu1  ;;  %v7095_v28 = vcombine.low %v1085_v13, %v1093_v15  ;;  %v1189_v12 = vld [vmem:[#allocation11 + $0x3d0] sm:$0xff]  ;;  %v1182_v13 = vld [vmem:[#allocation11 + $0x398] sm:$0xff] }
 0x467   :  { %v1190_v14 = vld [vmem:[#allocation11 + $0x3d8] sm:$0xff]  ;;  %v7192_v17 = vcombine.high %v1181_v11, %v1189_v12 }
 0x468   :  { %v9493_v22 = vpack.c.bf16 %v1062_v20, %v1061_v18  ;;  %v1059_v29 = vadd.f32 %v1055_v19, %v1044_v21  ;;  %v7194_v18 = vcombine.high %v1182_v13, %v1190_v14  ;;  %v1071_v20 = vld [vmem:[#allocation11 + $0x20] sm:$0xff]  ;;  %v1072_v21 = vld [vmem:[#allocation11 + $0x28] sm:$0xff] }
 0x469   :  { %v1048_v26 = vpop.f32.mrb[28].mxu1  ;;  %v1079_v19 = vld [vmem:[#allocation11 + $0x60] sm:$0xff] }
 0x46a   :  { %v1056_v33 = vmul.f32 %v9450_v30, %v1048_v26  ;;  %1868 = vmatmul.mubr.bf16.vlgmr.msra.gmra.mrb[32].mxu1 %v9493_v22  ;;  %1921 = vmatmul.mubr.bf16.vlgmr.msra.gmra.mrb[16].mxu0 %v9493_v22  ;;  %v1050_v35 = vpop.f32.mrb[29].mxu1  ;;  %v1125_v30 = vld [vmem:[#allocation11 + $0x1d0] sm:$0xff]  ;;  %v1063_v43 = vmax.f32 %v1059_v29, 0.0  ;;  %v1080_v29 = vld [vmem:[#allocation11 + $0x68] sm:$0xff]  ;;  %v7084_v25 = vcombine.high %v1071_v20, %v1079_v19 }
 0x46b   :  { %1942 = vmatpush1.bf16.msra.mxu1 %v7079_v2  ;;  %1995 = vmatpush1.bf16.msra.mxu0 %v7081_v3  ;;  %v7128_v48 = vcombine.high %v1117_v40, %v1125_v30  ;;  %v7127_v54 = vcombine.low %v1117_v40, %v1125_v30  ;;  %v7162_v2 = vcombine.high %v1150_v60, %v1158_v61  ;;  %v1165_v3 = vld [vmem:[#allocation11 + $0x310] sm:$0xff]  ;;  %v1104_v40 = vld [vmem:[#allocation11 + $0x128] sm:$0xff] }
 0x46c   :  { %v1060_v37 = vadd.f32 %v1056_v33, %v1050_v35  ;;  %1943 = vmatprep.subr.bf16.mxu1 %v7096_v23  ;;  %1996 = vmatprep.subr.bf16.mxu0 %v7098_v24  ;;  %v7176_v9 = vcombine.high %v1165_v3, %v1173_v4  ;;  %v7175_v15 = vcombine.low %v1165_v3, %v1173_v4  ;;  %v1096_v33 = vld [vmem:[#allocation11 + $0xe8] sm:$0xff] }
 0x46d   :  { %1877 = vmatprep.mubr.bf16.mxu1 %v9202_v0  ;;  %1930 = vmatprep.mubr.bf16.mxu0 %v9202_v0  ;;  %v7191_v23 = vcombine.low %v1181_v11, %v1189_v12  ;;  %v7193_v24 = vcombine.low %v1182_v13, %v1190_v14  ;;  %v7086_v26 = vcombine.high %v1072_v21, %v1080_v29  ;;  %v1112_v30 = vld [vmem:[#allocation11 + $0x168] sm:$0xff] }
 0x46e   :  { %v1064_v44 = vmax.f32 %v1060_v37, 0.0  ;;  %v7083_v35 = vcombine.low %v1071_v20, %v1079_v19  ;;  %v7102_v37 = vcombine.high %v1088_v32, %v1096_v33  ;;  %v7101_v42 = vcombine.low %v1088_v32, %v1096_v33 }
 0x46f   :  { %1944 = vmatpush1.bf16.msra.mxu1 %v7095_v28  ;;  %1997 = vmatpush1.bf16.msra.mxu0 %v7097_v36  ;;  %v7085_v28 = vcombine.low %v1072_v21, %v1080_v29  ;;  %v7100_v36 = vcombine.high %v1087_v34, %v1095_v31  ;;  %v7117_v51 = vcombine.low %v1104_v40, %v1112_v30 }
 0x470   :  { %v9500_v47 = vpack.c.bf16 %v1064_v44, %v1063_v43  ;;  %1945 = vmatprep.subr.bf16.mxu1 %v7112_v38  ;;  %1998 = vmatprep.subr.bf16.mxu0 %v7114_v39  ;;  %v1103_v38 = vld [vmem:[#allocation11 + $0x120] sm:$0xff]  ;;  %v7118_v44 = vcombine.high %v1104_v40, %v1112_v30 }
 0x471   :  { %v1111_v39 = vld [vmem:[#allocation11 + $0x160] sm:$0xff] }
 0x472   :  { %1878 = vmatmul.mubr.bf16.gmra.mrb[36].mxu1 %v9500_v47  ;;  %1931 = vmatmul.mubr.bf16.gmra.mrb[20].mxu0 %v9500_v47  ;;  %v7116_v43 = vcombine.high %v1103_v38, %v1111_v39  ;;  %v7115_v50 = vcombine.low %v1103_v38, %v1111_v39 }
 0x473   :  { %1946 = vmatpush1.bf16.msra.mxu1 %v7111_v45  ;;  %1999 = vmatpush1.bf16.msra.mxu0 %v7113_v46  ;;  %v1119_v45 = vld [vmem:[#allocation11 + $0x1a0] sm:$0xff] }
 0x474   :  { %1947 = vmatprep.subr.bf16.mxu1 %v7128_v48  ;;  %2000 = vmatprep.subr.bf16.mxu0 %v7130_v49  ;;  %v1127_v46 = vld [vmem:[#allocation11 + $0x1e0] sm:$0xff]  ;;  %v1120_v48 = vld [vmem:[#allocation11 + $0x1a8] sm:$0xff] }
 0x475   :  { %1973 = vmatprep.mubr.bf16.mxu1 %v9202_v0  ;;  %2026 = vmatprep.mubr.bf16.mxu0 %v9202_v0  ;;  %v1128_v49 = vld [vmem:[#allocation11 + $0x1e8] sm:$0xff]  ;;  %v7132_v52 = vcombine.high %v1119_v45, %v1127_v46  ;;  %v7131_v58 = vcombine.low %v1119_v45, %v1127_v46 }
 0x476   :  { %v7134_v53 = vcombine.high %v1120_v48, %v1128_v49  ;;  %v7133_v59 = vcombine.low %v1120_v48, %v1128_v49 }
 0x477   :  { %1948 = vmatpush1.bf16.msra.mxu1 %v7127_v54  ;;  %2001 = vmatpush1.bf16.msra.mxu0 %v7129_v55  ;;  %v1135_v54 = vld [vmem:[#allocation11 + $0x220] sm:$0xff] }
 0x478   :  { %1949 = vmatprep.subr.bf16.mxu1 %v7144_v56  ;;  %2002 = vmatprep.subr.bf16.mxu0 %v7146_v57  ;;  %v1143_v55 = vld [vmem:[#allocation11 + $0x260] sm:$0xff]  ;;  %v1136_v56 = vld [vmem:[#allocation11 + $0x228] sm:$0xff] }
 0x479   :  { %v1144_v57 = vld [vmem:[#allocation11 + $0x268] sm:$0xff]  ;;  %v7148_v60 = vcombine.high %v1135_v54, %v1143_v55  ;;  %v7147_v3 = vcombine.low %v1135_v54, %v1143_v55 }
 0x47a   :  { %v7150_v61 = vcombine.high %v1136_v56, %v1144_v57  ;;  %v7149_v4 = vcombine.low %v1136_v56, %v1144_v57 }
 0x47b   :  { %1950 = vmatpush1.bf16.msra.mxu1 %v7143_v62  ;;  %2003 = vmatpush1.bf16.msra.mxu0 %v7145_v63  ;;  %v1151_v62 = vld [vmem:[#allocation11 + $0x2a0] sm:$0xff] }
 0x47c   :  { %1951 = vmatprep.subr.bf16.mxu1 %v7160_v1  ;;  %2004 = vmatprep.subr.bf16.mxu0 %v7162_v2  ;;  %v1159_v63 = vld [vmem:[#allocation11 + $0x2e0] sm:$0xff]  ;;  %v1152_v1 = vld [vmem:[#allocation11 + $0x2a8] sm:$0xff] }
 0x47d   :  { %v1160_v2 = vld [vmem:[#allocation11 + $0x2e8] sm:$0xff]  ;;  %v7164_v5 = vcombine.high %v1151_v62, %v1159_v63  ;;  %v7163_v11 = vcombine.low %v1151_v62, %v1159_v63 }
 0x47e   :  { %v7166_v6 = vcombine.high %v1152_v1, %v1160_v2  ;;  %v7165_v12 = vcombine.low %v1152_v1, %v1160_v2 }
 0x47f   :  { %1952 = vmatpush1.bf16.msra.mxu1 %v7159_v7  ;;  %2005 = vmatpush1.bf16.msra.mxu0 %v7161_v8  ;;  %v1167_v7 = vld [vmem:[#allocation11 + $0x320] sm:$0xff] }
 0x480   :  { %1953 = vmatprep.subr.bf16.mxu1 %v7176_v9  ;;  %2006 = vmatprep.subr.bf16.mxu0 %v7178_v10  ;;  %v1175_v8 = vld [vmem:[#allocation11 + $0x360] sm:$0xff]  ;;  %v1168_v9 = vld [vmem:[#allocation11 + $0x328] sm:$0xff] }
 0x481   :  { %v1176_v10 = vld [vmem:[#allocation11 + $0x368] sm:$0xff]  ;;  %v7180_v13 = vcombine.high %v1167_v7, %v1175_v8  ;;  %v7179_v20 = vcombine.low %v1167_v7, %v1175_v8 }
 0x482   :  { %v7182_v14 = vcombine.high %v1168_v9, %v1176_v10  ;;  %v7181_v19 = vcombine.low %v1168_v9, %v1176_v10 }
 0x483   :  { %1954 = vmatpush1.bf16.msra.mxu1 %v7175_v15  ;;  %2007 = vmatpush1.bf16.msra.mxu0 %v7177_v16  ;;  %v1183_v15 = vld [vmem:[#allocation11 + $0x3a0] sm:$0xff] }
 0x484   :  { %1955 = vmatprep.subr.bf16.mxu1 %v7192_v17  ;;  %2008 = vmatprep.subr.bf16.mxu0 %v7194_v18  ;;  %v1191_v16 = vld [vmem:[#allocation11 + $0x3e0] sm:$0xff]  ;;  %v1184_v17 = vld [vmem:[#allocation11 + $0x3a8] sm:$0xff] }
 0x485   :  { %v1192_v18 = vld [vmem:[#allocation11 + $0x3e8] sm:$0xff]  ;;  %v7196_v21 = vcombine.high %v1183_v15, %v1191_v16  ;;  %v7195_v34 = vcombine.low %v1183_v15, %v1191_v16 }
 0x486   :  { %v7198_v29 = vcombine.high %v1184_v17, %v1192_v18  ;;  %v7197_v31 = vcombine.low %v1184_v17, %v1192_v18 }
 0x487   :  { %1956 = vmatpush1.bf16.msra.mxu1 %v7191_v23  ;;  %2009 = vmatpush1.bf16.msra.mxu0 %v7193_v24  ;;  %v1073_v23 = vld [vmem:[#allocation11 + $0x30] sm:$0xff] }
 0x488   :  { %2047 = vmatprep.subr.bf16.mxu1 %v7084_v25  ;;  %2100 = vmatprep.subr.bf16.mxu0 %v7086_v26  ;;  %v1081_v24 = vld [vmem:[#allocation11 + $0x70] sm:$0xff]  ;;  %v1074_v25 = vld [vmem:[#allocation11 + $0x38] sm:$0xff] }
 0x489   :  { %v1082_v26 = vld [vmem:[#allocation11 + $0x78] sm:$0xff]  ;;  %v7088_v32 = vcombine.high %v1073_v23, %v1081_v24  ;;  %v7087_v38 = vcombine.low %v1073_v23, %v1081_v24 }
 0x48a   :  { %1974 = vmatmul.mubr.bf16.vlgmr.msra.gmra.mrb[40].mxu1 %v9493_v22  ;;  %2027 = vmatmul.mubr.bf16.vlgmr.msra.gmra.mrb[24].mxu0 %v9493_v22  ;;  %v7090_v33 = vcombine.high %v1074_v25, %v1082_v26  ;;  %v7089_v39 = vcombine.low %v1074_v25, %v1082_v26 }
 0x48b   :  { %2048 = vmatpush1.bf16.msra.mxu1 %v7083_v35  ;;  %2101 = vmatpush1.bf16.msra.mxu0 %v7085_v28  ;;  %v1089_v35 = vld [vmem:[#allocation11 + $0xb0] sm:$0xff] }
 0x48c   :  { %2049 = vmatprep.subr.bf16.mxu1 %v7100_v36  ;;  %2102 = vmatprep.subr.bf16.mxu0 %v7102_v37  ;;  %v1097_v28 = vld [vmem:[#allocation11 + $0xf0] sm:$0xff]  ;;  %v1090_v36 = vld [vmem:[#allocation11 + $0xb8] sm:$0xff] }
 0x48d   :  { %1983 = vmatprep.mubr.bf16.mxu1 %v9202_v0  ;;  %2036 = vmatprep.mubr.bf16.mxu0 %v9202_v0  ;;  %v1098_v37 = vld [vmem:[#allocation11 + $0xf8] sm:$0xff]  ;;  %v7104_v40 = vcombine.high %v1089_v35, %v1097_v28  ;;  %v7103_v45 = vcombine.low %v1089_v35, %v1097_v28 }
 0x48e   :  { %v7106_v30 = vcombine.high %v1090_v36, %v1098_v37  ;;  %v7105_v46 = vcombine.low %v1090_v36, %v1098_v37 }
 0x48f   :  { %2050 = vmatpush1.bf16.msra.mxu1 %v7099_v41  ;;  %2103 = vmatpush1.bf16.msra.mxu0 %v7101_v42  ;;  %v1105_v41 = vld [vmem:[#allocation11 + $0x130] sm:$0xff] }
 0x490   :  { %2051 = vmatprep.subr.bf16.mxu1 %v7116_v43  ;;  %2104 = vmatprep.subr.bf16.mxu0 %v7118_v44  ;;  %v1113_v42 = vld [vmem:[#allocation11 + $0x170] sm:$0xff]  ;;  %v1106_v43 = vld [vmem:[#allocation11 + $0x138] sm:$0xff] }
 0x491   :  { %v1114_v44 = vld [vmem:[#allocation11 + $0x178] sm:$0xff]  ;;  %v7120_v48 = vcombine.high %v1105_v41, %v1113_v42  ;;  %v7119_v54 = vcombine.low %v1105_v41, %v1113_v42 }
 0x492   :  { %1984 = vmatmul.mubr.bf16.gmra.mrb[44].mxu1 %v9500_v47  ;;  %2037 = vmatmul.mubr.bf16.gmra.mrb[28].mxu0 %v9500_v47  ;;  %v7122_v49 = vcombine.high %v1106_v43, %v1114_v44  ;;  %v7121_v55 = vcombine.low %v1106_v43, %v1114_v44 }
 0x493   :  { %2052 = vmatpush1.bf16.msra.mxu1 %v7115_v50  ;;  %2105 = vmatpush1.bf16.msra.mxu0 %v7117_v51  ;;  %v1121_v50 = vld [vmem:[#allocation11 + $0x1b0] sm:$0xff] }
 0x494   :  { %2053 = vmatprep.subr.bf16.mxu1 %v7132_v52  ;;  %2106 = vmatprep.subr.bf16.mxu0 %v7134_v53  ;;  %v1129_v51 = vld [vmem:[#allocation11 + $0x1f0] sm:$0xff]  ;;  %v1122_v52 = vld [vmem:[#allocation11 + $0x1b8] sm:$0xff] }
 0x495   :  { %2079 = vmatprep.mubr.bf16.mxu1 %v9202_v0  ;;  %2132 = vmatprep.mubr.bf16.mxu0 %v9202_v0  ;;  %v1130_v53 = vld [vmem:[#allocation11 + $0x1f8] sm:$0xff]  ;;  %v7136_v56 = vcombine.high %v1121_v50, %v1129_v51  ;;  %v7135_v62 = vcombine.low %v1121_v50, %v1129_v51 }
 0x496   :  { %v7138_v57 = vcombine.high %v1122_v52, %v1130_v53  ;;  %v7137_v63 = vcombine.low %v1122_v52, %v1130_v53 }
 0x497   :  { %2054 = vmatpush1.bf16.msra.mxu1 %v7131_v58  ;;  %2107 = vmatpush1.bf16.msra.mxu0 %v7133_v59  ;;  %v1137_v58 = vld [vmem:[#allocation11 + $0x230] sm:$0xff] }
 0x498   :  { %2055 = vmatprep.subr.bf16.mxu1 %v7148_v60  ;;  %2108 = vmatprep.subr.bf16.mxu0 %v7150_v61  ;;  %v1145_v59 = vld [vmem:[#allocation11 + $0x270] sm:$0xff]  ;;  %v1138_v60 = vld [vmem:[#allocation11 + $0x238] sm:$0xff] }
 0x499   :  { %v1146_v61 = vld [vmem:[#allocation11 + $0x278] sm:$0xff]  ;;  %v7152_v1 = vcombine.high %v1137_v58, %v1145_v59  ;;  %v7151_v7 = vcombine.low %v1137_v58, %v1145_v59 }
 0x49a   :  { %v7154_v2 = vcombine.high %v1138_v60, %v1146_v61  ;;  %v7153_v8 = vcombine.low %v1138_v60, %v1146_v61 }
 0x49b   :  { %2056 = vmatpush1.bf16.msra.mxu1 %v7147_v3  ;;  %2109 = vmatpush1.bf16.msra.mxu0 %v7149_v4  ;;  %v1153_v3 = vld [vmem:[#allocation11 + $0x2b0] sm:$0xff] }
 0x49c   :  { %2057 = vmatprep.subr.bf16.mxu1 %v7164_v5  ;;  %2110 = vmatprep.subr.bf16.mxu0 %v7166_v6  ;;  %v1161_v4 = vld [vmem:[#allocation11 + $0x2f0] sm:$0xff]  ;;  %v1154_v5 = vld [vmem:[#allocation11 + $0x2b8] sm:$0xff] }
 0x49d   :  { %v1162_v6 = vld [vmem:[#allocation11 + $0x2f8] sm:$0xff]  ;;  %v7168_v9 = vcombine.high %v1153_v3, %v1161_v4  ;;  %v7167_v15 = vcombine.low %v1153_v3, %v1161_v4 }
 0x49e   :  { %v7170_v10 = vcombine.high %v1154_v5, %v1162_v6  ;;  %v7169_v16 = vcombine.low %v1154_v5, %v1162_v6 }
 0x49f   :  { %2058 = vmatpush1.bf16.msra.mxu1 %v7163_v11  ;;  %2111 = vmatpush1.bf16.msra.mxu0 %v7165_v12  ;;  %v1169_v11 = vld [vmem:[#allocation11 + $0x330] sm:$0xff] }
 0x4a0   :  { %2059 = vmatprep.subr.bf16.mxu1 %v7180_v13  ;;  %2112 = vmatprep.subr.bf16.mxu0 %v7182_v14  ;;  %v1177_v12 = vld [vmem:[#allocation11 + $0x370] sm:$0xff]  ;;  %v1170_v13 = vld [vmem:[#allocation11 + $0x338] sm:$0xff] }
 0x4a1   :  { %v1178_v14 = vld [vmem:[#allocation11 + $0x378] sm:$0xff]  ;;  %v7184_v17 = vcombine.high %v1169_v11, %v1177_v12  ;;  %v7183_v23 = vcombine.low %v1169_v11, %v1177_v12 }
 0x4a2   :  { %v7186_v18 = vcombine.high %v1170_v13, %v1178_v14  ;;  %v7185_v24 = vcombine.low %v1170_v13, %v1178_v14 }
 0x4a3   :  { %2060 = vmatpush1.bf16.msra.mxu1 %v7179_v20  ;;  %2113 = vmatpush1.bf16.msra.mxu0 %v7181_v19  ;;  %v1185_v20 = vld [vmem:[#allocation11 + $0x3b0] sm:$0xff] }
 0x4a4   :  { %2061 = vmatprep.subr.bf16.mxu1 %v7196_v21  ;;  %2114 = vmatprep.subr.bf16.mxu0 %v7198_v29  ;;  %v1193_v19 = vld [vmem:[#allocation11 + $0x3f0] sm:$0xff]  ;;  %v1186_v21 = vld [vmem:[#allocation11 + $0x3b8] sm:$0xff] }
 0x4a5   :  { %v1194_v29 = vld [vmem:[#allocation11 + $0x3f8] sm:$0xff]  ;;  %v7200_v25 = vcombine.high %v1185_v20, %v1193_v19 }
 0x4a6   :  { %v7202_v26 = vcombine.high %v1186_v21, %v1194_v29 }
 0x4a7   :  { %2062 = vmatpush1.bf16.msra.mxu1 %v7195_v34  ;;  %2115 = vmatpush1.bf16.msra.mxu0 %v7197_v31  ;;  %v7199_v34 = vcombine.low %v1185_v20, %v1193_v19  ;;  %v7201_v31 = vcombine.low %v1186_v21, %v1194_v29 }
 0x4a8   :  { %2153 = vmatprep.subr.bf16.mxu1 %v7088_v32  ;;  %2206 = vmatprep.subr.bf16.mxu0 %v7090_v33 }
 0x4aa   :  { %2080 = vmatmul.mubr.bf16.vlgmr.msra.gmra.mrb[48].mxu1 %v9493_v22  ;;  %2133 = vmatmul.mubr.bf16.vlgmr.msra.gmra.mrb[32].mxu0 %v9493_v22 }
 0x4ab   :  { %2154 = vmatpush1.bf16.msra.mxu1 %v7087_v38  ;;  %2207 = vmatpush1.bf16.msra.mxu0 %v7089_v39 }
 0x4ac   :  { %2155 = vmatprep.subr.bf16.mxu1 %v7104_v40  ;;  %2208 = vmatprep.subr.bf16.mxu0 %v7106_v30 }
 0x4ad   :  { %2089 = vmatprep.mubr.bf16.mxu1 %v9202_v0  ;;  %2142 = vmatprep.mubr.bf16.mxu0 %v9202_v0 }
 0x4af   :  { %2156 = vmatpush1.bf16.msra.mxu1 %v7103_v45  ;;  %2209 = vmatpush1.bf16.msra.mxu0 %v7105_v46 }
 0x4b0   :  { %2157 = vmatprep.subr.bf16.mxu1 %v7120_v48  ;;  %2210 = vmatprep.subr.bf16.mxu0 %v7122_v49 }
 0x4b2   :  { %2090 = vmatmul.mubr.bf16.gmra.mrb[52].mxu1 %v9500_v47  ;;  %2143 = vmatmul.mubr.bf16.gmra.mrb[36].mxu0 %v9500_v47 }
 0x4b3   :  { %2158 = vmatpush1.bf16.msra.mxu1 %v7119_v54  ;;  %2211 = vmatpush1.bf16.msra.mxu0 %v7121_v55 }
 0x4b4   :  { %2159 = vmatprep.subr.bf16.mxu1 %v7136_v56  ;;  %2212 = vmatprep.subr.bf16.mxu0 %v7138_v57 }
 0x4b5   :  { %2185 = vmatprep.mubr.bf16.mxu1 %v9202_v0  ;;  %2238 = vmatprep.mubr.bf16.mxu0 %v9202_v0 }
 0x4b7   :  { %2160 = vmatpush1.bf16.msra.mxu1 %v7135_v62  ;;  %2213 = vmatpush1.bf16.msra.mxu0 %v7137_v63 }
 0x4b8   :  { %2161 = vmatprep.subr.bf16.mxu1 %v7152_v1  ;;  %2214 = vmatprep.subr.bf16.mxu0 %v7154_v2 }
 0x4bb   :  { %2162 = vmatpush1.bf16.msra.mxu1 %v7151_v7  ;;  %2215 = vmatpush1.bf16.msra.mxu0 %v7153_v8 }
 0x4bc   :  { %2163 = vmatprep.subr.bf16.mxu1 %v7168_v9  ;;  %2216 = vmatprep.subr.bf16.mxu0 %v7170_v10 }
 0x4bf   :  { %2164 = vmatpush1.bf16.msra.mxu1 %v7167_v15  ;;  %2217 = vmatpush1.bf16.msra.mxu0 %v7169_v16 }
 0x4c0   :  { %2165 = vmatprep.subr.bf16.mxu1 %v7184_v17  ;;  %2218 = vmatprep.subr.bf16.mxu0 %v7186_v18 }
 0x4c3   :  { %2166 = vmatpush1.bf16.msra.mxu1 %v7183_v23  ;;  %2219 = vmatpush1.bf16.msra.mxu0 %v7185_v24 }
 0x4c4   :  { %2167 = vmatprep.subr.bf16.mxu1 %v7200_v25  ;;  %2220 = vmatprep.subr.bf16.mxu0 %v7202_v26 }
 0x4c7   :  { %2168 = vmatpush1.bf16.msra.mxu1 %v7199_v34  ;;  %2221 = vmatpush1.bf16.msra.mxu0 %v7201_v31  ;;  %v8095_v31 = vld [vmem:[#allocation13] ss:$16 sps:$4 sm:$0xff]  }
 0x4ca   :  { %2186 = vmatmul.mubr.bf16.vlgmr.msra.gmra.mrb[56].mxu1 %v9493_v22  ;;  %2239 = vmatmul.mubr.bf16.vlgmr.msra.gmra.mrb[40].mxu0 %v9493_v22  ;;  %v8097_v22 = vld [vmem:[#allocation13 + $0x4] ss:$16 sps:$4 sm:$0xff]  }
 0x4cb   :  { %2195 = vmatprep.mubr.bf16.mxu1 %v9202_v0  ;;  %2248 = vmatprep.mubr.bf16.mxu0 %v9202_v0  ;;  %v8100_v0 = vld [vmem:[#allocation13 + $0xc] ss:$16 sps:$4 sm:$0xff]  }
 0x4d2   :  { %2196 = vmatmul.mubr.bf16.gmra.mrb[60].mxu1 %v9500_v47  ;;  %2249 = vmatmul.mubr.bf16.gmra.mrb[44].mxu0 %v9500_v47 }
 0x4d3   :  { %2515 = vmatprep.mubr.bf16.mxu1 %v8097_v22  ;;  %2612 = vmatprep.mubr.bf16.mxu0 %v8100_v0  ;;  %v8103_v0 = vld [vmem:[#allocation13 + $0x20] ss:$16 sps:$4 sm:$0xff]  }
 0x53d   :  { %v1869_v32 = vpop.f32.mrb[32].mxu1  ;;  %v1922_v33 = vpop.f32.mrb[16].mxu0 }
 0x53e   :  { %v1871_v35 = vpop.f32.mrb[33].mxu1  ;;  %v9528_v28 = vpop.f32.mrb[17].mxu0 }
 0x53f   :  { %v1873_v36 = vpop.f32.mrb[34].mxu1  ;;  %v1926_v37 = vpop.f32.mrb[18].mxu0 }
 0x540   :  { %v2291_v38 = vpack.c.bf16 %v1873_v36, %v1869_v32  ;;  %v2295_v39 = vpack.c.bf16 %v1926_v37, %v1922_v33  ;;  %v1875_v40 = vpop.f32.mrb[35].mxu1  ;;  %v1928_v30 = vpop.f32.mrb[19].mxu0  ;;  %v8101_v32 = vld [vmem:[#allocation13 + $0x24] ss:$16 sps:$4 sm:$0xff]  }
 0x541   :  { %v2293_v41 = vpack.c.bf16 %v1875_v40, %v1871_v35  ;;  %v2297_v42 = vpack.c.bf16 %v1928_v30, %v9528_v28 }
 0x545   :  { %v1879_v43 = vpop.f32.mrb[36].mxu1  ;;  %v1932_v44 = vpop.f32.mrb[20].mxu0 }
 0x546   :  { %v1881_v47 = vpop.f32.mrb[37].mxu1  ;;  %v1934_v45 = vpop.f32.mrb[21].mxu0 }
 0x547   :  { %v1883_v46 = vpop.f32.mrb[38].mxu1  ;;  %v1936_v48 = vpop.f32.mrb[22].mxu0 }
 0x548   :  { %v2292_v49 = vpack.c.bf16 %v1883_v46, %v1879_v43  ;;  %v2296_v50 = vpack.c.bf16 %v1936_v48, %v1932_v44  ;;  %v1885_v51 = vpop.f32.mrb[39].mxu1  ;;  %v1938_v52 = vpop.f32.mrb[23].mxu0  ;;  %v8107_v43 = vld [vmem:[#allocation13 + $0x44] ss:$16 sps:$4 sm:$0xff]   ;;  %v8109_v44 = vld [vmem:[#allocation13 + $0x40] ss:$16 sps:$4 sm:$0xff]  }
 0x549   :  { %v2294_v53 = vpack.c.bf16 %v1885_v51, %v1881_v47  ;;  %v2298_v54 = vpack.c.bf16 %v1938_v52, %v1934_v45  ;;  %v8113_v47 = vld [vmem:[#allocation13 + $0x64] ss:$16 sps:$4 sm:$0xff]   ;;  %v8115_v45 = vld [vmem:[#allocation13 + $0x60] ss:$16 sps:$4 sm:$0xff]  }
 0x54a   :  { %v8119_v46 = vld [vmem:[#allocation13 + $0x84] ss:$16 sps:$4 sm:$0xff]  }
 0x55d   :  { %v1975_v55 = vpop.f32.mrb[40].mxu1  ;;  %v2028_v56 = vpop.f32.mrb[24].mxu0 }
 0x55e   :  { %v1977_v57 = vpop.f32.mrb[41].mxu1  ;;  %v2030_v58 = vpop.f32.mrb[25].mxu0 }
 0x55f   :  { %v1979_v59 = vpop.f32.mrb[42].mxu1  ;;  %v2032_v60 = vpop.f32.mrb[26].mxu0 }
 0x560   :  { %v2299_v61 = vpack.c.bf16 %v1979_v59, %v1975_v55  ;;  %v2303_v62 = vpack.c.bf16 %v2032_v60, %v2028_v56  ;;  %v1981_v63 = vpop.f32.mrb[43].mxu1  ;;  %v2034_v1 = vpop.f32.mrb[27].mxu0  ;;  %v8121_v60 = vld [vmem:[#allocation13 + $0x80] ss:$16 sps:$4 sm:$0xff]  }
 0x561   :  { %v2301_v2 = vpack.c.bf16 %v1981_v63, %v1977_v57  ;;  %v2305_v3 = vpack.c.bf16 %v2034_v1, %v2030_v58 }
 0x562   :  { %7783 = vmatprep.subr.bf16.mxu1 %v2299_v61  ;;  %v8125_v61 = vld [vmem:[#allocation13 + $0xa4] ss:$16 sps:$4 sm:$0xff]  }
 0x563   :  { %7784 = vmatpush3.bf16.msra.mxu1 %v2291_v38 }
 0x565   :  { %v1985_v4 = vpop.f32.mrb[44].mxu1  ;;  %v2038_v5 = vpop.f32.mrb[28].mxu0 }
 0x566   :  { %v1987_v6 = vpop.f32.mrb[45].mxu1  ;;  %v2040_v7 = vpop.f32.mrb[29].mxu0 }
 0x567   :  { %v1989_v8 = vpop.f32.mrb[46].mxu1  ;;  %v2042_v9 = vpop.f32.mrb[30].mxu0 }
 0x568   :  { %v2300_v10 = vpack.c.bf16 %v1989_v8, %v1985_v4  ;;  %v2304_v11 = vpack.c.bf16 %v2042_v9, %v2038_v5  ;;  %v1991_v12 = vpop.f32.mrb[47].mxu1  ;;  %v2044_v13 = vpop.f32.mrb[31].mxu0 }
 0x569   :  { %v2302_v14 = vpack.c.bf16 %v1991_v12, %v1987_v6  ;;  %v2306_v15 = vpack.c.bf16 %v2044_v13, %v2040_v7  ;;  %v8131_v12 = vld [vmem:[#allocation13 + $0xc4] ss:$16 sps:$4 sm:$0xff]   ;;  %v8133_v13 = vld [vmem:[#allocation13 + $0xc0] ss:$16 sps:$4 sm:$0xff]  }
 0x56a   :  { %7785 = vmatprep.subr.bf16.mxu1 %v2300_v10 }
 0x56b   :  { %7786 = vmatpush3.bf16.msra.mxu1 %v2292_v49 }
 0x56c   :  { %7787 = vmatprep.subr.bf16.mxu1 %v2301_v2 }
 0x56f   :  { %7788 = vmatpush3.bf16.msra.mxu1 %v2293_v41 }
 0x570   :  { %7789 = vmatprep.subr.bf16.mxu1 %v2302_v14  ;;  %v8137_v14 = vld [vmem:[#allocation13 + $0xe4] ss:$16 sps:$4 sm:$0xff]  }
 0x573   :  { %7790 = vmatpush3.bf16.msra.mxu1 %v2294_v53 }
 0x574   :  { %7791 = vmatprep.subr.bf16.mxu1 %v2303_v62 }
 0x577   :  { %7792 = vmatpush3.bf16.msra.mxu1 %v2295_v39 }
 0x578   :  { %7793 = vmatprep.subr.bf16.mxu1 %v2304_v11  ;;  %v8127_v11 = vld [vmem:[#allocation13 + $0xa0] ss:$16 sps:$4 sm:$0xff]  }
 0x57b   :  { %7794 = vmatpush3.bf16.msra.mxu1 %v2296_v50 }
 0x57c   :  { %7795 = vmatprep.subr.bf16.mxu1 %v2305_v3 }
 0x57d   :  { %v2081_v16 = vpop.f32.mrb[48].mxu1  ;;  %v9531_v17 = vpop.f32.mrb[32].mxu0 }
 0x57e   :  { %v9533_v18 = vpop.f32.mrb[49].mxu1  ;;  %v9535_v20 = vpop.f32.mrb[33].mxu0 }
 0x57f   :  { %v2085_v19 = vpop.f32.mrb[50].mxu1  ;;  %v9537_v21 = vpop.f32.mrb[34].mxu0  ;;  %7796 = vmatpush3.bf16.msra.mxu1 %v2297_v42 }
 0x580   :  { %v2307_v29 = vpack.c.bf16 %v2085_v19, %v2081_v16  ;;  %v2311_v23 = vpack.c.bf16 %v9537_v21, %v9531_v17  ;;  %v9541_v24 = vpop.f32.mrb[51].mxu1  ;;  %v9543_v25 = vpop.f32.mrb[35].mxu0  ;;  %7797 = vmatprep.subr.bf16.mxu1 %v2306_v15  ;;  %v8139_v15 = vld [vmem:[#allocation13 + $0xe0] ss:$16 sps:$4 sm:$0xff]   ;;  %v8098_v16 = vld [vmem:[#allocation13 + $0x8] ss:$16 sps:$4 sm:$0xff]  }
 0x581   :  { %v2309_v26 = vpack.c.bf16 %v9541_v24, %v9533_v18  ;;  %v2313_v34 = vpack.c.bf16 %v9543_v25, %v9535_v20  ;;  %v8104_v17 = vld [vmem:[#allocation13 + $0x2c] ss:$16 sps:$4 sm:$0xff]   ;;  %v8106_v18 = vld [vmem:[#allocation13 + $0x28] ss:$16 sps:$4 sm:$0xff]  }
 0x582   :  { %v8110_v19 = vld [vmem:[#allocation13 + $0x4c] ss:$16 sps:$4 sm:$0xff]   ;;  %v8112_v21 = vld [vmem:[#allocation13 + $0x48] ss:$16 sps:$4 sm:$0xff]  }
 0x583   :  { %7798 = vmatpush3.bf16.msra.mxu1 %v2298_v54  ;;  %v8118_v20 = vld [vmem:[#allocation13 + $0x68] ss:$16 sps:$4 sm:$0xff]   ;;  %v8128_v25 = vld [vmem:[#allocation13 + $0xac] ss:$16 sps:$4 sm:$0xff]  }
 0x584   :  { %v8124_v24 = vld [vmem:[#allocation13 + $0x88] ss:$16 sps:$4 sm:$0xff]  }
 0x585   :  { %v2091_v33 = vpop.f32.mrb[52].mxu1  ;;  %v9549_v35 = vpop.f32.mrb[36].mxu0 }
 0x586   :  { %v9551_v28 = vpop.f32.mrb[53].mxu1  ;;  %v9553_v36 = vpop.f32.mrb[37].mxu0  ;;  %2516 = vmatmul.mubr.bf16.vlgmr.msra.gmra.mrb[64].mxu1 %v8095_v31  ;;  %v8136_v31 = vld [vmem:[#allocation13 + $0xc8] ss:$16 sps:$4 sm:$0xff]  }
 0x587   :  { %v2095_v37 = vpop.f32.mrb[54].mxu1  ;;  %v9555_v38 = vpop.f32.mrb[38].mxu0  ;;  %2523 = vmatprep.mubr.bf16.mxu1 %v8101_v32  ;;  %v8140_v32 = vld [vmem:[#allocation13 + $0xec] ss:$16 sps:$4 sm:$0xff]  }
 0x588   :  { %v2308_v39 = vpack.c.bf16 %v2095_v37, %v2091_v33  ;;  %v2312_v40 = vpack.c.bf16 %v9555_v38, %v9549_v35  ;;  %v2097_v30 = vpop.f32.mrb[55].mxu1  ;;  %v9559_v22 = vpop.f32.mrb[39].mxu0  ;;  %v8142_v33 = vld [vmem:[#allocation13 + $0xe8] ss:$16 sps:$4 sm:$0xff]  }
 0x589   :  { %v2310_v41 = vpack.c.bf16 %v2097_v30, %v9551_v28  ;;  %v2314_v42 = vpack.c.bf16 %v9559_v22, %v9553_v36 }
 0x58e   :  { %2524 = vmatmul.mubr.bf16.gmra.mrb[68].mxu1 %v8103_v0 }
 0x58f   :  { %2531 = vmatprep.mubr.bf16.mxu1 %v8107_v43 }
 0x596   :  { %2532 = vmatmul.mubr.bf16.gmra.mrb[72].mxu1 %v8109_v44 }
 0x597   :  { %2539 = vmatprep.mubr.bf16.mxu1 %v8113_v47 }
 0x59d   :  { %v2187_v48 = vpop.f32.mrb[56].mxu1  ;;  %v2240_v49 = vpop.f32.mrb[40].mxu0 }
 0x59e   :  { %v2189_v50 = vpop.f32.mrb[57].mxu1  ;;  %v2242_v51 = vpop.f32.mrb[41].mxu0  ;;  %2540 = vmatmul.mubr.bf16.gmra.mrb[76].mxu1 %v8115_v45 }
 0x59f   :  { %v2191_v52 = vpop.f32.mrb[58].mxu1  ;;  %v2244_v53 = vpop.f32.mrb[42].mxu0  ;;  %2547 = vmatprep.mubr.bf16.mxu1 %v8119_v46 }
 0x5a0   :  { %v2315_v54 = vpack.c.bf16 %v2191_v52, %v2187_v48  ;;  %v2319_v55 = vpack.c.bf16 %v2244_v53, %v2240_v49  ;;  %v2193_v56 = vpop.f32.mrb[59].mxu1  ;;  %v2246_v57 = vpop.f32.mrb[43].mxu0 }
 0x5a1   :  { %v2317_v58 = vpack.c.bf16 %v2193_v56, %v2189_v50  ;;  %v2321_v59 = vpack.c.bf16 %v2246_v57, %v2242_v51 }
 0x5a2   :  { %7847 = vmatprep.subr.bf16.mxu0 %v2315_v54 }
 0x5a3   :  { %7848 = vmatpush3.bf16.msra.mxu0 %v2307_v29  ;;  %v8116_v29 = vld [vmem:[#allocation13 + $0x6c] ss:$16 sps:$4 sm:$0xff]  }
 0x5a5   :  { %v2197_v62 = vpop.f32.mrb[60].mxu1  ;;  %v2250_v63 = vpop.f32.mrb[44].mxu0 }
 0x5a6   :  { %v2199_v1 = vpop.f32.mrb[61].mxu1  ;;  %v2252_v2 = vpop.f32.mrb[45].mxu0  ;;  %2548 = vmatmul.mubr.bf16.gmra.mrb[80].mxu1 %v8121_v60 }
 0x5a7   :  { %v2201_v3 = vpop.f32.mrb[62].mxu1  ;;  %v2254_v4 = vpop.f32.mrb[46].mxu0  ;;  %2555 = vmatprep.mubr.bf16.mxu1 %v8125_v61 }
 0x5a8   :  { %v2316_v5 = vpack.c.bf16 %v2201_v3, %v2197_v62  ;;  %v2320_v6 = vpack.c.bf16 %v2254_v4, %v2250_v63  ;;  %v2203_v7 = vpop.f32.mrb[63].mxu1  ;;  %v2256_v8 = vpop.f32.mrb[47].mxu0 }
 0x5a9   :  { %v2318_v9 = vpack.c.bf16 %v2203_v7, %v2199_v1  ;;  %v2322_v10 = vpack.c.bf16 %v2256_v8, %v2252_v2 }
 0x5aa   :  { %7849 = vmatprep.subr.bf16.mxu0 %v2316_v5 }
 0x5ab   :  { %7850 = vmatpush3.bf16.msra.mxu0 %v2308_v39 }
 0x5ac   :  { %7851 = vmatprep.subr.bf16.mxu0 %v2317_v58 }
 0x5ae   :  { %2556 = vmatmul.mubr.bf16.gmra.mrb[84].mxu1 %v8127_v11 }
 0x5af   :  { %7852 = vmatpush3.bf16.msra.mxu0 %v2309_v26  ;;  %2563 = vmatprep.mubr.bf16.mxu1 %v8131_v12  ;;  %v8130_v26 = vld [vmem:[#allocation13 + $0xa8] ss:$16 sps:$4 sm:$0xff]  }
 0x5b0   :  { %7853 = vmatprep.subr.bf16.mxu0 %v2318_v9 }
 0x5b3   :  { %7854 = vmatpush3.bf16.msra.mxu0 %v2310_v41 }
 0x5b4   :  { %7855 = vmatprep.subr.bf16.mxu0 %v2319_v55 }
 0x5b6   :  { %2564 = vmatmul.mubr.bf16.gmra.mrb[88].mxu1 %v8133_v13 }
 0x5b7   :  { %7856 = vmatpush3.bf16.msra.mxu0 %v2311_v23  ;;  %2571 = vmatprep.mubr.bf16.mxu1 %v8137_v14  ;;  %v8122_v23 = vld [vmem:[#allocation13 + $0x8c] ss:$16 sps:$4 sm:$0xff]  }
 0x5b8   :  { %7857 = vmatprep.subr.bf16.mxu0 %v2320_v6 }
 0x5bb   :  { %7858 = vmatpush3.bf16.msra.mxu0 %v2312_v40 }
 0x5bc   :  { %7859 = vmatprep.subr.bf16.mxu0 %v2321_v59 }
 0x5be   :  { %2572 = vmatmul.mubr.bf16.gmra.mrb[92].mxu1 %v8139_v15 }
 0x5bf   :  { %7860 = vmatpush3.bf16.msra.mxu0 %v2313_v34  ;;  %2758 = vmatprep.mubr.f32.mxu1 %v9203_v27  ;;  %v8134_v34 = vld [vmem:[#allocation13 + $0xcc] ss:$16 sps:$4 sm:$0xff]  }
 0x5c0   :  { %7861 = vmatprep.subr.bf16.mxu0 %v2322_v10 }
 0x5c3   :  { %7862 = vmatpush3.bf16.msra.mxu0 %v2314_v42 }
 0x5c6   :  { %2613 = vmatmul.mubr.bf16.vlgmr.msra.gmra.mrb[48].mxu0 %v8098_v16 }
 0x5c7   :  { %2620 = vmatprep.mubr.bf16.mxu0 %v8104_v17 }
 0x5ce   :  { %2621 = vmatmul.mubr.bf16.gmra.mrb[52].mxu0 %v8106_v18 }
 0x5cf   :  { %2628 = vmatprep.mubr.bf16.mxu0 %v8110_v19 }
 0x5d6   :  { %2629 = vmatmul.mubr.bf16.gmra.mrb[56].mxu0 %v8112_v21 }
 0x5d7   :  { %2636 = vmatprep.mubr.bf16.mxu0 %v8116_v29 }
 0x5de   :  { %2637 = vmatmul.mubr.bf16.gmra.mrb[60].mxu0 %v8118_v20 }
 0x5df   :  { %2644 = vmatprep.mubr.bf16.mxu0 %v8122_v23 }
 0x5e6   :  { %2645 = vmatmul.mubr.bf16.gmra.mrb[64].mxu0 %v8124_v24 }
 0x5e7   :  { %2652 = vmatprep.mubr.bf16.mxu0 %v8128_v25 }
 0x5ee   :  { %2653 = vmatmul.mubr.bf16.gmra.mrb[68].mxu0 %v8130_v26 }
 0x5ef   :  { %2660 = vmatprep.mubr.bf16.mxu0 %v8134_v34 }
 0x5f6   :  { %2661 = vmatmul.mubr.bf16.gmra.mrb[72].mxu0 %v8136_v31 }
 0x5f7   :  { %2668 = vmatprep.mubr.bf16.mxu0 %v8140_v32 }
 0x5fe   :  { %2669 = vmatmul.mubr.bf16.gmra.mrb[76].mxu0 %v8142_v33 }
 0x659   :  { %v7799_v35 = vpop.f32.mrb[64].mxu1 }
 0x65a   :  { %v7800_v28 = vpop.f32.mrb[65].mxu1 }
 0x65b   :  { %v7801_v36 = vadd.f32 %v7800_v28, %v7799_v35  ;;  %v7802_v37 = vpop.f32.mrb[66].mxu1 }
 0x65c   :  { %v7803_v38 = vpop.f32.mrb[67].mxu1 }
 0x65d   :  { %v7804_v39 = vadd.f32 %v7803_v38, %v7802_v37 }
 0x661   :  { %v7805_v40 = vpop.f32.mrb[68].mxu1 }
 0x662   :  { %v7806_v30 = vpop.f32.mrb[69].mxu1 }
 0x663   :  { %v7807_v22 = vadd.f32 %v7806_v30, %v7805_v40  ;;  %v7808_v41 = vpop.f32.mrb[70].mxu1 }
 0x664   :  { %v7809_v42 = vpop.f32.mrb[71].mxu1 }
 0x665   :  { %v7810_v0 = vadd.f32 %v7809_v42, %v7808_v41 }
 0x669   :  { %v7811_v43 = vpop.f32.mrb[72].mxu1 }
 0x66a   :  { %v7812_v44 = vpop.f32.mrb[73].mxu1 }
 0x66b   :  { %v9580_v47 = vadd.f32 %v7812_v44, %v7811_v43  ;;  %v7814_v45 = vpop.f32.mrb[74].mxu1 }
 0x66c   :  { %v7815_v46 = vpop.f32.mrb[75].mxu1 }
 0x66d   :  { %v9582_v48 = vadd.f32 %v7815_v46, %v7814_v45 }
 0x671   :  { %v7817_v49 = vpop.f32.mrb[76].mxu1 }
 0x672   :  { %v7818_v50 = vpop.f32.mrb[77].mxu1 }
 0x673   :  { %v9584_v51 = vadd.f32 %v7818_v50, %v7817_v49  ;;  %v7820_v52 = vpop.f32.mrb[78].mxu1 }
 0x674   :  { %v7821_v53 = vpop.f32.mrb[79].mxu1 }
 0x675   :  { %v9586_v54 = vadd.f32 %v7821_v53, %v7820_v52 }
 0x679   :  { %v7823_v55 = vpop.f32.mrb[80].mxu1 }
 0x67a   :  { %v7824_v56 = vpop.f32.mrb[81].mxu1 }
 0x67b   :  { %v9588_v57 = vadd.f32 %v7824_v56, %v7823_v55  ;;  %v7826_v58 = vpop.f32.mrb[82].mxu1 }
 0x67c   :  { %v7827_v59 = vpop.f32.mrb[83].mxu1 }
 0x67d   :  { %v9590_v60 = vadd.f32 %v7827_v59, %v7826_v58 }
 0x681   :  { %v7829_v61 = vpop.f32.mrb[84].mxu1 }
 0x682   :  { %v7830_v62 = vpop.f32.mrb[85].mxu1 }
 0x683   :  { %v9592_v63 = vadd.f32 %v7830_v62, %v7829_v61  ;;  %v7832_v1 = vpop.f32.mrb[86].mxu1 }
 0x684   :  { %v7833_v2 = vpop.f32.mrb[87].mxu1 }
 0x685   :  { %v9594_v3 = vadd.f32 %v7833_v2, %v7832_v1 }
 0x689   :  { %v7835_v4 = vpop.f32.mrb[88].mxu1 }
 0x68a   :  { %v7836_v5 = vpop.f32.mrb[89].mxu1 }
 0x68b   :  { %v9596_v6 = vadd.f32 %v7836_v5, %v7835_v4  ;;  %v7838_v7 = vpop.f32.mrb[90].mxu1 }
 0x68c   :  { %v7839_v8 = vpop.f32.mrb[91].mxu1 }
 0x68d   :  { %v9598_v9 = vadd.f32 %v7839_v8, %v7838_v7 }
 0x691   :  { %v7841_v10 = vpop.f32.mrb[92].mxu1 }
 0x692   :  { %v7842_v11 = vpop.f32.mrb[93].mxu1 }
 0x693   :  { %v9600_v12 = vadd.f32 %v7842_v11, %v7841_v10  ;;  %v7844_v13 = vpop.f32.mrb[94].mxu1 }
 0x694   :  { %v7845_v14 = vpop.f32.mrb[95].mxu1 }
 0x695   :  { %v9602_v15 = vadd.f32 %v7845_v14, %v7844_v13 }
 0x699   :  { %v7863_v16 = vpop.f32.mrb[48].mxu0 }
 0x69a   :  { %v7864_v17 = vpop.f32.mrb[49].mxu0 }
 0x69b   :  { %v7865_v18 = vadd.f32 %v7864_v17, %v7863_v16  ;;  %v7866_v19 = vpop.f32.mrb[50].mxu0 }
 0x69c   :  { %v7867_v21 = vpop.f32.mrb[51].mxu0 }
 0x69d   :  { %v9604_v29 = vadd.f32 %v7865_v18, %v7801_v36  ;;  %v7868_v20 = vadd.f32 %v7867_v21, %v7866_v19 }
 0x69f   :  { %v9606_v23 = vadd.f32 %v7868_v20, %v7804_v39  ;;  %v2678_v25 = vmul.f32 %v9604_v29, %v9604_v29 }
 0x6a1   :  { %v7869_v24 = vpop.f32.mrb[52].mxu0  ;;  %v2679_v26 = vmul.f32 %v9606_v23, %v9606_v23  ;;  %v7989_v35 = vpack.c.bf16 %v9606_v23, %v9604_v29 }
 0x6a2   :  { %v7870_v34 = vpop.f32.mrb[53].mxu0 }
 0x6a3   :  { %v7871_v31 = vadd.f32 %v7870_v34, %v7869_v24  ;;  %v7872_v32 = vpop.f32.mrb[54].mxu0  ;;  %v7987_v33 = vpack.c.bf16 %v2679_v26, %v2678_v25 }
 0x6a4   :  { %v7873_v28 = vpop.f32.mrb[55].mxu0 }
 0x6a5   :  { %v9614_v36 = vadd.f32 %v7871_v31, %v7807_v22  ;;  %v7874_v37 = vadd.f32 %v7873_v28, %v7872_v32  ;;  %7988 = vmatprep.subr.bf16.mxu1 %v7987_v33 }
 0x6a6   :  { %7990 = vmatpush1.bf16.msra.mxu1 %v7989_v35 }
 0x6a7   :  { %v9616_v38 = vadd.f32 %v7874_v37, %v7810_v0  ;;  %v2680_v40 = vmul.f32 %v9614_v36, %v9614_v36 }
 0x6a9   :  { %v7875_v39 = vpop.f32.mrb[56].mxu0  ;;  %v2681_v30 = vmul.f32 %v9616_v38, %v9616_v38  ;;  %v7993_v22 = vpack.c.bf16 %v9616_v38, %v9614_v36 }
 0x6aa   :  { %v7876_v41 = vpop.f32.mrb[57].mxu0 }
 0x6ab   :  { %v7877_v42 = vadd.f32 %v7876_v41, %v7875_v39  ;;  %v7878_v43 = vpop.f32.mrb[58].mxu0  ;;  %v7991_v44 = vpack.c.bf16 %v2681_v30, %v2680_v40 }
 0x6ac   :  { %v7879_v45 = vpop.f32.mrb[59].mxu0 }
 0x6ad   :  { %v9625_v46 = vadd.f32 %v7877_v42, %v9580_v47  ;;  %v7880_v0 = vadd.f32 %v7879_v45, %v7878_v43  ;;  %7992 = vmatprep.subr.bf16.mxu1 %v7991_v44 }
 0x6ae   :  { %7994 = vmatpush1.bf16.msra.mxu1 %v7993_v22 }
 0x6af   :  { %v9628_v49 = vadd.f32 %v7880_v0, %v9582_v48  ;;  %v2682_v52 = vmul.f32 %v9625_v46, %v9625_v46 }
 0x6b1   :  { %v7881_v50 = vpop.f32.mrb[60].mxu0  ;;  %v2683_v53 = vmul.f32 %v9628_v49, %v9628_v49  ;;  %v7997_v47 = vpack.c.bf16 %v9628_v49, %v9625_v46 }
 0x6b2   :  { %v7882_v55 = vpop.f32.mrb[61].mxu0 }
 0x6b3   :  { %v7883_v56 = vadd.f32 %v7882_v55, %v7881_v50  ;;  %v7884_v58 = vpop.f32.mrb[62].mxu0  ;;  %v7995_v59 = vpack.c.bf16 %v2683_v53, %v2682_v52 }
 0x6b4   :  { %v7885_v61 = vpop.f32.mrb[63].mxu0 }
 0x6b5   :  { %v9637_v62 = vadd.f32 %v7883_v56, %v9584_v51  ;;  %v7886_v48 = vadd.f32 %v7885_v61, %v7884_v58  ;;  %7996 = vmatprep.subr.bf16.mxu1 %v7995_v59 }
 0x6b6   :  { %7998 = vmatpush1.bf16.msra.mxu1 %v7997_v47 }
 0x6b7   :  { %v9640_v1 = vadd.f32 %v7886_v48, %v9586_v54  ;;  %v2684_v4 = vmul.f32 %v9637_v62, %v9637_v62 }
 0x6b9   :  { %v7887_v2 = vpop.f32.mrb[64].mxu0  ;;  %v2685_v5 = vmul.f32 %v9640_v1, %v9640_v1  ;;  %v8001_v51 = vpack.c.bf16 %v9640_v1, %v9637_v62 }
 0x6ba   :  { %v7888_v7 = vpop.f32.mrb[65].mxu0 }
 0x6bb   :  { %v7889_v8 = vadd.f32 %v7888_v7, %v7887_v2  ;;  %v7890_v10 = vpop.f32.mrb[66].mxu0  ;;  %v7999_v11 = vpack.c.bf16 %v2685_v5, %v2684_v4 }
 0x6bc   :  { %v7891_v13 = vpop.f32.mrb[67].mxu0 }
 0x6bd   :  { %v9649_v14 = vadd.f32 %v7889_v8, %v9588_v57  ;;  %v7892_v54 = vadd.f32 %v7891_v13, %v7890_v10  ;;  %8000 = vmatprep.subr.bf16.mxu1 %v7999_v11  ;;  %v2771_v13 = vld [vmem:[%s9870_s9 + $0x8] sm:$0xff] }
 0x6be   :  { %8002 = vmatpush1.bf16.msra.mxu1 %v8001_v51  ;;  %v2770_v51 = vld [vmem:[%s9870_s9] sm:$0xff] }
 0x6bf   :  { %v9652_v16 = vadd.f32 %v7892_v54, %v9590_v60  ;;  %v2686_v18 = vmul.f32 %v9649_v14, %v9649_v14  ;;  %v2772_v54 = vld [vmem:[%s9870_s9 + $0x10] sm:$0xff] }
 0x6c1   :  { %v7893_v17 = vpop.f32.mrb[68].mxu0  ;;  %v2687_v19 = vmul.f32 %v9652_v16, %v9652_v16  ;;  %v8005_v57 = vpack.c.bf16 %v9652_v16, %v9649_v14 }
 0x6c2   :  { %v7894_v21 = vpop.f32.mrb[69].mxu0 }
 0x6c3   :  { %v7895_v20 = vadd.f32 %v7894_v21, %v7893_v17  ;;  %v7896_v24 = vpop.f32.mrb[70].mxu0  ;;  %v8003_v25 = vpack.c.bf16 %v2687_v19, %v2686_v18  ;;  %v2773_v17 = vld [vmem:[%s9870_s9 + $0x18] sm:$0xff]  ;;  %v2774_v18 = vld [vmem:[%s9870_s9 + $0x20] sm:$0xff]  ;;  %v2775_v19 = vld [vmem:[%s9870_s9 + $0x28] sm:$0xff] }
 0x6c4   :  { %v7897_v26 = vpop.f32.mrb[71].mxu0  ;;  %v2776_v21 = vld [vmem:[%s9870_s9 + $0x30] sm:$0xff] }
 0x6c5   :  { %v9661_v34 = vadd.f32 %v7895_v20, %v9592_v63  ;;  %v7898_v60 = vadd.f32 %v7897_v26, %v7896_v24  ;;  %8004 = vmatprep.subr.bf16.mxu1 %v8003_v25  ;;  %v2777_v20 = vld [vmem:[%s9870_s9 + $0x38] sm:$0xff]  ;;  %v2778_v24 = vld [vmem:[%s9870_s9 + $0x40] sm:$0xff]  ;;  %v2779_v25 = vld [vmem:[%s9870_s9 + $0x48] sm:$0xff] }
 0x6c6   :  { %8006 = vmatpush1.bf16.msra.mxu1 %v8005_v57  ;;  %v2780_v57 = vld [vmem:[%s9870_s9 + $0x50] sm:$0xff]  ;;  %v2781_v26 = vld [vmem:[%s9870_s9 + $0x58] sm:$0xff] }
 0x6c7   :  { %v9664_v31 = vadd.f32 %v7898_v60, %v9594_v3  ;;  %v2688_v33 = vmul.f32 %v9661_v34, %v9661_v34  ;;  %v2782_v60 = vld [vmem:[%s9870_s9 + $0x60] sm:$0xff] }
 0x6c9   :  { %v7899_v32 = vpop.f32.mrb[72].mxu0  ;;  %v2689_v35 = vmul.f32 %v9664_v31, %v9664_v31  ;;  %v8009_v63 = vpack.c.bf16 %v9664_v31, %v9661_v34 }
 0x6ca   :  { %v7900_v28 = vpop.f32.mrb[73].mxu0 }
 0x6cb   :  { %v7901_v37 = vadd.f32 %v7900_v28, %v7899_v32  ;;  %v7902_v39 = vpop.f32.mrb[74].mxu0  ;;  %v8007_v40 = vpack.c.bf16 %v2689_v35, %v2688_v33  ;;  %v2783_v32 = vld [vmem:[%s9870_s9 + $0x68] sm:$0xff]  ;;  %v2784_v33 = vld [vmem:[%s9870_s9 + $0x70] sm:$0xff]  ;;  %v2785_v35 = vld [vmem:[%s9870_s9 + $0x78] sm:$0xff]  ;;  %s9204_s9 = smov [#allocation19]  }
 0x6cc   :  { %v7903_v30 = vpop.f32.mrb[75].mxu0  ;;  %s7009_s19 = sshll.u32 %s9204_s9, 4  ;;  %s7010_s19 = int_to_ptr.vmem [resolvable:$true] %s7009_s19 }
 0x6cd   :  { %v9673_v41 = vadd.f32 %v7901_v37, %v9596_v6  ;;  %v7904_v3 = vadd.f32 %v7903_v30, %v7902_v39  ;;  %8008 = vmatprep.subr.bf16.mxu1 %v8007_v40  ;;  %s9151_s7 = scalar_lea.vmem %s7010_s19, 512  ;;  %p9156_p11 = scmp.lt.s32.totalorder %s7010_s19, %s7010_s19 }
 0x6ce   :  { %8010 = vmatpush1.bf16.msra.mxu1 %v8009_v63  ;;  %p9152_p10 = scmp.ne.s32.totalorder %s7010_s19, %s9151_s7  ;;  %p9157_p12 = scmp.lt.s32.totalorder %s9151_s7, %s9151_s7 }
 0x6cf   :  { %v9676_v42 = vadd.f32 %v7904_v3, %v9598_v9  ;;  %v2690_v44 = vmul.f32 %v9673_v41, %v9673_v41 }
 0x6d0   :  { %p9158_p13 = por %p9157_p12, %p9156_p11 }
 0x6d1   :  { %v7905_v43 = vpop.f32.mrb[76].mxu0  ;;  %v2691_v22 = vmul.f32 %v9676_v42, %v9676_v42  ;;  %v8013_v6 = vpack.c.bf16 %v9676_v42, %v9673_v41 }
 0x6d2   :  { %v7906_v45 = vpop.f32.mrb[77].mxu0  ;;  %p9159_p0 = pnand %p9158_p13, %p9152_p10 }
 0x6d3   :  { %v7907_v0 = vadd.f32 %v7906_v45, %v7905_v43  ;;  %v7908_v50 = vpop.f32.mrb[78].mxu0  ;;  %v8011_v52 = vpack.c.bf16 %v2691_v22, %v2690_v44 }
 0x6d4   :  { %v7909_v53 = vpop.f32.mrb[79].mxu0 }
 0x6d5   :  { %v9685_v55 = vadd.f32 %v7907_v0, %v9600_v12  ;;  %v7910_v9 = vadd.f32 %v7909_v53, %v7908_v50  ;;  %8012 = vmatprep.subr.bf16.mxu1 %v8011_v52  ;;  %v2677_v12 = vld [vmem:[#allocation14] sm:$0x3] }
 0x6d6   :  { %8014 = vmatpush1.bf16.msra.mxu1 %v8013_v6 }
 0x6d7   :  { %v9688_v56 = vadd.f32 %v7910_v9, %v9602_v15  ;;  %v2692_v58 = vmul.f32 %v9685_v55, %v9685_v55 }
 0x6d9   :  { %v2693_v59 = vmul.f32 %v9688_v56, %v9688_v56  ;;  %v8017_v61 = vpack.c.bf16 %v9688_v56, %v9685_v55 }
 0x6db   :  { %v8015_v47 = vpack.c.bf16 %v2693_v59, %v2692_v58 }
 0x6dd   :  { %8016 = vmatprep.subr.bf16.mxu1 %v8015_v47 }
 0x6de   :  { %8018 = vmatpush1.bf16.msra.mxu1 %v8017_v61 }
 0x6e1   :  { %2759 = vmatmul.mubr.f32.vlgmr.msra.gmra.mrb[30].mxu1 %v2677_v12 }
 0x6e2   :  { %2906 = vmatprep.mubr.f32.mxu1 %v9203_v27 }
 0x7b4   :  { %v2760_v48 = vpop.f32.mrb[30].mxu1 }
 0x7b5   :  { %v2765_v2 = vmul.f32 %v2760_v48, %v2760_v48  ;;  %v2762_v15 = vpop.f32.mrb[31].mxu1  ;;  %v2786_v8 = vsub.f32 0.0, %v2760_v48 }
 0x7b7   :  { %v2766_v4 = vsub.f32 %v2762_v15, %v2765_v2 }
 0x7b9   :  { %v2767_v5 = vmax.f32 %v2766_v4, 0.0 }
 0x7bb   :  { %v2768_v7 = vadd.f32 1e-08, %v2767_v5 }
 0x7bd   :  { %8921 = vrsqrt.f32 %v2768_v7 }
 0x7c7   :  { %v8922_v10 = vpop.eup %8921 }
 0x7c8   :  { %v2787_v11 = vmul.f32 %v8922_v10, %v2786_v8 }
 0x7ca   :  { %7235 = vmatprep.subr.msk.mxu1 %vm957_vm1, %v2787_v11 }
 0x7cb   :  { %7236 = vmatpush1.msk.msra.mxu1 %vm957_vm1, %v8922_v10 }
 0x7cc   :  { %7237 = vmatmul.mubr.msk.f32.vlgmr.msra.gmra.mrb[96].mxu1 %vm944_vm2, %v2770_v51 }
 0x7cd   :  { %2912 = vmatprep.mubr.f32.mxu1 %v9203_v27 }
 0x7d0   :  { %7238 = vmatmul.mubr.msk.f32.gmra.mrb[98].mxu1 %vm944_vm2, %v2771_v13 }
 0x7d1   :  { %2918 = vmatprep.mubr.f32.mxu1 %v9203_v27 }
 0x7d4   :  { %7239 = vmatmul.mubr.msk.f32.gmra.mrb[100].mxu1 %vm944_vm2, %v2772_v54 }
 0x7d5   :  { %2924 = vmatprep.mubr.f32.mxu1 %v9203_v27 }
 0x7d8   :  { %7240 = vmatmul.mubr.msk.f32.gmra.mrb[102].mxu1 %vm944_vm2, %v2773_v17 }
 0x7d9   :  { %2930 = vmatprep.mubr.f32.mxu1 %v9203_v27 }
 0x7dc   :  { %7241 = vmatmul.mubr.msk.f32.gmra.mrb[104].mxu1 %vm944_vm2, %v2774_v18 }
 0x7dd   :  { %2936 = vmatprep.mubr.f32.mxu1 %v9203_v27 }
 0x7e0   :  { %7242 = vmatmul.mubr.msk.f32.gmra.mrb[106].mxu1 %vm944_vm2, %v2775_v19 }
 0x7e1   :  { %2942 = vmatprep.mubr.f32.mxu1 %v9203_v27 }
 0x7e4   :  { %7243 = vmatmul.mubr.msk.f32.gmra.mrb[108].mxu1 %vm944_vm2, %v2776_v21 }
 0x7e5   :  { %2948 = vmatprep.mubr.f32.mxu1 %v9203_v27 }
 0x7e8   :  { %7244 = vmatmul.mubr.msk.f32.gmra.mrb[110].mxu1 %vm944_vm2, %v2777_v20 }
 0x7e9   :  { %2954 = vmatprep.mubr.f32.mxu1 %v9203_v27 }
 0x7ec   :  { %7245 = vmatmul.mubr.msk.f32.gmra.mrb[112].mxu1 %vm944_vm2, %v2778_v24 }
 0x7ed   :  { %2960 = vmatprep.mubr.f32.mxu1 %v9203_v27 }
 0x7f0   :  { %7246 = vmatmul.mubr.msk.f32.gmra.mrb[114].mxu1 %vm944_vm2, %v2779_v25 }
 0x7f1   :  { %2966 = vmatprep.mubr.f32.mxu1 %v9203_v27 }
 0x7f4   :  { %7247 = vmatmul.mubr.msk.f32.gmra.mrb[116].mxu1 %vm944_vm2, %v2780_v57 }
 0x7f5   :  { %2972 = vmatprep.mubr.f32.mxu1 %v9203_v27 }
 0x7f8   :  { %7248 = vmatmul.mubr.msk.f32.gmra.mrb[118].mxu1 %vm944_vm2, %v2781_v26 }
 0x7f9   :  { %2978 = vmatprep.mubr.f32.mxu1 %v9203_v27 }
 0x7fc   :  { %7249 = vmatmul.mubr.msk.f32.gmra.mrb[120].mxu1 %vm944_vm2, %v2782_v60 }
 0x7fd   :  { %2984 = vmatprep.mubr.f32.mxu1 %v9203_v27 }
 0x800   :  { %7250 = vmatmul.mubr.msk.f32.gmra.mrb[122].mxu1 %vm944_vm2, %v2783_v32 }
 0x801   :  { %2990 = vmatprep.mubr.f32.mxu1 %v9203_v27 }
 0x804   :  { %7251 = vmatmul.mubr.msk.f32.gmra.mrb[124].mxu1 %vm944_vm2, %v2784_v33 }
 0x805   :  { %2996 = vmatprep.mubr.f32.mxu1 %v9203_v27 }
 0x808   :  { %7252 = vmatmul.mubr.msk.f32.gmra.mrb[126].mxu1 %vm944_vm2, %v2785_v35 }
 0x89f   :  { %v2908_v28 = vpop.f32.mrb[96].mxu1 }
 0x8a0   :  { %v3003_v37 = vmul.f32 %v2908_v28, %v9604_v29  ;;  %v2910_v39 = vpop.f32.mrb[97].mxu1 }
 0x8a2   :  { %v3019_v40 = vadd.f32 %v3003_v37, %v2910_v39 }
 0x8a3   :  { %v2914_v63 = vpop.f32.mrb[98].mxu1 }
 0x8a4   :  { %v3004_v30 = vmul.f32 %v2914_v63, %v9606_v23  ;;  %v2916_v3 = vpop.f32.mrb[99].mxu1  ;;  %v3035_v43 = vmax.f32 %v3019_v40, 0.0 }
 0x8a6   :  { %v3020_v44 = vadd.f32 %v3004_v30, %v2916_v3  ;;  %3067 = vxpose.xlu0.b32.start [1/16] %v3035_v43, 128 }
 0x8a7   :  { %v2920_v22 = vpop.f32.mrb[100].mxu1 }
 0x8a8   :  { %v3036_v27 = vmax.f32 %v3020_v44, 0.0  ;;  %v3005_v45 = vmul.f32 %v2920_v22, %v9614_v36  ;;  %v2922_v0 = vpop.f32.mrb[101].mxu1 }
 0x8aa   :  { %v3021_v50 = vadd.f32 %v3005_v45, %v2922_v0  ;;  %3068 = vxpose.xlu0.b32.cont [2/16] %v3036_v27, 128 }
 0x8ab   :  { %v2926_v52 = vpop.f32.mrb[102].mxu1 }
 0x8ac   :  { %v3037_v6 = vmax.f32 %v3021_v50, 0.0  ;;  %v3006_v29 = vmul.f32 %v2926_v52, %v9616_v38  ;;  %v2928_v53 = vpop.f32.mrb[103].mxu1 }
 0x8ae   :  { %v3022_v9 = vadd.f32 %v3006_v29, %v2928_v53  ;;  %3069 = vxpose.xlu0.b32.cont [3/16] %v3037_v6, 128 }
 0x8af   :  { %v2932_v58 = vpop.f32.mrb[104].mxu1 }
 0x8b0   :  { %v3038_v23 = vmax.f32 %v3022_v9, 0.0  ;;  %v3007_v59 = vmul.f32 %v2932_v58, %v9625_v46  ;;  %v2934_v47 = vpop.f32.mrb[105].mxu1  ;;  %v8147_v58 = vld [vmem:[#allocation17] ss:$16 sps:$4 sm:$0xff]  }
 0x8b2   :  { %v3023_v61 = vadd.f32 %v3007_v59, %v2934_v47  ;;  %3070 = vxpose.xlu0.b32.cont [4/16] %v3038_v23, 128  ;;  %v8149_v23 = vld [vmem:[#allocation17 + $0x4] ss:$16 sps:$4 sm:$0xff]  }
 0x8b3   :  { %v2938_v12 = vpop.f32.mrb[106].mxu1  ;;  %v8155_v59 = vld [vmem:[#allocation17 + $0x24] ss:$16 sps:$4 sm:$0xff]   ;;  %6340 = vmatprep.subr.bf16.mxu1 %v8149_v23  ;;  %v8168_v23 = vld [vmem:[#allocation17 + $0x68] ss:$16 sps:$4 sm:$0xff]  }
 0x8b4   :  { %v3039_v48 = vmax.f32 %v3023_v61, 0.0  ;;  %v3008_v36 = vmul.f32 %v2938_v12, %v9628_v49  ;;  %v2940_v2 = vpop.f32.mrb[107].mxu1  ;;  %6341 = vmatpush1.bf16.msra.mxu1 %v8147_v58  ;;  %v8161_v47 = vld [vmem:[#allocation17 + $0x44] ss:$16 sps:$4 sm:$0xff]   ;;  %v8159_v61 = vld [vmem:[#allocation17 + $0x40] ss:$16 sps:$4 sm:$0xff]  }
 0x8b5   :  { %6342 = vmatprep.subr.bf16.mxu1 %v8155_v59  ;;  %v8167_v12 = vld [vmem:[#allocation17 + $0x64] ss:$16 sps:$4 sm:$0xff]   ;;  %v8170_v58 = vld [vmem:[#allocation17 + $0x6c] ss:$16 sps:$4 sm:$0xff]  }
 0x8b6   :  { %v3024_v15 = vadd.f32 %v3008_v36, %v2940_v2  ;;  %3071 = vxpose.xlu0.b32.cont [5/16] %v3039_v48, 128  ;;  %v8173_v48 = vld [vmem:[#allocation17 + $0x84] ss:$16 sps:$4 sm:$0xff]   ;;  %v8171_v36 = vld [vmem:[#allocation17 + $0x80] ss:$16 sps:$4 sm:$0xff]   ;;  %v8176_v59 = vld [vmem:[#allocation17 + $0x8c] ss:$16 sps:$4 sm:$0xff]  }
 0x8b7   :  { %v2944_v4 = vpop.f32.mrb[108].mxu1  ;;  %v8179_v2 = vld [vmem:[#allocation17 + $0xa4] ss:$16 sps:$4 sm:$0xff]  }
 0x8b8   :  { %v3040_v5 = vmax.f32 %v3024_v15, 0.0  ;;  %v3009_v38 = vmul.f32 %v2944_v4, %v9637_v62  ;;  %v2946_v7 = vpop.f32.mrb[109].mxu1  ;;  %v8177_v15 = vld [vmem:[#allocation17 + $0xa0] ss:$16 sps:$4 sm:$0xff]   ;;  %v8185_v4 = vld [vmem:[#allocation17 + $0xc4] ss:$16 sps:$4 sm:$0xff]  }
 0x8ba   :  { %v3025_v8 = vadd.f32 %v3009_v38, %v2946_v7  ;;  %3072 = vxpose.xlu0.b32.cont [6/16] %v3040_v5, 128  ;;  %v8183_v5 = vld [vmem:[#allocation17 + $0xc0] ss:$16 sps:$4 sm:$0xff]   ;;  %v8191_v38 = vld [vmem:[#allocation17 + $0xe4] ss:$16 sps:$4 sm:$0xff]  }
 0x8bb   :  { %v2950_v10 = vpop.f32.mrb[110].mxu1  ;;  %v8189_v7 = vld [vmem:[#allocation17 + $0xe0] ss:$16 sps:$4 sm:$0xff]  }
 0x8bc   :  { %v3041_v11 = vmax.f32 %v3025_v8, 0.0  ;;  %v3010_v46 = vmul.f32 %v2950_v10, %v9640_v1  ;;  %v2952_v51 = vpop.f32.mrb[111].mxu1  ;;  %v8197_v8 = vld [vmem:[#allocation17 + $0x104] ss:$16 sps:$4 sm:$0xff]   ;;  %v8195_v10 = vld [vmem:[#allocation17 + $0x100] ss:$16 sps:$4 sm:$0xff]  }
 0x8be   :  { %v3026_v13 = vadd.f32 %v3010_v46, %v2952_v51  ;;  %3073 = vxpose.xlu0.b32.cont [7/16] %v3041_v11, 128  ;;  %v8203_v11 = vld [vmem:[#allocation17 + $0x124] ss:$16 sps:$4 sm:$0xff]   ;;  %v8201_v46 = vld [vmem:[#allocation17 + $0x120] ss:$16 sps:$4 sm:$0xff]  }
 0x8bf   :  { %v2956_v54 = vpop.f32.mrb[112].mxu1  ;;  %v8209_v51 = vld [vmem:[#allocation17 + $0x144] ss:$16 sps:$4 sm:$0xff]  }
 0x8c0   :  { %v3042_v17 = vmax.f32 %v3026_v13, 0.0  ;;  %v3011_v49 = vmul.f32 %v2956_v54, %v9649_v14  ;;  %v2958_v18 = vpop.f32.mrb[113].mxu1  ;;  %v8207_v13 = vld [vmem:[#allocation17 + $0x140] ss:$16 sps:$4 sm:$0xff]   ;;  %v8215_v54 = vld [vmem:[#allocation17 + $0x164] ss:$16 sps:$4 sm:$0xff]  }
 0x8c2   :  { %v3027_v19 = vadd.f32 %v3011_v49, %v2958_v18  ;;  %3074 = vxpose.xlu0.b32.cont [8/16] %v3042_v17, 128  ;;  %v8213_v17 = vld [vmem:[#allocation17 + $0x160] ss:$16 sps:$4 sm:$0xff]   ;;  %v8222_v49 = vld [vmem:[#allocation17 + $0x184] ss:$16 sps:$4 sm:$0xff]  }
 0x8c3   :  { %v2962_v21 = vpop.f32.mrb[114].mxu1  ;;  %v8220_v18 = vld [vmem:[#allocation17 + $0x180] ss:$16 sps:$4 sm:$0xff]  }
 0x8c4   :  { %v3043_v20 = vmax.f32 %v3027_v19, 0.0  ;;  %v3012_v62 = vmul.f32 %v2962_v21, %v9652_v16  ;;  %v2964_v24 = vpop.f32.mrb[115].mxu1  ;;  %v8229_v19 = vld [vmem:[#allocation17 + $0x1a4] ss:$16 sps:$4 sm:$0xff]   ;;  %v8227_v21 = vld [vmem:[#allocation17 + $0x1a0] ss:$16 sps:$4 sm:$0xff]  }
 0x8c6   :  { %v3028_v25 = vadd.f32 %v3012_v62, %v2964_v24  ;;  %3075 = vxpose.xlu0.b32.cont [9/16] %v3043_v20, 128  ;;  %v8236_v20 = vld [vmem:[#allocation17 + $0x1c4] ss:$16 sps:$4 sm:$0xff]   ;;  %v8234_v24 = vld [vmem:[#allocation17 + $0x1c0] ss:$16 sps:$4 sm:$0xff]  }
 0x8c7   :  { %v2968_v57 = vpop.f32.mrb[116].mxu1 }
 0x8c8   :  { %v3044_v26 = vmax.f32 %v3028_v25, 0.0  ;;  %v3013_v1 = vmul.f32 %v2968_v57, %v9661_v34  ;;  %v2970_v60 = vpop.f32.mrb[117].mxu1 }
 0x8ca   :  { %v3029_v32 = vadd.f32 %v3013_v1, %v2970_v60  ;;  %3076 = vxpose.xlu0.b32.cont [10/16] %v3044_v26, 128 }
 0x8cb   :  { %v2974_v33 = vpop.f32.mrb[118].mxu1 }
 0x8cc   :  { %v3045_v35 = vmax.f32 %v3029_v32, 0.0  ;;  %v3014_v14 = vmul.f32 %v2974_v33, %v9664_v31  ;;  %v2976_v28 = vpop.f32.mrb[119].mxu1 }
 0x8ce   :  { %v3030_v37 = vadd.f32 %v3014_v14, %v2976_v28  ;;  %3077 = vxpose.xlu0.b32.cont [11/16] %v3045_v35, 128 }
 0x8cf   :  { %v2980_v39 = vpop.f32.mrb[120].mxu1 }
 0x8d0   :  { %v3046_v40 = vmax.f32 %v3030_v37, 0.0  ;;  %v3015_v16 = vmul.f32 %v2980_v39, %v9673_v41  ;;  %v2982_v63 = vpop.f32.mrb[121].mxu1 }
 0x8d2   :  { %v3031_v30 = vadd.f32 %v3015_v16, %v2982_v63  ;;  %3078 = vxpose.xlu0.b32.cont [12/16] %v3046_v40, 128 }
 0x8d3   :  { %v2986_v3 = vpop.f32.mrb[122].mxu1 }
 0x8d4   :  { %v3047_v43 = vmax.f32 %v3031_v30, 0.0  ;;  %v3016_v34 = vmul.f32 %v2986_v3, %v9676_v42  ;;  %v2988_v44 = vpop.f32.mrb[123].mxu1  ;;  %v8143_v42 = vld [vmem:[#allocation16] sm:$0xff]  }
 0x8d5   :  { %7963 = vmatprep.mubr.bf16.mxu0 %v8143_v42  ;;  %v8219_v42 = vld [vmem:[#allocation16 + $0x20] sm:$0xff]  }
 0x8d6   :  { %v3032_v22 = vadd.f32 %v3016_v34, %v2988_v44  ;;  %3079 = vxpose.xlu0.b32.cont [13/16] %v3047_v43, 128 }
 0x8d7   :  { %v2992_v27 = vpop.f32.mrb[124].mxu1 }
 0x8d8   :  { %v3048_v45 = vmax.f32 %v3032_v22, 0.0  ;;  %v3017_v31 = vmul.f32 %v2992_v27, %v9685_v55  ;;  %v2994_v0 = vpop.f32.mrb[125].mxu1  ;;  %v8153_v55 = vld [vmem:[#allocation17 + $0x20] ss:$16 sps:$4 sm:$0xff]  }
 0x8d9   :  { %6343 = vmatpush1.bf16.msra.mxu1 %v8153_v55  ;;  %v8226_v55 = vld [vmem:[#allocation16 + $0x28] sm:$0xff]  }
 0x8da   :  { %v3033_v50 = vadd.f32 %v3017_v31, %v2994_v0  ;;  %3080 = vxpose.xlu0.b32.cont [14/16] %v3048_v45, 128  ;;  %6344 = vmatprep.subr.bf16.mxu1 %v8161_v47  ;;  %v8152_v31 = vld [vmem:[#allocation17 + $0xc] ss:$16 sps:$4 sm:$0xff]   ;;  %v8174_v47 = vld [vmem:[#allocation17 + $0x88] ss:$16 sps:$4 sm:$0xff]  }
 0x8db   :  { %v2998_v52 = vpop.f32.mrb[126].mxu1  ;;  %v8144_v0 = vld [vmem:[#allocation16 + $0x8] sm:$0xff]  }
 0x8dc   :  { %v3049_v6 = vmax.f32 %v3033_v50, 0.0  ;;  %v3018_v41 = vmul.f32 %v2998_v52, %v9688_v56  ;;  %v3000_v29 = vpop.f32.mrb[127].mxu1  ;;  %v8165_v56 = vld [vmem:[#allocation17 + $0x60] ss:$16 sps:$4 sm:$0xff]   ;;  %v8150_v52 = vld [vmem:[#allocation17 + $0x8] ss:$16 sps:$4 sm:$0xff]  }
 0x8dd   :  { %6345 = vmatpush1.bf16.msra.mxu1 %v8159_v61  ;;  %v8145_v50 = vld [vmem:[#allocation16 + $0x10] sm:$0xff]  }
 0x8de   :  { %v3034_v53 = vadd.f32 %v3018_v41, %v3000_v29  ;;  %3081 = vxpose.xlu0.b32.cont [15/16] %v3049_v6, 128  ;;  %6346 = vmatprep.subr.bf16.mxu1 %v8167_v12  ;;  %v8158_v6 = vld [vmem:[#allocation17 + $0x2c] ss:$16 sps:$4 sm:$0xff]   ;;  %v8156_v41 = vld [vmem:[#allocation17 + $0x28] ss:$16 sps:$4 sm:$0xff]   ;;  %v8233_v61 = vld [vmem:[#allocation16 + $0x30] sm:$0xff]  }
 0x8df   :  { %v8164_v29 = vld [vmem:[#allocation17 + $0x4c] ss:$16 sps:$4 sm:$0xff]  }
 0x8e0   :  { %v3050_v9 = vmax.f32 %v3034_v53, 0.0  ;;  %v8146_v53 = vld [vmem:[#allocation16 + $0x18] sm:$0xff]  }
 0x8e1   :  { %6347 = vmatpush1.bf16.msra.mxu1 %v8165_v56  ;;  %v8182_v12 = vld [vmem:[#allocation17 + $0xac] ss:$16 sps:$4 sm:$0xff]   ;;  %v8180_v56 = vld [vmem:[#allocation17 + $0xa8] ss:$16 sps:$4 sm:$0xff]  }
 0x8e2   :  { %3082 = vxpose.xlu0.b32.end [16/16] %v3050_v9, 128  ;;  %6348 = vmatprep.subr.bf16.mxu1 %v8173_v48  ;;  %v8162_v9 = vld [vmem:[#allocation17 + $0x48] ss:$16 sps:$4 sm:$0xff]   ;;  %v8188_v48 = vld [vmem:[#allocation17 + $0xcc] ss:$16 sps:$4 sm:$0xff]  }
 0x8e5   :  { %6349 = vmatpush1.bf16.msra.mxu1 %v8171_v36  ;;  %v8240_v36 = vld [vmem:[#allocation16 + $0x38] sm:$0xff]  }
 0x8e6   :  { %6350 = vmatprep.subr.bf16.mxu1 %v8179_v2  ;;  %v8186_v2 = vld [vmem:[#allocation17 + $0xc8] ss:$16 sps:$4 sm:$0xff]  }
 0x8e9   :  { %6351 = vmatpush1.bf16.msra.mxu1 %v8177_v15  ;;  %v8194_v15 = vld [vmem:[#allocation17 + $0xec] ss:$16 sps:$4 sm:$0xff]  }
 0x8ea   :  { %6352 = vmatprep.subr.bf16.mxu1 %v8185_v4  ;;  %v8192_v4 = vld [vmem:[#allocation17 + $0xe8] ss:$16 sps:$4 sm:$0xff]  }
 0x8ed   :  { %6353 = vmatpush1.bf16.msra.mxu1 %v8183_v5  ;;  %v8200_v5 = vld [vmem:[#allocation17 + $0x10c] ss:$16 sps:$4 sm:$0xff]  }
 0x8ee   :  { %6354 = vmatprep.subr.bf16.mxu1 %v8191_v38  ;;  %v8198_v38 = vld [vmem:[#allocation17 + $0x108] ss:$16 sps:$4 sm:$0xff]  }
 0x8f1   :  { %6355 = vmatpush1.bf16.msra.mxu1 %v8189_v7  ;;  %v8206_v7 = vld [vmem:[#allocation17 + $0x12c] ss:$16 sps:$4 sm:$0xff]  }
 0x8f2   :  { %6356 = vmatprep.subr.bf16.mxu1 %v8197_v8  ;;  %v8204_v8 = vld [vmem:[#allocation17 + $0x128] ss:$16 sps:$4 sm:$0xff]  }
 0x8f5   :  { %6357 = vmatpush1.bf16.msra.mxu1 %v8195_v10  ;;  %v8212_v10 = vld [vmem:[#allocation17 + $0x14c] ss:$16 sps:$4 sm:$0xff]  }
 0x8f6   :  { %6358 = vmatprep.subr.bf16.mxu1 %v8203_v11  ;;  %v8210_v11 = vld [vmem:[#allocation17 + $0x148] ss:$16 sps:$4 sm:$0xff]  }
 0x8f9   :  { %6359 = vmatpush1.bf16.msra.mxu1 %v8201_v46  ;;  %v8218_v46 = vld [vmem:[#allocation17 + $0x16c] ss:$16 sps:$4 sm:$0xff]  }
 0x8fa   :  { %6360 = vmatprep.subr.bf16.mxu1 %v8209_v51  ;;  %v8216_v51 = vld [vmem:[#allocation17 + $0x168] ss:$16 sps:$4 sm:$0xff]  }
 0x8fd   :  { %6361 = vmatpush1.bf16.msra.mxu1 %v8207_v13  ;;  %v8225_v13 = vld [vmem:[#allocation17 + $0x18c] ss:$16 sps:$4 sm:$0xff]  }
 0x8fe   :  { %6362 = vmatprep.subr.bf16.mxu1 %v8215_v54  ;;  %v8223_v54 = vld [vmem:[#allocation17 + $0x188] ss:$16 sps:$4 sm:$0xff]  }
 0x901   :  { %6363 = vmatpush1.bf16.msra.mxu1 %v8213_v17  ;;  %v8232_v17 = vld [vmem:[#allocation17 + $0x1ac] ss:$16 sps:$4 sm:$0xff]  }
 0x902   :  { %6364 = vmatprep.subr.bf16.mxu1 %v8222_v49  ;;  %v8230_v49 = vld [vmem:[#allocation17 + $0x1a8] ss:$16 sps:$4 sm:$0xff]  }
 0x905   :  { %6365 = vmatpush1.bf16.msra.mxu1 %v8220_v18  ;;  %v8239_v18 = vld [vmem:[#allocation17 + $0x1cc] ss:$16 sps:$4 sm:$0xff]  }
 0x906   :  { %6366 = vmatprep.subr.bf16.mxu1 %v8229_v19  ;;  %v8237_v19 = vld [vmem:[#allocation17 + $0x1c8] ss:$16 sps:$4 sm:$0xff]  }
 0x909   :  { %6367 = vmatpush1.bf16.msra.mxu1 %v8227_v21  ;;  %v8243_v21 = vld [vmem:[#allocation17 + $0x1e4] ss:$16 sps:$4 sm:$0xff]  }
 0x90a   :  { %6368 = vmatprep.subr.bf16.mxu1 %v8236_v20  ;;  %v8246_v20 = vld [vmem:[#allocation17 + $0x1ec] ss:$16 sps:$4 sm:$0xff]  }
 0x90d   :  { %6369 = vmatpush1.bf16.msra.mxu1 %v8234_v24  ;;  %v8244_v24 = vld [vmem:[#allocation17 + $0x1e8] ss:$16 sps:$4 sm:$0xff]  }
 0x90e   :  { %6370 = vmatprep.subr.bf16.mxu1 %v8243_v21  ;;  %v8324_v21 = vld [vmem:[#allocation17 + $0x38c] ss:$16 sps:$4 sm:$0xff]  }
 0x926   :  { %v3083_v62 = vpop.trf.xlu0 }
 0x92a   :  { %v3084_v25 = vpop.trf.xlu0 }
 0x92b   :  { %v3099_v57 = vpack.c.bf16 %v3084_v25, %v3083_v62  ;;  %v8241_v62 = vld [vmem:[#allocation17 + $0x1e0] ss:$16 sps:$4 sm:$0xff]   ;;  %v8249_v25 = vld [vmem:[#allocation17 + $0x204] ss:$16 sps:$4 sm:$0xff]  }
 0x92c   :  { %6371 = vmatpush1.bf16.msra.mxu1 %v8241_v62  ;;  %v8322_v62 = vld [vmem:[#allocation17 + $0x388] ss:$16 sps:$4 sm:$0xff]  }
 0x92d   :  { %7947 = vmatprep.subr.bf16.mxu0 %v3099_v57  ;;  %6381 = vmatprep.subr.bf16.mxu1 %v8249_v25  ;;  %v8330_v25 = vld [vmem:[#allocation17 + $0x3ac] ss:$16 sps:$4 sm:$0xff]  }
 0x92e   :  { %v3085_v26 = vpop.trf.xlu0  ;;  %7948 = vmatpush3.bf16.msra.mxu0 %v3099_v57  ;;  %v8252_v57 = vld [vmem:[#allocation17 + $0x20c] ss:$16 sps:$4 sm:$0xff]  }
 0x932   :  { %v3086_v1 = vpop.trf.xlu0 }
 0x933   :  { %v3100_v60 = vpack.c.bf16 %v3086_v1, %v3085_v26 }
 0x935   :  { %7949 = vmatprep.subr.bf16.mxu0 %v3100_v60 }
 0x936   :  { %v3087_v32 = vpop.trf.xlu0  ;;  %7950 = vmatpush3.bf16.msra.mxu0 %v3100_v60 }
 0x93a   :  { %v3088_v33 = vpop.trf.xlu0 }
 0x93b   :  { %v3101_v35 = vpack.c.bf16 %v3088_v33, %v3087_v32 }
 0x93d   :  { %7951 = vmatprep.subr.bf16.mxu0 %v3101_v35 }
 0x93e   :  { %v3089_v14 = vpop.trf.xlu0  ;;  %7952 = vmatpush3.bf16.msra.mxu0 %v3101_v35  ;;  %v8247_v35 = vld [vmem:[#allocation17 + $0x200] ss:$16 sps:$4 sm:$0xff]  }
 0x942   :  { %v3090_v28 = vpop.trf.xlu0 }
 0x943   :  { %v3102_v37 = vpack.c.bf16 %v3090_v28, %v3089_v14  ;;  %v8250_v14 = vld [vmem:[#allocation17 + $0x208] ss:$16 sps:$4 sm:$0xff]  }
 0x945   :  { %7953 = vmatprep.subr.bf16.mxu0 %v3102_v37 }
 0x946   :  { %v3091_v39 = vpop.trf.xlu0  ;;  %7954 = vmatpush3.bf16.msra.mxu0 %v3102_v37  ;;  %v8255_v37 = vld [vmem:[#allocation17 + $0x224] ss:$16 sps:$4 sm:$0xff]  }
 0x94a   :  { %v3092_v40 = vpop.trf.xlu0 }
 0x94b   :  { %v3103_v16 = vpack.c.bf16 %v3092_v40, %v3091_v39  ;;  %v8258_v39 = vld [vmem:[#allocation17 + $0x22c] ss:$16 sps:$4 sm:$0xff]  }
 0x94d   :  { %7955 = vmatprep.subr.bf16.mxu0 %v3103_v16 }
 0x94e   :  { %v3093_v63 = vpop.trf.xlu0  ;;  %7956 = vmatpush3.bf16.msra.mxu0 %v3103_v16  ;;  %v8253_v16 = vld [vmem:[#allocation17 + $0x220] ss:$16 sps:$4 sm:$0xff]  }
 0x952   :  { %v3094_v30 = vpop.trf.xlu0 }
 0x953   :  { %v3104_v3 = vpack.c.bf16 %v3094_v30, %v3093_v63  ;;  %v8256_v63 = vld [vmem:[#allocation17 + $0x228] ss:$16 sps:$4 sm:$0xff]  }
 0x955   :  { %7957 = vmatprep.subr.bf16.mxu0 %v3104_v3 }
 0x956   :  { %v3095_v43 = vpop.trf.xlu0  ;;  %7958 = vmatpush3.bf16.msra.mxu0 %v3104_v3  ;;  %v8261_v3 = vld [vmem:[#allocation17 + $0x244] ss:$16 sps:$4 sm:$0xff]  }
 0x95a   :  { %v3096_v34 = vpop.trf.xlu0 }
 0x95b   :  { %v3105_v44 = vpack.c.bf16 %v3096_v34, %v3095_v43  ;;  %v8264_v43 = vld [vmem:[#allocation17 + $0x24c] ss:$16 sps:$4 sm:$0xff]  }
 0x95d   :  { %7959 = vmatprep.subr.bf16.mxu0 %v3105_v44 }
 0x95e   :  { %v3097_v22 = vpop.trf.xlu0  ;;  %7960 = vmatpush3.bf16.msra.mxu0 %v3105_v44 }
 0x962   :  { %v3098_v27 = vpop.trf.xlu0 }
 0x963   :  { %v3106_v45 = vpack.c.bf16 %v3098_v27, %v3097_v22  ;;  %v8259_v27 = vld [vmem:[#allocation17 + $0x240] ss:$16 sps:$4 sm:$0xff]  }
 0x965   :  { %7961 = vmatprep.subr.bf16.mxu0 %v3106_v45 }
 0x966   :  { %7962 = vmatpush3.bf16.msra.mxu0 %v3106_v45  ;;  %v8262_v45 = vld [vmem:[#allocation17 + $0x248] ss:$16 sps:$4 sm:$0xff]  }
 0x967   :  { %6668 = vmatprep.subr.bf16.mxu0 %v8152_v31  ;;  %v8267_v31 = vld [vmem:[#allocation17 + $0x264] ss:$16 sps:$4 sm:$0xff]  }
 0x969   :  { %7964 = vmatmul.mubr.bf16.vlgmr.msra.gmra.mrb[80].mxu0 %v8144_v0  ;;  %v8270_v0 = vld [vmem:[#allocation17 + $0x26c] ss:$16 sps:$4 sm:$0xff]  }
 0x96a   :  { %7967 = vmatprep.mubr.bf16.mxu0 %v8145_v50  ;;  %6669 = vmatpush1.bf16.msra.mxu0 %v8150_v52  ;;  %v8265_v50 = vld [vmem:[#allocation17 + $0x260] ss:$16 sps:$4 sm:$0xff]   ;;  %v8268_v52 = vld [vmem:[#allocation17 + $0x268] ss:$16 sps:$4 sm:$0xff]  }
 0x96b   :  { %6670 = vmatprep.subr.bf16.mxu0 %v8158_v6  ;;  %v8273_v6 = vld [vmem:[#allocation17 + $0x284] ss:$16 sps:$4 sm:$0xff]  }
 0x96e   :  { %6671 = vmatpush1.bf16.msra.mxu0 %v8156_v41  ;;  %v8276_v41 = vld [vmem:[#allocation17 + $0x28c] ss:$16 sps:$4 sm:$0xff]  }
 0x96f   :  { %6672 = vmatprep.subr.bf16.mxu0 %v8164_v29  ;;  %v8271_v29 = vld [vmem:[#allocation17 + $0x280] ss:$16 sps:$4 sm:$0xff]  }
 0x971   :  { %7968 = vmatmul.mubr.bf16.gmra.mrb[84].mxu0 %v8146_v53  ;;  %v8274_v53 = vld [vmem:[#allocation17 + $0x288] ss:$16 sps:$4 sm:$0xff]  }
 0x972   :  { %6673 = vmatpush1.bf16.msra.mxu0 %v8162_v9  ;;  %7971 = vmatprep.mubr.bf16.mxu0 %v8219_v42  ;;  %v8279_v9 = vld [vmem:[#allocation17 + $0x2a4] ss:$16 sps:$4 sm:$0xff]   ;;  %v8282_v42 = vld [vmem:[#allocation17 + $0x2ac] ss:$16 sps:$4 sm:$0xff]  }
 0x973   :  { %6674 = vmatprep.subr.bf16.mxu0 %v8170_v58  ;;  %v8277_v58 = vld [vmem:[#allocation17 + $0x2a0] ss:$16 sps:$4 sm:$0xff]  }
 0x976   :  { %6675 = vmatpush1.bf16.msra.mxu0 %v8168_v23  ;;  %v8280_v23 = vld [vmem:[#allocation17 + $0x2a8] ss:$16 sps:$4 sm:$0xff]  }
 0x977   :  { %6676 = vmatprep.subr.bf16.mxu0 %v8176_v59  ;;  %v8285_v59 = vld [vmem:[#allocation17 + $0x2c4] ss:$16 sps:$4 sm:$0xff]  }
 0x979   :  { %7972 = vmatmul.mubr.bf16.gmra.mrb[88].mxu0 %v8226_v55  ;;  %v8288_v55 = vld [vmem:[#allocation17 + $0x2cc] ss:$16 sps:$4 sm:$0xff]  }
 0x97a   :  { %6677 = vmatpush1.bf16.msra.mxu0 %v8174_v47  ;;  %7975 = vmatprep.mubr.bf16.mxu0 %v8233_v61  ;;  %v8283_v47 = vld [vmem:[#allocation17 + $0x2c0] ss:$16 sps:$4 sm:$0xff]   ;;  %v8286_v61 = vld [vmem:[#allocation17 + $0x2c8] ss:$16 sps:$4 sm:$0xff]  }
 0x97b   :  { %6678 = vmatprep.subr.bf16.mxu0 %v8182_v12  ;;  %v8291_v12 = vld [vmem:[#allocation17 + $0x2e4] ss:$16 sps:$4 sm:$0xff]  }
 0x97e   :  { %6679 = vmatpush1.bf16.msra.mxu0 %v8180_v56  ;;  %v8294_v56 = vld [vmem:[#allocation17 + $0x2ec] ss:$16 sps:$4 sm:$0xff]  }
 0x97f   :  { %6680 = vmatprep.subr.bf16.mxu0 %v8188_v48  ;;  %v8289_v48 = vld [vmem:[#allocation17 + $0x2e0] ss:$16 sps:$4 sm:$0xff]  }
 0x981   :  { %7976 = vmatmul.mubr.bf16.gmra.mrb[92].mxu0 %v8240_v36  ;;  %v8292_v36 = vld [vmem:[#allocation17 + $0x2e8] ss:$16 sps:$4 sm:$0xff]  }
 0x982   :  { %6681 = vmatpush1.bf16.msra.mxu0 %v8186_v2  ;;  %v8297_v2 = vld [vmem:[#allocation17 + $0x304] ss:$16 sps:$4 sm:$0xff]  }
 0x983   :  { %6682 = vmatprep.subr.bf16.mxu0 %v8194_v15  ;;  %v8300_v15 = vld [vmem:[#allocation17 + $0x30c] ss:$16 sps:$4 sm:$0xff]  }
 0x986   :  { %6683 = vmatpush1.bf16.msra.mxu0 %v8192_v4  ;;  %v8295_v4 = vld [vmem:[#allocation17 + $0x300] ss:$16 sps:$4 sm:$0xff]  }
 0x987   :  { %6684 = vmatprep.subr.bf16.mxu0 %v8200_v5  ;;  %v8298_v5 = vld [vmem:[#allocation17 + $0x308] ss:$16 sps:$4 sm:$0xff]  }
 0x98a   :  { %6685 = vmatpush1.bf16.msra.mxu0 %v8198_v38  ;;  %v8303_v38 = vld [vmem:[#allocation17 + $0x324] ss:$16 sps:$4 sm:$0xff]  }
 0x98b   :  { %6686 = vmatprep.subr.bf16.mxu0 %v8206_v7  ;;  %v8306_v7 = vld [vmem:[#allocation17 + $0x32c] ss:$16 sps:$4 sm:$0xff]  }
 0x98e   :  { %6687 = vmatpush1.bf16.msra.mxu0 %v8204_v8  ;;  %v8301_v8 = vld [vmem:[#allocation17 + $0x320] ss:$16 sps:$4 sm:$0xff]  }
 0x98f   :  { %6688 = vmatprep.subr.bf16.mxu0 %v8212_v10  ;;  %v8304_v10 = vld [vmem:[#allocation17 + $0x328] ss:$16 sps:$4 sm:$0xff]  }
 0x992   :  { %6689 = vmatpush1.bf16.msra.mxu0 %v8210_v11  ;;  %v8309_v11 = vld [vmem:[#allocation17 + $0x344] ss:$16 sps:$4 sm:$0xff]  }
 0x993   :  { %6690 = vmatprep.subr.bf16.mxu0 %v8218_v46  ;;  %v8312_v46 = vld [vmem:[#allocation17 + $0x34c] ss:$16 sps:$4 sm:$0xff]  }
 0x996   :  { %6691 = vmatpush1.bf16.msra.mxu0 %v8216_v51  ;;  %v8307_v51 = vld [vmem:[#allocation17 + $0x340] ss:$16 sps:$4 sm:$0xff]  }
 0x997   :  { %6692 = vmatprep.subr.bf16.mxu0 %v8225_v13  ;;  %v8310_v13 = vld [vmem:[#allocation17 + $0x348] ss:$16 sps:$4 sm:$0xff]  }
 0x99a   :  { %6693 = vmatpush1.bf16.msra.mxu0 %v8223_v54  ;;  %v8315_v54 = vld [vmem:[#allocation17 + $0x364] ss:$16 sps:$4 sm:$0xff]  }
 0x99b   :  { %6694 = vmatprep.subr.bf16.mxu0 %v8232_v17  ;;  %v8318_v17 = vld [vmem:[#allocation17 + $0x36c] ss:$16 sps:$4 sm:$0xff]  }
 0x99e   :  { %6695 = vmatpush1.bf16.msra.mxu0 %v8230_v49  ;;  %v8313_v49 = vld [vmem:[#allocation17 + $0x360] ss:$16 sps:$4 sm:$0xff]  }
 0x99f   :  { %6696 = vmatprep.subr.bf16.mxu0 %v8239_v18  ;;  %v8316_v18 = vld [vmem:[#allocation17 + $0x368] ss:$16 sps:$4 sm:$0xff]  }
 0x9a2   :  { %6697 = vmatpush1.bf16.msra.mxu0 %v8237_v19  ;;  %v8321_v19 = vld [vmem:[#allocation17 + $0x384] ss:$16 sps:$4 sm:$0xff]  }
 0x9a3   :  { %6698 = vmatprep.subr.bf16.mxu0 %v8246_v20  ;;  %v8319_v20 = vld [vmem:[#allocation17 + $0x380] ss:$16 sps:$4 sm:$0xff]  }
 0x9a6   :  { %6699 = vmatpush1.bf16.msra.mxu0 %v8244_v24  ;;  %v8327_v24 = vld [vmem:[#allocation17 + $0x3a4] ss:$16 sps:$4 sm:$0xff]  }
 0x9a7   :  { %6709 = vmatprep.subr.bf16.mxu0 %v8252_v57  ;;  %v8325_v57 = vld [vmem:[#allocation17 + $0x3a0] ss:$16 sps:$4 sm:$0xff]  }
 0xa3c   :  { %v9794_v26 = vpop.f32.mrb[80].mxu0 }
 0xa3d   :  { %v3189_v1 = vpop.f32.mrb[81].mxu0 }
 0xa3e   :  { %v7966_v60 = vpop.f32.mrb[82].mxu0  ;;  %v3252_v28 = vpack.c.bf16 %v3189_v1, %v3189_v1  ;;  %v8328_v1 = vld [vmem:[#allocation17 + $0x3a8] ss:$16 sps:$4 sm:$0xff]  }
 0xa3f   :  { %v3192_v32 = vpop.f32.mrb[83].mxu0  ;;  %v3255_v40 = vpack.c.bf16 %v7966_v60, %v7966_v60  ;;  %v8333_v60 = vld [vmem:[#allocation17 + $0x3c4] ss:$16 sps:$4 sm:$0xff]  }
 0xa40   :  { %v3253_v33 = vpack.c.bf16 %v3192_v32, %v3192_v32  ;;  %v8336_v32 = vld [vmem:[#allocation17 + $0x3cc] ss:$16 sps:$4 sm:$0xff]  }
 0xa42   :  { %6372 = vmatprep.mubr.bf16.mxu1 %v3253_v33  ;;  %6700 = vmatprep.mubr.bf16.mxu0 %v3253_v33  ;;  %v8331_v33 = vld [vmem:[#allocation17 + $0x3c0] ss:$16 sps:$4 sm:$0xff]  }
 0xa43   :  { %6373 = vmatmul.mubr.bf16.vlgmr.msra.gmra.mrb[128].mxu1 %v3252_v28  ;;  %6701 = vmatmul.mubr.bf16.vlgmr.msra.gmra.mrb[96].mxu0 %v3252_v28  ;;  %v8342_v28 = vld [vmem:[#allocation17 + $0x3ec] ss:$16 sps:$4 sm:$0xff]  }
 0xa44   :  { %6382 = vmatpush1.bf16.msra.mxu1 %v8247_v35  ;;  %6710 = vmatpush1.bf16.msra.mxu0 %v8250_v14  ;;  %v9796_v30 = vpop.f32.mrb[84].mxu0  ;;  %v8334_v35 = vld [vmem:[#allocation17 + $0x3c8] ss:$16 sps:$4 sm:$0xff]   ;;  %v8339_v14 = vld [vmem:[#allocation17 + $0x3e4] ss:$16 sps:$4 sm:$0xff]  }
 0xa45   :  { %6413 = vmatprep.mubr.bf16.mxu1 %v3255_v40  ;;  %6741 = vmatprep.mubr.bf16.mxu0 %v3255_v40  ;;  %v9798_v34 = vpop.f32.mrb[85].mxu0  ;;  %v8345_v40 = vld [vmem:[#allocation17 + $0x404] ss:$16 sps:$4 sm:$0xff]  }
 0xa46   :  { %6383 = vmatprep.subr.bf16.mxu1 %v8255_v37  ;;  %6711 = vmatprep.subr.bf16.mxu0 %v8258_v39  ;;  %v9800_v44 = vpop.f32.mrb[86].mxu0  ;;  %v8337_v37 = vld [vmem:[#allocation17 + $0x3e0] ss:$16 sps:$4 sm:$0xff]   ;;  %v8340_v39 = vld [vmem:[#allocation17 + $0x3e8] ss:$16 sps:$4 sm:$0xff]  }
 0xa47   :  { %v9802_v22 = vpop.f32.mrb[87].mxu0 }
 0xa48   :  { %6384 = vmatpush1.bf16.msra.mxu1 %v8253_v16  ;;  %6712 = vmatpush1.bf16.msra.mxu0 %v8256_v63  ;;  %v8348_v16 = vld [vmem:[#allocation17 + $0x40c] ss:$16 sps:$4 sm:$0xff]   ;;  %v8343_v63 = vld [vmem:[#allocation17 + $0x400] ss:$16 sps:$4 sm:$0xff]  }
 0xa49   :  { %6385 = vmatprep.subr.bf16.mxu1 %v8261_v3  ;;  %6713 = vmatprep.subr.bf16.mxu0 %v8264_v43  ;;  %v8346_v3 = vld [vmem:[#allocation17 + $0x408] ss:$16 sps:$4 sm:$0xff]   ;;  %v3254_v43 = vpack.c.bf16 %v9794_v26, %v9794_v26 }
 0xa4c   :  { %6386 = vmatpush1.bf16.msra.mxu1 %v8259_v27  ;;  %6714 = vmatpush1.bf16.msra.mxu0 %v8262_v45  ;;  %v8351_v27 = vld [vmem:[#allocation17 + $0x424] ss:$16 sps:$4 sm:$0xff]   ;;  %v8354_v45 = vld [vmem:[#allocation17 + $0x42c] ss:$16 sps:$4 sm:$0xff]  }
 0xa4d   :  { %6387 = vmatprep.subr.bf16.mxu1 %v8267_v31  ;;  %6715 = vmatprep.subr.bf16.mxu0 %v8270_v0  ;;  %v3257_v31 = vpack.c.bf16 %v9802_v22, %v9802_v22  ;;  %v8349_v0 = vld [vmem:[#allocation17 + $0x420] ss:$16 sps:$4 sm:$0xff]  }
 0xa4e   :  { %v8355_v22 = vld [vmem:[#allocation17 + $0x440] ss:$16 sps:$4 sm:$0xff]  }
 0xa50   :  { %6388 = vmatpush1.bf16.msra.mxu1 %v8265_v50  ;;  %6716 = vmatpush1.bf16.msra.mxu0 %v8268_v52  ;;  %v8352_v50 = vld [vmem:[#allocation17 + $0x428] ss:$16 sps:$4 sm:$0xff]   ;;  %v8357_v52 = vld [vmem:[#allocation17 + $0x444] ss:$16 sps:$4 sm:$0xff]  }
 0xa51   :  { %6389 = vmatprep.subr.bf16.mxu1 %v8273_v6  ;;  %6717 = vmatprep.subr.bf16.mxu0 %v8276_v41  ;;  %v8360_v6 = vld [vmem:[#allocation17 + $0x44c] ss:$16 sps:$4 sm:$0xff]   ;;  %v9808_v41 = vpop.f32.mrb[88].mxu0 }
 0xa52   :  { %v9810_v26 = vpop.f32.mrb[89].mxu0 }
 0xa54   :  { %6390 = vmatpush1.bf16.msra.mxu1 %v8271_v29  ;;  %6718 = vmatpush1.bf16.msra.mxu0 %v8274_v53  ;;  %v9812_v29 = vpop.f32.mrb[90].mxu0  ;;  %v8358_v53 = vld [vmem:[#allocation17 + $0x448] ss:$16 sps:$4 sm:$0xff]  }
 0xa55   :  { %6391 = vmatprep.subr.bf16.mxu1 %v8279_v9  ;;  %6719 = vmatprep.subr.bf16.mxu0 %v8282_v42  ;;  %v9814_v9 = vpop.f32.mrb[91].mxu0  ;;  %v8363_v42 = vld [vmem:[#allocation17 + $0x464] ss:$16 sps:$4 sm:$0xff]  }
 0xa58   :  { %6392 = vmatpush1.bf16.msra.mxu1 %v8277_v58  ;;  %6720 = vmatpush1.bf16.msra.mxu0 %v8280_v23  ;;  %v8366_v58 = vld [vmem:[#allocation17 + $0x46c] ss:$16 sps:$4 sm:$0xff]   ;;  %v8361_v23 = vld [vmem:[#allocation17 + $0x460] ss:$16 sps:$4 sm:$0xff]  }
 0xa59   :  { %6393 = vmatprep.subr.bf16.mxu1 %v8285_v59  ;;  %6721 = vmatprep.subr.bf16.mxu0 %v8288_v55  ;;  %v8364_v59 = vld [vmem:[#allocation17 + $0x468] ss:$16 sps:$4 sm:$0xff]   ;;  %v8369_v55 = vld [vmem:[#allocation17 + $0x484] ss:$16 sps:$4 sm:$0xff]  }
 0xa5c   :  { %6394 = vmatpush1.bf16.msra.mxu1 %v8283_v47  ;;  %6722 = vmatpush1.bf16.msra.mxu0 %v8286_v61  ;;  %v8372_v47 = vld [vmem:[#allocation17 + $0x48c] ss:$16 sps:$4 sm:$0xff]   ;;  %v9816_v61 = vpop.f32.mrb[92].mxu0 }
 0xa5d   :  { %6395 = vmatprep.subr.bf16.mxu1 %v8291_v12  ;;  %6723 = vmatprep.subr.bf16.mxu0 %v8294_v56  ;;  %v9818_v12 = vpop.f32.mrb[93].mxu0 }
 0xa5e   :  { %v9820_v56 = vpop.f32.mrb[94].mxu0 }
 0xa60   :  { %6396 = vmatpush1.bf16.msra.mxu1 %v8289_v48  ;;  %6724 = vmatpush1.bf16.msra.mxu0 %v8292_v36  ;;  %v8367_v48 = vld [vmem:[#allocation17 + $0x480] ss:$16 sps:$4 sm:$0xff]   ;;  %v8370_v36 = vld [vmem:[#allocation17 + $0x488] ss:$16 sps:$4 sm:$0xff]  }
 0xa61   :  { %6397 = vmatprep.subr.bf16.mxu1 %v8297_v2  ;;  %6725 = vmatprep.subr.bf16.mxu0 %v8300_v15  ;;  %v9822_v2 = vpop.f32.mrb[95].mxu0  ;;  %v8375_v15 = vld [vmem:[#allocation17 + $0x4a4] ss:$16 sps:$4 sm:$0xff]  }
 0xa64   :  { %6398 = vmatpush1.bf16.msra.mxu1 %v8295_v4  ;;  %6726 = vmatpush1.bf16.msra.mxu0 %v8298_v5  ;;  %v8378_v4 = vld [vmem:[#allocation17 + $0x4ac] ss:$16 sps:$4 sm:$0xff]   ;;  %v8373_v5 = vld [vmem:[#allocation17 + $0x4a0] ss:$16 sps:$4 sm:$0xff]  }
 0xa65   :  { %6399 = vmatprep.subr.bf16.mxu1 %v8303_v38  ;;  %6727 = vmatprep.subr.bf16.mxu0 %v8306_v7  ;;  %v8376_v38 = vld [vmem:[#allocation17 + $0x4a8] ss:$16 sps:$4 sm:$0xff]   ;;  %v8381_v7 = vld [vmem:[#allocation17 + $0x4c4] ss:$16 sps:$4 sm:$0xff]  }
 0xa68   :  { %6400 = vmatpush1.bf16.msra.mxu1 %v8301_v8  ;;  %6728 = vmatpush1.bf16.msra.mxu0 %v8304_v10  ;;  %v8384_v8 = vld [vmem:[#allocation17 + $0x4cc] ss:$16 sps:$4 sm:$0xff]   ;;  %v8379_v10 = vld [vmem:[#allocation17 + $0x4c0] ss:$16 sps:$4 sm:$0xff]  }
 0xa69   :  { %6401 = vmatprep.subr.bf16.mxu1 %v8309_v11  ;;  %6729 = vmatprep.subr.bf16.mxu0 %v8312_v46  ;;  %v8382_v11 = vld [vmem:[#allocation17 + $0x4c8] ss:$16 sps:$4 sm:$0xff]   ;;  %v8387_v46 = vld [vmem:[#allocation17 + $0x4e4] ss:$16 sps:$4 sm:$0xff]  }
 0xa6c   :  { %6402 = vmatpush1.bf16.msra.mxu1 %v8307_v51  ;;  %6730 = vmatpush1.bf16.msra.mxu0 %v8310_v13  ;;  %v8390_v51 = vld [vmem:[#allocation17 + $0x4ec] ss:$16 sps:$4 sm:$0xff]   ;;  %v8385_v13 = vld [vmem:[#allocation17 + $0x4e0] ss:$16 sps:$4 sm:$0xff]  }
 0xa6d   :  { %6403 = vmatprep.subr.bf16.mxu1 %v8315_v54  ;;  %6731 = vmatprep.subr.bf16.mxu0 %v8318_v17  ;;  %v8388_v54 = vld [vmem:[#allocation17 + $0x4e8] ss:$16 sps:$4 sm:$0xff]   ;;  %v8393_v17 = vld [vmem:[#allocation17 + $0x504] ss:$16 sps:$4 sm:$0xff]  }
 0xa70   :  { %6404 = vmatpush1.bf16.msra.mxu1 %v8313_v49  ;;  %6732 = vmatpush1.bf16.msra.mxu0 %v8316_v18  ;;  %v8396_v49 = vld [vmem:[#allocation17 + $0x50c] ss:$16 sps:$4 sm:$0xff]   ;;  %v8391_v18 = vld [vmem:[#allocation17 + $0x500] ss:$16 sps:$4 sm:$0xff]  }
 0xa71   :  { %6405 = vmatprep.subr.bf16.mxu1 %v8321_v19  ;;  %6733 = vmatprep.subr.bf16.mxu0 %v8324_v21  ;;  %v8394_v19 = vld [vmem:[#allocation17 + $0x508] ss:$16 sps:$4 sm:$0xff]   ;;  %v8399_v21 = vld [vmem:[#allocation17 + $0x524] ss:$16 sps:$4 sm:$0xff]  }
 0xa74   :  { %6406 = vmatpush1.bf16.msra.mxu1 %v8319_v20  ;;  %6734 = vmatpush1.bf16.msra.mxu0 %v8322_v62  ;;  %v8402_v20 = vld [vmem:[#allocation17 + $0x52c] ss:$16 sps:$4 sm:$0xff]   ;;  %v8397_v62 = vld [vmem:[#allocation17 + $0x520] ss:$16 sps:$4 sm:$0xff]  }
 0xa75   :  { %6407 = vmatprep.subr.bf16.mxu1 %v8327_v24  ;;  %6735 = vmatprep.subr.bf16.mxu0 %v8330_v25  ;;  %v8400_v24 = vld [vmem:[#allocation17 + $0x528] ss:$16 sps:$4 sm:$0xff]   ;;  %v8405_v25 = vld [vmem:[#allocation17 + $0x544] ss:$16 sps:$4 sm:$0xff]  }
 0xa78   :  { %6408 = vmatpush1.bf16.msra.mxu1 %v8325_v57  ;;  %6736 = vmatpush1.bf16.msra.mxu0 %v8328_v1  ;;  %v8408_v57 = vld [vmem:[#allocation17 + $0x54c] ss:$16 sps:$4 sm:$0xff]   ;;  %v8403_v1 = vld [vmem:[#allocation17 + $0x540] ss:$16 sps:$4 sm:$0xff]  }
 0xa79   :  { %6409 = vmatprep.subr.bf16.mxu1 %v8333_v60  ;;  %6737 = vmatprep.subr.bf16.mxu0 %v8336_v32  ;;  %v8406_v60 = vld [vmem:[#allocation17 + $0x548] ss:$16 sps:$4 sm:$0xff]   ;;  %v8411_v32 = vld [vmem:[#allocation17 + $0x564] ss:$16 sps:$4 sm:$0xff]  }
 0xa7c   :  { %6410 = vmatpush1.bf16.msra.mxu1 %v8331_v33  ;;  %6738 = vmatpush1.bf16.msra.mxu0 %v8334_v35  ;;  %v8414_v33 = vld [vmem:[#allocation17 + $0x56c] ss:$16 sps:$4 sm:$0xff]   ;;  %v8409_v35 = vld [vmem:[#allocation17 + $0x560] ss:$16 sps:$4 sm:$0xff]  }
 0xa7d   :  { %6411 = vmatprep.subr.bf16.mxu1 %v8339_v14  ;;  %6739 = vmatprep.subr.bf16.mxu0 %v8342_v28  ;;  %v8412_v14 = vld [vmem:[#allocation17 + $0x568] ss:$16 sps:$4 sm:$0xff]   ;;  %v8417_v28 = vld [vmem:[#allocation17 + $0x584] ss:$16 sps:$4 sm:$0xff]  }
 0xa80   :  { %6412 = vmatpush1.bf16.msra.mxu1 %v8337_v37  ;;  %6740 = vmatpush1.bf16.msra.mxu0 %v8340_v39  ;;  %v8420_v37 = vld [vmem:[#allocation17 + $0x58c] ss:$16 sps:$4 sm:$0xff]   ;;  %v8415_v39 = vld [vmem:[#allocation17 + $0x580] ss:$16 sps:$4 sm:$0xff]  }
 0xa81   :  { %6422 = vmatprep.subr.bf16.mxu1 %v8345_v40  ;;  %6750 = vmatprep.subr.bf16.mxu0 %v8348_v16  ;;  %v8418_v40 = vld [vmem:[#allocation17 + $0x588] ss:$16 sps:$4 sm:$0xff]   ;;  %v8423_v16 = vld [vmem:[#allocation17 + $0x5a4] ss:$16 sps:$4 sm:$0xff]  }
 0xa83   :  { %6414 = vmatmul.mubr.bf16.vlgmr.msra.gmra.mrb[128].mxu1 %v3254_v43  ;;  %6742 = vmatmul.mubr.bf16.vlgmr.msra.gmra.mrb[96].mxu0 %v3254_v43  ;;  %v8424_v43 = vld [vmem:[#allocation17 + $0x5a8] ss:$16 sps:$4 sm:$0xff]  }
 0xa84   :  { %6423 = vmatpush1.bf16.msra.mxu1 %v8343_v63  ;;  %6751 = vmatpush1.bf16.msra.mxu0 %v8346_v3  ;;  %v8426_v63 = vld [vmem:[#allocation17 + $0x5ac] ss:$16 sps:$4 sm:$0xff]   ;;  %v8421_v3 = vld [vmem:[#allocation17 + $0x5a0] ss:$16 sps:$4 sm:$0xff]  }
 0xa85   :  { %6424 = vmatprep.subr.bf16.mxu1 %v8351_v27  ;;  %6752 = vmatprep.subr.bf16.mxu0 %v8354_v45  ;;  %v8429_v27 = vld [vmem:[#allocation17 + $0x5c4] ss:$16 sps:$4 sm:$0xff]   ;;  %v8432_v45 = vld [vmem:[#allocation17 + $0x5cc] ss:$16 sps:$4 sm:$0xff]  }
 0xa86   :  { %6454 = vmatprep.mubr.bf16.mxu1 %v3257_v31  ;;  %6782 = vmatprep.mubr.bf16.mxu0 %v3257_v31  ;;  %v8427_v31 = vld [vmem:[#allocation17 + $0x5c0] ss:$16 sps:$4 sm:$0xff]  }
 0xa88   :  { %6425 = vmatpush1.bf16.msra.mxu1 %v8349_v0  ;;  %6753 = vmatpush1.bf16.msra.mxu0 %v8352_v50  ;;  %v8430_v0 = vld [vmem:[#allocation17 + $0x5c8] ss:$16 sps:$4 sm:$0xff]   ;;  %v8435_v50 = vld [vmem:[#allocation17 + $0x5e4] ss:$16 sps:$4 sm:$0xff]  }
 0xa89   :  { %6426 = vmatprep.subr.bf16.mxu1 %v8357_v52  ;;  %6754 = vmatprep.subr.bf16.mxu0 %v8360_v6  ;;  %v8438_v52 = vld [vmem:[#allocation17 + $0x5ec] ss:$16 sps:$4 sm:$0xff]   ;;  %v8433_v6 = vld [vmem:[#allocation17 + $0x5e0] ss:$16 sps:$4 sm:$0xff]  }
 0xa8c   :  { %6427 = vmatpush1.bf16.msra.mxu1 %v8355_v22  ;;  %6755 = vmatpush1.bf16.msra.mxu0 %v8358_v53  ;;  %v8436_v22 = vld [vmem:[#allocation17 + $0x5e8] ss:$16 sps:$4 sm:$0xff]   ;;  %v8441_v53 = vld [vmem:[#allocation17 + $0x604] ss:$16 sps:$4 sm:$0xff]  }
 0xa8d   :  { %6428 = vmatprep.subr.bf16.mxu1 %v8363_v42  ;;  %6756 = vmatprep.subr.bf16.mxu0 %v8366_v58  ;;  %v8444_v42 = vld [vmem:[#allocation17 + $0x60c] ss:$16 sps:$4 sm:$0xff]   ;;  %v8439_v58 = vld [vmem:[#allocation17 + $0x600] ss:$16 sps:$4 sm:$0xff]  }
 0xa90   :  { %6429 = vmatpush1.bf16.msra.mxu1 %v8361_v23  ;;  %6757 = vmatpush1.bf16.msra.mxu0 %v8364_v59  ;;  %v8442_v23 = vld [vmem:[#allocation17 + $0x608] ss:$16 sps:$4 sm:$0xff]   ;;  %v3256_v59 = vpack.c.bf16 %v9798_v34, %v9798_v34  ;;  %v8451_v34 = vld [vmem:[#allocation17 + $0x640] ss:$16 sps:$4 sm:$0xff]  }
 0xa91   :  { %6430 = vmatprep.subr.bf16.mxu1 %v8369_v55  ;;  %6758 = vmatprep.subr.bf16.mxu0 %v8372_v47  ;;  %v8447_v55 = vld [vmem:[#allocation17 + $0x624] ss:$16 sps:$4 sm:$0xff]   ;;  %v8450_v47 = vld [vmem:[#allocation17 + $0x62c] ss:$16 sps:$4 sm:$0xff]  }
 0xa94   :  { %6431 = vmatpush1.bf16.msra.mxu1 %v8367_v48  ;;  %6759 = vmatpush1.bf16.msra.mxu0 %v8370_v36  ;;  %v3259_v48 = vpack.c.bf16 %v9800_v44, %v9800_v44  ;;  %v8445_v36 = vld [vmem:[#allocation17 + $0x620] ss:$16 sps:$4 sm:$0xff]   ;;  %v8462_v44 = vld [vmem:[#allocation17 + $0x66c] ss:$16 sps:$4 sm:$0xff]  }
 0xa95   :  { %6432 = vmatprep.subr.bf16.mxu1 %v8375_v15  ;;  %6760 = vmatprep.subr.bf16.mxu0 %v8378_v4  ;;  %v8448_v15 = vld [vmem:[#allocation17 + $0x628] ss:$16 sps:$4 sm:$0xff]   ;;  %v8453_v4 = vld [vmem:[#allocation17 + $0x644] ss:$16 sps:$4 sm:$0xff]  }
 0xa98   :  { %6433 = vmatpush1.bf16.msra.mxu1 %v8373_v5  ;;  %6761 = vmatpush1.bf16.msra.mxu0 %v8376_v38  ;;  %v8456_v5 = vld [vmem:[#allocation17 + $0x64c] ss:$16 sps:$4 sm:$0xff]   ;;  %v8454_v38 = vld [vmem:[#allocation17 + $0x648] ss:$16 sps:$4 sm:$0xff]  }
 0xa99   :  { %6434 = vmatprep.subr.bf16.mxu1 %v8381_v7  ;;  %6762 = vmatprep.subr.bf16.mxu0 %v8384_v8  ;;  %v8459_v7 = vld [vmem:[#allocation17 + $0x664] ss:$16 sps:$4 sm:$0xff]   ;;  %v8457_v8 = vld [vmem:[#allocation17 + $0x660] ss:$16 sps:$4 sm:$0xff]  }
 0xa9c   :  { %6435 = vmatpush1.bf16.msra.mxu1 %v8379_v10  ;;  %6763 = vmatpush1.bf16.msra.mxu0 %v8382_v11  ;;  %v8460_v10 = vld [vmem:[#allocation17 + $0x668] ss:$16 sps:$4 sm:$0xff]   ;;  %v8465_v11 = vld [vmem:[#allocation17 + $0x684] ss:$16 sps:$4 sm:$0xff]  }
 0xa9d   :  { %6436 = vmatprep.subr.bf16.mxu1 %v8387_v46  ;;  %6764 = vmatprep.subr.bf16.mxu0 %v8390_v51  ;;  %v8468_v46 = vld [vmem:[#allocation17 + $0x68c] ss:$16 sps:$4 sm:$0xff]   ;;  %v8463_v51 = vld [vmem:[#allocation17 + $0x680] ss:$16 sps:$4 sm:$0xff]  }
 0xaa0   :  { %6437 = vmatpush1.bf16.msra.mxu1 %v8385_v13  ;;  %6765 = vmatpush1.bf16.msra.mxu0 %v8388_v54  ;;  %v8466_v13 = vld [vmem:[#allocation17 + $0x688] ss:$16 sps:$4 sm:$0xff]   ;;  %v8471_v54 = vld [vmem:[#allocation17 + $0x6a4] ss:$16 sps:$4 sm:$0xff]  }
 0xaa1   :  { %6438 = vmatprep.subr.bf16.mxu1 %v8393_v17  ;;  %6766 = vmatprep.subr.bf16.mxu0 %v8396_v49  ;;  %v8474_v17 = vld [vmem:[#allocation17 + $0x6ac] ss:$16 sps:$4 sm:$0xff]   ;;  %v8469_v49 = vld [vmem:[#allocation17 + $0x6a0] ss:$16 sps:$4 sm:$0xff]  }
 0xaa4   :  { %6439 = vmatpush1.bf16.msra.mxu1 %v8391_v18  ;;  %6767 = vmatpush1.bf16.msra.mxu0 %v8394_v19  ;;  %v8472_v18 = vld [vmem:[#allocation17 + $0x6a8] ss:$16 sps:$4 sm:$0xff]   ;;  %v8477_v19 = vld [vmem:[#allocation17 + $0x6c4] ss:$16 sps:$4 sm:$0xff]  }
 0xaa5   :  { %6440 = vmatprep.subr.bf16.mxu1 %v8399_v21  ;;  %6768 = vmatprep.subr.bf16.mxu0 %v8402_v20  ;;  %v8480_v21 = vld [vmem:[#allocation17 + $0x6cc] ss:$16 sps:$4 sm:$0xff]   ;;  %v8475_v20 = vld [vmem:[#allocation17 + $0x6c0] ss:$16 sps:$4 sm:$0xff]  }
 0xaa8   :  { %6441 = vmatpush1.bf16.msra.mxu1 %v8397_v62  ;;  %6769 = vmatpush1.bf16.msra.mxu0 %v8400_v24  ;;  %v8478_v62 = vld [vmem:[#allocation17 + $0x6c8] ss:$16 sps:$4 sm:$0xff]   ;;  %v8483_v24 = vld [vmem:[#allocation17 + $0x6e4] ss:$16 sps:$4 sm:$0xff]  }
 0xaa9   :  { %6442 = vmatprep.subr.bf16.mxu1 %v8405_v25  ;;  %6770 = vmatprep.subr.bf16.mxu0 %v8408_v57  ;;  %v8486_v25 = vld [vmem:[#allocation17 + $0x6ec] ss:$16 sps:$4 sm:$0xff]   ;;  %v8481_v57 = vld [vmem:[#allocation17 + $0x6e0] ss:$16 sps:$4 sm:$0xff]  }
 0xaac   :  { %6443 = vmatpush1.bf16.msra.mxu1 %v8403_v1  ;;  %6771 = vmatpush1.bf16.msra.mxu0 %v8406_v60  ;;  %v8484_v1 = vld [vmem:[#allocation17 + $0x6e8] ss:$16 sps:$4 sm:$0xff]   ;;  %v8489_v60 = vld [vmem:[#allocation17 + $0x704] ss:$16 sps:$4 sm:$0xff]  }
 0xaad   :  { %6444 = vmatprep.subr.bf16.mxu1 %v8411_v32  ;;  %6772 = vmatprep.subr.bf16.mxu0 %v8414_v33  ;;  %v8492_v32 = vld [vmem:[#allocation17 + $0x70c] ss:$16 sps:$4 sm:$0xff]   ;;  %v8487_v33 = vld [vmem:[#allocation17 + $0x700] ss:$16 sps:$4 sm:$0xff]  }
 0xab0   :  { %6445 = vmatpush1.bf16.msra.mxu1 %v8409_v35  ;;  %6773 = vmatpush1.bf16.msra.mxu0 %v8412_v14  ;;  %v8490_v35 = vld [vmem:[#allocation17 + $0x708] ss:$16 sps:$4 sm:$0xff]   ;;  %v8495_v14 = vld [vmem:[#allocation17 + $0x724] ss:$16 sps:$4 sm:$0xff]  }
 0xab1   :  { %6446 = vmatprep.subr.bf16.mxu1 %v8417_v28  ;;  %6774 = vmatprep.subr.bf16.mxu0 %v8420_v37  ;;  %v8498_v28 = vld [vmem:[#allocation17 + $0x72c] ss:$16 sps:$4 sm:$0xff]   ;;  %v8493_v37 = vld [vmem:[#allocation17 + $0x720] ss:$16 sps:$4 sm:$0xff]  }
 0xab4   :  { %6447 = vmatpush1.bf16.msra.mxu1 %v8415_v39  ;;  %6775 = vmatpush1.bf16.msra.mxu0 %v8418_v40  ;;  %v8496_v39 = vld [vmem:[#allocation17 + $0x728] ss:$16 sps:$4 sm:$0xff]   ;;  %v8501_v40 = vld [vmem:[#allocation17 + $0x744] ss:$16 sps:$4 sm:$0xff]  }
 0xab5   :  { %6448 = vmatprep.subr.bf16.mxu1 %v8423_v16  ;;  %6776 = vmatprep.subr.bf16.mxu0 %v8426_v63  ;;  %v8504_v16 = vld [vmem:[#allocation17 + $0x74c] ss:$16 sps:$4 sm:$0xff]   ;;  %v8499_v63 = vld [vmem:[#allocation17 + $0x740] ss:$16 sps:$4 sm:$0xff]  }
 0xab8   :  { %6449 = vmatpush1.bf16.msra.mxu1 %v8421_v3  ;;  %6777 = vmatpush1.bf16.msra.mxu0 %v8424_v43  ;;  %v8502_v3 = vld [vmem:[#allocation17 + $0x748] ss:$16 sps:$4 sm:$0xff]   ;;  %v8507_v43 = vld [vmem:[#allocation17 + $0x764] ss:$16 sps:$4 sm:$0xff]  }
 0xab9   :  { %6450 = vmatprep.subr.bf16.mxu1 %v8429_v27  ;;  %6778 = vmatprep.subr.bf16.mxu0 %v8432_v45  ;;  %v8510_v27 = vld [vmem:[#allocation17 + $0x76c] ss:$16 sps:$4 sm:$0xff]   ;;  %v8505_v45 = vld [vmem:[#allocation17 + $0x760] ss:$16 sps:$4 sm:$0xff]  }
 0xabc   :  { %6451 = vmatpush1.bf16.msra.mxu1 %v8427_v31  ;;  %6779 = vmatpush1.bf16.msra.mxu0 %v8430_v0  ;;  %v8508_v31 = vld [vmem:[#allocation17 + $0x768] ss:$16 sps:$4 sm:$0xff]   ;;  %v8513_v0 = vld [vmem:[#allocation17 + $0x784] ss:$16 sps:$4 sm:$0xff]  }
 0xabd   :  { %6452 = vmatprep.subr.bf16.mxu1 %v8435_v50  ;;  %6780 = vmatprep.subr.bf16.mxu0 %v8438_v52  ;;  %v8516_v50 = vld [vmem:[#allocation17 + $0x78c] ss:$16 sps:$4 sm:$0xff]   ;;  %v8511_v52 = vld [vmem:[#allocation17 + $0x780] ss:$16 sps:$4 sm:$0xff]  }
 0xac0   :  { %6453 = vmatpush1.bf16.msra.mxu1 %v8433_v6  ;;  %6781 = vmatpush1.bf16.msra.mxu0 %v8436_v22  ;;  %v8514_v6 = vld [vmem:[#allocation17 + $0x788] ss:$16 sps:$4 sm:$0xff]   ;;  %v8519_v22 = vld [vmem:[#allocation17 + $0x7a4] ss:$16 sps:$4 sm:$0xff]  }
 0xac1   :  { %6463 = vmatprep.subr.bf16.mxu1 %v8441_v53  ;;  %6791 = vmatprep.subr.bf16.mxu0 %v8444_v42  ;;  %v8522_v53 = vld [vmem:[#allocation17 + $0x7ac] ss:$16 sps:$4 sm:$0xff]   ;;  %v8517_v42 = vld [vmem:[#allocation17 + $0x7a0] ss:$16 sps:$4 sm:$0xff]  }
 0xac3   :  { %6455 = vmatmul.mubr.bf16.vlgmr.msra.gmra.mrb[128].mxu1 %v3256_v59  ;;  %6783 = vmatmul.mubr.bf16.vlgmr.msra.gmra.mrb[96].mxu0 %v3256_v59  ;;  %v8528_v59 = vld [vmem:[#allocation17 + $0x7cc] ss:$16 sps:$4 sm:$0xff]  }
 0xac4   :  { %6464 = vmatpush1.bf16.msra.mxu1 %v8439_v58  ;;  %6792 = vmatpush1.bf16.msra.mxu0 %v8442_v23  ;;  %v8520_v58 = vld [vmem:[#allocation17 + $0x7a8] ss:$16 sps:$4 sm:$0xff]   ;;  %v8525_v23 = vld [vmem:[#allocation17 + $0x7c4] ss:$16 sps:$4 sm:$0xff]  }
 0xac5   :  { %6495 = vmatprep.mubr.bf16.mxu1 %v3259_v48  ;;  %6823 = vmatprep.mubr.bf16.mxu0 %v3259_v48  ;;  %v8531_v48 = vld [vmem:[#allocation17 + $0x7e4] ss:$16 sps:$4 sm:$0xff]  }
 0xac6   :  { %6465 = vmatprep.subr.bf16.mxu1 %v8447_v55  ;;  %6793 = vmatprep.subr.bf16.mxu0 %v8450_v47  ;;  %v8523_v55 = vld [vmem:[#allocation17 + $0x7c0] ss:$16 sps:$4 sm:$0xff]   ;;  %v8526_v47 = vld [vmem:[#allocation17 + $0x7c8] ss:$16 sps:$4 sm:$0xff]  }
 0xac8   :  { %6466 = vmatpush1.bf16.msra.mxu1 %v8445_v36  ;;  %6794 = vmatpush1.bf16.msra.mxu0 %v8448_v15  ;;  %v8534_v36 = vld [vmem:[#allocation17 + $0x7ec] ss:$16 sps:$4 sm:$0xff]   ;;  %v8529_v15 = vld [vmem:[#allocation17 + $0x7e0] ss:$16 sps:$4 sm:$0xff]  }
 0xac9   :  { %6467 = vmatprep.subr.bf16.mxu1 %v8453_v4  ;;  %6795 = vmatprep.subr.bf16.mxu0 %v8456_v5  ;;  %v8532_v4 = vld [vmem:[#allocation17 + $0x7e8] ss:$16 sps:$4 sm:$0xff]   ;;  %v8537_v5 = vld [vmem:[#allocation17 + $0x804] ss:$16 sps:$4 sm:$0xff]  }
 0xacc   :  { %6468 = vmatpush1.bf16.msra.mxu1 %v8451_v34  ;;  %6796 = vmatpush1.bf16.msra.mxu0 %v8454_v38  ;;  %v8540_v34 = vld [vmem:[#allocation17 + $0x80c] ss:$16 sps:$4 sm:$0xff]   ;;  %v8535_v38 = vld [vmem:[#allocation17 + $0x800] ss:$16 sps:$4 sm:$0xff]  }
 0xacd   :  { %6469 = vmatprep.subr.bf16.mxu1 %v8459_v7  ;;  %6797 = vmatprep.subr.bf16.mxu0 %v8462_v44  ;;  %v8538_v7 = vld [vmem:[#allocation17 + $0x808] ss:$16 sps:$4 sm:$0xff]   ;;  %v3258_v44 = vpack.c.bf16 %v9796_v30, %v9796_v30  ;;  %v8547_v30 = vld [vmem:[#allocation17 + $0x840] ss:$16 sps:$4 sm:$0xff]  }
 0xad0   :  { %6470 = vmatpush1.bf16.msra.mxu1 %v8457_v8  ;;  %6798 = vmatpush1.bf16.msra.mxu0 %v8460_v10  ;;  %v8543_v8 = vld [vmem:[#allocation17 + $0x824] ss:$16 sps:$4 sm:$0xff]   ;;  %v8546_v10 = vld [vmem:[#allocation17 + $0x82c] ss:$16 sps:$4 sm:$0xff]  }
 0xad1   :  { %6471 = vmatprep.subr.bf16.mxu1 %v8465_v11  ;;  %6799 = vmatprep.subr.bf16.mxu0 %v8468_v46  ;;  %v3261_v11 = vpack.c.bf16 %v9814_v9, %v9814_v9  ;;  %v8541_v46 = vld [vmem:[#allocation17 + $0x820] ss:$16 sps:$4 sm:$0xff]   ;;  %v8558_v9 = vld [vmem:[#allocation17 + $0x86c] ss:$16 sps:$4 sm:$0xff]  }
 0xad4   :  { %6472 = vmatpush1.bf16.msra.mxu1 %v8463_v51  ;;  %6800 = vmatpush1.bf16.msra.mxu0 %v8466_v13  ;;  %v8544_v51 = vld [vmem:[#allocation17 + $0x828] ss:$16 sps:$4 sm:$0xff]   ;;  %v8549_v13 = vld [vmem:[#allocation17 + $0x844] ss:$16 sps:$4 sm:$0xff]  }
 0xad5   :  { %6473 = vmatprep.subr.bf16.mxu1 %v8471_v54  ;;  %6801 = vmatprep.subr.bf16.mxu0 %v8474_v17  ;;  %v8552_v54 = vld [vmem:[#allocation17 + $0x84c] ss:$16 sps:$4 sm:$0xff]   ;;  %v8550_v17 = vld [vmem:[#allocation17 + $0x848] ss:$16 sps:$4 sm:$0xff]  }
 0xad8   :  { %6474 = vmatpush1.bf16.msra.mxu1 %v8469_v49  ;;  %6802 = vmatpush1.bf16.msra.mxu0 %v8472_v18  ;;  %v8555_v49 = vld [vmem:[#allocation17 + $0x864] ss:$16 sps:$4 sm:$0xff]   ;;  %v8553_v18 = vld [vmem:[#allocation17 + $0x860] ss:$16 sps:$4 sm:$0xff]  }
 0xad9   :  { %6475 = vmatprep.subr.bf16.mxu1 %v8477_v19  ;;  %6803 = vmatprep.subr.bf16.mxu0 %v8480_v21  ;;  %v8556_v19 = vld [vmem:[#allocation17 + $0x868] ss:$16 sps:$4 sm:$0xff]   ;;  %v8561_v21 = vld [vmem:[#allocation17 + $0x884] ss:$16 sps:$4 sm:$0xff]  }
 0xadc   :  { %6476 = vmatpush1.bf16.msra.mxu1 %v8475_v20  ;;  %6804 = vmatpush1.bf16.msra.mxu0 %v8478_v62  ;;  %v8564_v20 = vld [vmem:[#allocation17 + $0x88c] ss:$16 sps:$4 sm:$0xff]   ;;  %v8559_v62 = vld [vmem:[#allocation17 + $0x880] ss:$16 sps:$4 sm:$0xff]  }
 0xadd   :  { %6477 = vmatprep.subr.bf16.mxu1 %v8483_v24  ;;  %6805 = vmatprep.subr.bf16.mxu0 %v8486_v25  ;;  %v8562_v24 = vld [vmem:[#allocation17 + $0x888] ss:$16 sps:$4 sm:$0xff]   ;;  %v8567_v25 = vld [vmem:[#allocation17 + $0x8a4] ss:$16 sps:$4 sm:$0xff]  }
 0xae0   :  { %6478 = vmatpush1.bf16.msra.mxu1 %v8481_v57  ;;  %6806 = vmatpush1.bf16.msra.mxu0 %v8484_v1  ;;  %v8570_v57 = vld [vmem:[#allocation17 + $0x8ac] ss:$16 sps:$4 sm:$0xff]   ;;  %v8565_v1 = vld [vmem:[#allocation17 + $0x8a0] ss:$16 sps:$4 sm:$0xff]  }
 0xae1   :  { %6479 = vmatprep.subr.bf16.mxu1 %v8489_v60  ;;  %6807 = vmatprep.subr.bf16.mxu0 %v8492_v32  ;;  %v8568_v60 = vld [vmem:[#allocation17 + $0x8a8] ss:$16 sps:$4 sm:$0xff]   ;;  %v8573_v32 = vld [vmem:[#allocation17 + $0x8c4] ss:$16 sps:$4 sm:$0xff]  }
 0xae4   :  { %6480 = vmatpush1.bf16.msra.mxu1 %v8487_v33  ;;  %6808 = vmatpush1.bf16.msra.mxu0 %v8490_v35  ;;  %v8576_v33 = vld [vmem:[#allocation17 + $0x8cc] ss:$16 sps:$4 sm:$0xff]   ;;  %v8571_v35 = vld [vmem:[#allocation17 + $0x8c0] ss:$16 sps:$4 sm:$0xff]  }
 0xae5   :  { %6481 = vmatprep.subr.bf16.mxu1 %v8495_v14  ;;  %6809 = vmatprep.subr.bf16.mxu0 %v8498_v28  ;;  %v8574_v14 = vld [vmem:[#allocation17 + $0x8c8] ss:$16 sps:$4 sm:$0xff]   ;;  %v8579_v28 = vld [vmem:[#allocation17 + $0x8e4] ss:$16 sps:$4 sm:$0xff]  }
 0xae8   :  { %6482 = vmatpush1.bf16.msra.mxu1 %v8493_v37  ;;  %6810 = vmatpush1.bf16.msra.mxu0 %v8496_v39  ;;  %v8582_v37 = vld [vmem:[#allocation17 + $0x8ec] ss:$16 sps:$4 sm:$0xff]   ;;  %v8577_v39 = vld [vmem:[#allocation17 + $0x8e0] ss:$16 sps:$4 sm:$0xff]  }
 0xae9   :  { %6483 = vmatprep.subr.bf16.mxu1 %v8501_v40  ;;  %6811 = vmatprep.subr.bf16.mxu0 %v8504_v16  ;;  %v8580_v40 = vld [vmem:[#allocation17 + $0x8e8] ss:$16 sps:$4 sm:$0xff]   ;;  %v8585_v16 = vld [vmem:[#allocation17 + $0x904] ss:$16 sps:$4 sm:$0xff]  }
 0xaec   :  { %6484 = vmatpush1.bf16.msra.mxu1 %v8499_v63  ;;  %6812 = vmatpush1.bf16.msra.mxu0 %v8502_v3  ;;  %v8588_v63 = vld [vmem:[#allocation17 + $0x90c] ss:$16 sps:$4 sm:$0xff]   ;;  %v8583_v3 = vld [vmem:[#allocation17 + $0x900] ss:$16 sps:$4 sm:$0xff]  }
 0xaed   :  { %6485 = vmatprep.subr.bf16.mxu1 %v8507_v43  ;;  %6813 = vmatprep.subr.bf16.mxu0 %v8510_v27  ;;  %v8586_v43 = vld [vmem:[#allocation17 + $0x908] ss:$16 sps:$4 sm:$0xff]   ;;  %v8591_v27 = vld [vmem:[#allocation17 + $0x924] ss:$16 sps:$4 sm:$0xff]  }
 0xaf0   :  { %6486 = vmatpush1.bf16.msra.mxu1 %v8505_v45  ;;  %6814 = vmatpush1.bf16.msra.mxu0 %v8508_v31  ;;  %v8594_v45 = vld [vmem:[#allocation17 + $0x92c] ss:$16 sps:$4 sm:$0xff]   ;;  %v8589_v31 = vld [vmem:[#allocation17 + $0x920] ss:$16 sps:$4 sm:$0xff]  }
 0xaf1   :  { %6487 = vmatprep.subr.bf16.mxu1 %v8513_v0  ;;  %6815 = vmatprep.subr.bf16.mxu0 %v8516_v50  ;;  %v8592_v0 = vld [vmem:[#allocation17 + $0x928] ss:$16 sps:$4 sm:$0xff]   ;;  %v8597_v50 = vld [vmem:[#allocation17 + $0x944] ss:$16 sps:$4 sm:$0xff]  }
 0xaf4   :  { %6488 = vmatpush1.bf16.msra.mxu1 %v8511_v52  ;;  %6816 = vmatpush1.bf16.msra.mxu0 %v8514_v6  ;;  %v8600_v52 = vld [vmem:[#allocation17 + $0x94c] ss:$16 sps:$4 sm:$0xff]   ;;  %v8595_v6 = vld [vmem:[#allocation17 + $0x940] ss:$16 sps:$4 sm:$0xff]  }
 0xaf5   :  { %6489 = vmatprep.subr.bf16.mxu1 %v8519_v22  ;;  %6817 = vmatprep.subr.bf16.mxu0 %v8522_v53  ;;  %v8598_v22 = vld [vmem:[#allocation17 + $0x948] ss:$16 sps:$4 sm:$0xff]   ;;  %v8603_v53 = vld [vmem:[#allocation17 + $0x964] ss:$16 sps:$4 sm:$0xff]  }
 0xaf8   :  { %6490 = vmatpush1.bf16.msra.mxu1 %v8517_v42  ;;  %6818 = vmatpush1.bf16.msra.mxu0 %v8520_v58  ;;  %v8606_v42 = vld [vmem:[#allocation17 + $0x96c] ss:$16 sps:$4 sm:$0xff]   ;;  %v8601_v58 = vld [vmem:[#allocation17 + $0x960] ss:$16 sps:$4 sm:$0xff]  }
 0xaf9   :  { %6491 = vmatprep.subr.bf16.mxu1 %v8525_v23  ;;  %6819 = vmatprep.subr.bf16.mxu0 %v8528_v59  ;;  %v8604_v23 = vld [vmem:[#allocation17 + $0x968] ss:$16 sps:$4 sm:$0xff]   ;;  %v8609_v59 = vld [vmem:[#allocation17 + $0x984] ss:$16 sps:$4 sm:$0xff]  }
 0xafc   :  { %6492 = vmatpush1.bf16.msra.mxu1 %v8523_v55  ;;  %6820 = vmatpush1.bf16.msra.mxu0 %v8526_v47  ;;  %v8612_v55 = vld [vmem:[#allocation17 + $0x98c] ss:$16 sps:$4 sm:$0xff]   ;;  %v8607_v47 = vld [vmem:[#allocation17 + $0x980] ss:$16 sps:$4 sm:$0xff]  }
 0xafd   :  { %6493 = vmatprep.subr.bf16.mxu1 %v8531_v48  ;;  %6821 = vmatprep.subr.bf16.mxu0 %v8534_v36  ;;  %v8610_v48 = vld [vmem:[#allocation17 + $0x988] ss:$16 sps:$4 sm:$0xff]   ;;  %v8615_v36 = vld [vmem:[#allocation17 + $0x9a4] ss:$16 sps:$4 sm:$0xff]  }
 0xb00   :  { %6494 = vmatpush1.bf16.msra.mxu1 %v8529_v15  ;;  %6822 = vmatpush1.bf16.msra.mxu0 %v8532_v4  ;;  %v8618_v15 = vld [vmem:[#allocation17 + $0x9ac] ss:$16 sps:$4 sm:$0xff]   ;;  %v8613_v4 = vld [vmem:[#allocation17 + $0x9a0] ss:$16 sps:$4 sm:$0xff]  }
 0xb01   :  { %6504 = vmatprep.subr.bf16.mxu1 %v8537_v5  ;;  %6832 = vmatprep.subr.bf16.mxu0 %v8540_v34  ;;  %v8616_v5 = vld [vmem:[#allocation17 + $0x9a8] ss:$16 sps:$4 sm:$0xff]   ;;  %v8621_v34 = vld [vmem:[#allocation17 + $0x9c4] ss:$16 sps:$4 sm:$0xff]  }
 0xb03   :  { %6496 = vmatmul.mubr.bf16.vlgmr.msra.gmra.mrb[128].mxu1 %v3258_v44  ;;  %6824 = vmatmul.mubr.bf16.vlgmr.msra.gmra.mrb[96].mxu0 %v3258_v44  ;;  %v8622_v44 = vld [vmem:[#allocation17 + $0x9c8] ss:$16 sps:$4 sm:$0xff]  }
 0xb04   :  { %6505 = vmatpush1.bf16.msra.mxu1 %v8535_v38  ;;  %6833 = vmatpush1.bf16.msra.mxu0 %v8538_v7  ;;  %v8624_v38 = vld [vmem:[#allocation17 + $0x9cc] ss:$16 sps:$4 sm:$0xff]   ;;  %v8619_v7 = vld [vmem:[#allocation17 + $0x9c0] ss:$16 sps:$4 sm:$0xff]  }
 0xb05   :  { %6506 = vmatprep.subr.bf16.mxu1 %v8543_v8  ;;  %6834 = vmatprep.subr.bf16.mxu0 %v8546_v10  ;;  %v8627_v8 = vld [vmem:[#allocation17 + $0x9e4] ss:$16 sps:$4 sm:$0xff]   ;;  %v8630_v10 = vld [vmem:[#allocation17 + $0x9ec] ss:$16 sps:$4 sm:$0xff]  }
 0xb06   :  { %6536 = vmatprep.mubr.bf16.mxu1 %v3261_v11  ;;  %6864 = vmatprep.mubr.bf16.mxu0 %v3261_v11  ;;  %v8625_v11 = vld [vmem:[#allocation17 + $0x9e0] ss:$16 sps:$4 sm:$0xff]  }
 0xb08   :  { %6507 = vmatpush1.bf16.msra.mxu1 %v8541_v46  ;;  %6835 = vmatpush1.bf16.msra.mxu0 %v8544_v51  ;;  %v8628_v46 = vld [vmem:[#allocation17 + $0x9e8] ss:$16 sps:$4 sm:$0xff]   ;;  %v8633_v51 = vld [vmem:[#allocation17 + $0xa04] ss:$16 sps:$4 sm:$0xff]  }
 0xb09   :  { %6508 = vmatprep.subr.bf16.mxu1 %v8549_v13  ;;  %6836 = vmatprep.subr.bf16.mxu0 %v8552_v54  ;;  %v8636_v13 = vld [vmem:[#allocation17 + $0xa0c] ss:$16 sps:$4 sm:$0xff]   ;;  %v8631_v54 = vld [vmem:[#allocation17 + $0xa00] ss:$16 sps:$4 sm:$0xff]  }
 0xb0c   :  { %6509 = vmatpush1.bf16.msra.mxu1 %v8547_v30  ;;  %6837 = vmatpush1.bf16.msra.mxu0 %v8550_v17  ;;  %v3260_v30 = vpack.c.bf16 %v9810_v26, %v9810_v26  ;;  %v8634_v17 = vld [vmem:[#allocation17 + $0xa08] ss:$16 sps:$4 sm:$0xff]   ;;  %v8648_v26 = vld [vmem:[#allocation17 + $0xa4c] ss:$16 sps:$4 sm:$0xff]  }
 0xb0d   :  { %6510 = vmatprep.subr.bf16.mxu1 %v8555_v49  ;;  %6838 = vmatprep.subr.bf16.mxu0 %v8558_v9  ;;  %v3263_v49 = vpack.c.bf16 %v9812_v29, %v9812_v29  ;;  %v8639_v9 = vld [vmem:[#allocation17 + $0xa24] ss:$16 sps:$4 sm:$0xff]  }
 0xb0e   :  { %v8651_v29 = vld [vmem:[#allocation17 + $0xa64] ss:$16 sps:$4 sm:$0xff]  }
 0xb10   :  { %6511 = vmatpush1.bf16.msra.mxu1 %v8553_v18  ;;  %6839 = vmatpush1.bf16.msra.mxu0 %v8556_v19  ;;  %v8642_v18 = vld [vmem:[#allocation17 + $0xa2c] ss:$16 sps:$4 sm:$0xff]   ;;  %v8637_v19 = vld [vmem:[#allocation17 + $0xa20] ss:$16 sps:$4 sm:$0xff]  }
 0xb11   :  { %6512 = vmatprep.subr.bf16.mxu1 %v8561_v21  ;;  %6840 = vmatprep.subr.bf16.mxu0 %v8564_v20  ;;  %v8640_v21 = vld [vmem:[#allocation17 + $0xa28] ss:$16 sps:$4 sm:$0xff]   ;;  %v8645_v20 = vld [vmem:[#allocation17 + $0xa44] ss:$16 sps:$4 sm:$0xff]  }
 0xb14   :  { %6513 = vmatpush1.bf16.msra.mxu1 %v8559_v62  ;;  %6841 = vmatpush1.bf16.msra.mxu0 %v8562_v24  ;;  %v8643_v62 = vld [vmem:[#allocation17 + $0xa40] ss:$16 sps:$4 sm:$0xff]   ;;  %v8646_v24 = vld [vmem:[#allocation17 + $0xa48] ss:$16 sps:$4 sm:$0xff]  }
 0xb15   :  { %6514 = vmatprep.subr.bf16.mxu1 %v8567_v25  ;;  %6842 = vmatprep.subr.bf16.mxu0 %v8570_v57  ;;  %v8654_v25 = vld [vmem:[#allocation17 + $0xa6c] ss:$16 sps:$4 sm:$0xff]   ;;  %v8649_v57 = vld [vmem:[#allocation17 + $0xa60] ss:$16 sps:$4 sm:$0xff]  }
 0xb18   :  { %6515 = vmatpush1.bf16.msra.mxu1 %v8565_v1  ;;  %6843 = vmatpush1.bf16.msra.mxu0 %v8568_v60  ;;  %v8652_v1 = vld [vmem:[#allocation17 + $0xa68] ss:$16 sps:$4 sm:$0xff]   ;;  %v8657_v60 = vld [vmem:[#allocation17 + $0xa84] ss:$16 sps:$4 sm:$0xff]  }
 0xb19   :  { %6516 = vmatprep.subr.bf16.mxu1 %v8573_v32  ;;  %6844 = vmatprep.subr.bf16.mxu0 %v8576_v33  ;;  %v8660_v32 = vld [vmem:[#allocation17 + $0xa8c] ss:$16 sps:$4 sm:$0xff]   ;;  %v8655_v33 = vld [vmem:[#allocation17 + $0xa80] ss:$16 sps:$4 sm:$0xff]  }
 0xb1c   :  { %6517 = vmatpush1.bf16.msra.mxu1 %v8571_v35  ;;  %6845 = vmatpush1.bf16.msra.mxu0 %v8574_v14  ;;  %v8658_v35 = vld [vmem:[#allocation17 + $0xa88] ss:$16 sps:$4 sm:$0xff]   ;;  %v8663_v14 = vld [vmem:[#allocation17 + $0xaa4] ss:$16 sps:$4 sm:$0xff]  }
 0xb1d   :  { %6518 = vmatprep.subr.bf16.mxu1 %v8579_v28  ;;  %6846 = vmatprep.subr.bf16.mxu0 %v8582_v37  ;;  %v8666_v28 = vld [vmem:[#allocation17 + $0xaac] ss:$16 sps:$4 sm:$0xff]   ;;  %v8661_v37 = vld [vmem:[#allocation17 + $0xaa0] ss:$16 sps:$4 sm:$0xff]  }
 0xb20   :  { %6519 = vmatpush1.bf16.msra.mxu1 %v8577_v39  ;;  %6847 = vmatpush1.bf16.msra.mxu0 %v8580_v40  ;;  %v8664_v39 = vld [vmem:[#allocation17 + $0xaa8] ss:$16 sps:$4 sm:$0xff]   ;;  %v8669_v40 = vld [vmem:[#allocation17 + $0xac4] ss:$16 sps:$4 sm:$0xff]  }
 0xb21   :  { %6520 = vmatprep.subr.bf16.mxu1 %v8585_v16  ;;  %6848 = vmatprep.subr.bf16.mxu0 %v8588_v63  ;;  %v8672_v16 = vld [vmem:[#allocation17 + $0xacc] ss:$16 sps:$4 sm:$0xff]   ;;  %v8667_v63 = vld [vmem:[#allocation17 + $0xac0] ss:$16 sps:$4 sm:$0xff]  }
 0xb24   :  { %6521 = vmatpush1.bf16.msra.mxu1 %v8583_v3  ;;  %6849 = vmatpush1.bf16.msra.mxu0 %v8586_v43  ;;  %v8670_v3 = vld [vmem:[#allocation17 + $0xac8] ss:$16 sps:$4 sm:$0xff]   ;;  %v8675_v43 = vld [vmem:[#allocation17 + $0xae4] ss:$16 sps:$4 sm:$0xff]  }
 0xb25   :  { %6522 = vmatprep.subr.bf16.mxu1 %v8591_v27  ;;  %6850 = vmatprep.subr.bf16.mxu0 %v8594_v45  ;;  %v8678_v27 = vld [vmem:[#allocation17 + $0xaec] ss:$16 sps:$4 sm:$0xff]   ;;  %v8673_v45 = vld [vmem:[#allocation17 + $0xae0] ss:$16 sps:$4 sm:$0xff]  }
 0xb28   :  { %6523 = vmatpush1.bf16.msra.mxu1 %v8589_v31  ;;  %6851 = vmatpush1.bf16.msra.mxu0 %v8592_v0  ;;  %v8676_v31 = vld [vmem:[#allocation17 + $0xae8] ss:$16 sps:$4 sm:$0xff]   ;;  %v8681_v0 = vld [vmem:[#allocation17 + $0xb04] ss:$16 sps:$4 sm:$0xff]  }
 0xb29   :  { %6524 = vmatprep.subr.bf16.mxu1 %v8597_v50  ;;  %6852 = vmatprep.subr.bf16.mxu0 %v8600_v52  ;;  %v8684_v50 = vld [vmem:[#allocation17 + $0xb0c] ss:$16 sps:$4 sm:$0xff]   ;;  %v8679_v52 = vld [vmem:[#allocation17 + $0xb00] ss:$16 sps:$4 sm:$0xff]  }
 0xb2c   :  { %6525 = vmatpush1.bf16.msra.mxu1 %v8595_v6  ;;  %6853 = vmatpush1.bf16.msra.mxu0 %v8598_v22  ;;  %v8682_v6 = vld [vmem:[#allocation17 + $0xb08] ss:$16 sps:$4 sm:$0xff]   ;;  %v8687_v22 = vld [vmem:[#allocation17 + $0xb24] ss:$16 sps:$4 sm:$0xff]  }
 0xb2d   :  { %6526 = vmatprep.subr.bf16.mxu1 %v8603_v53  ;;  %6854 = vmatprep.subr.bf16.mxu0 %v8606_v42  ;;  %v8690_v53 = vld [vmem:[#allocation17 + $0xb2c] ss:$16 sps:$4 sm:$0xff]   ;;  %v8685_v42 = vld [vmem:[#allocation17 + $0xb20] ss:$16 sps:$4 sm:$0xff]  }
 0xb30   :  { %6527 = vmatpush1.bf16.msra.mxu1 %v8601_v58  ;;  %6855 = vmatpush1.bf16.msra.mxu0 %v8604_v23  ;;  %v8688_v58 = vld [vmem:[#allocation17 + $0xb28] ss:$16 sps:$4 sm:$0xff]   ;;  %v8693_v23 = vld [vmem:[#allocation17 + $0xb44] ss:$16 sps:$4 sm:$0xff]  }
 0xb31   :  { %6528 = vmatprep.subr.bf16.mxu1 %v8609_v59  ;;  %6856 = vmatprep.subr.bf16.mxu0 %v8612_v55  ;;  %v8696_v59 = vld [vmem:[#allocation17 + $0xb4c] ss:$16 sps:$4 sm:$0xff]   ;;  %v8691_v55 = vld [vmem:[#allocation17 + $0xb40] ss:$16 sps:$4 sm:$0xff]  }
 0xb34   :  { %6529 = vmatpush1.bf16.msra.mxu1 %v8607_v47  ;;  %6857 = vmatpush1.bf16.msra.mxu0 %v8610_v48  ;;  %v8694_v47 = vld [vmem:[#allocation17 + $0xb48] ss:$16 sps:$4 sm:$0xff]   ;;  %v8699_v48 = vld [vmem:[#allocation17 + $0xb64] ss:$16 sps:$4 sm:$0xff]  }
 0xb35   :  { %6530 = vmatprep.subr.bf16.mxu1 %v8615_v36  ;;  %6858 = vmatprep.subr.bf16.mxu0 %v8618_v15  ;;  %v8702_v36 = vld [vmem:[#allocation17 + $0xb6c] ss:$16 sps:$4 sm:$0xff]   ;;  %v8697_v15 = vld [vmem:[#allocation17 + $0xb60] ss:$16 sps:$4 sm:$0xff]  }
 0xb38   :  { %6531 = vmatpush1.bf16.msra.mxu1 %v8613_v4  ;;  %6859 = vmatpush1.bf16.msra.mxu0 %v8616_v5  ;;  %v8700_v4 = vld [vmem:[#allocation17 + $0xb68] ss:$16 sps:$4 sm:$0xff]   ;;  %v8705_v5 = vld [vmem:[#allocation17 + $0xb84] ss:$16 sps:$4 sm:$0xff]  }
 0xb39   :  { %6532 = vmatprep.subr.bf16.mxu1 %v8621_v34  ;;  %6860 = vmatprep.subr.bf16.mxu0 %v8624_v38  ;;  %v8708_v34 = vld [vmem:[#allocation17 + $0xb8c] ss:$16 sps:$4 sm:$0xff]   ;;  %v8703_v38 = vld [vmem:[#allocation17 + $0xb80] ss:$16 sps:$4 sm:$0xff]  }
 0xb3c   :  { %6533 = vmatpush1.bf16.msra.mxu1 %v8619_v7  ;;  %6861 = vmatpush1.bf16.msra.mxu0 %v8622_v44  ;;  %v8706_v7 = vld [vmem:[#allocation17 + $0xb88] ss:$16 sps:$4 sm:$0xff]   ;;  %v8711_v44 = vld [vmem:[#allocation17 + $0xba4] ss:$16 sps:$4 sm:$0xff]  }
 0xb3d   :  { %6534 = vmatprep.subr.bf16.mxu1 %v8627_v8  ;;  %6862 = vmatprep.subr.bf16.mxu0 %v8630_v10  ;;  %v8714_v8 = vld [vmem:[#allocation17 + $0xbac] ss:$16 sps:$4 sm:$0xff]   ;;  %v8709_v10 = vld [vmem:[#allocation17 + $0xba0] ss:$16 sps:$4 sm:$0xff]  }
 0xb40   :  { %6535 = vmatpush1.bf16.msra.mxu1 %v8625_v11  ;;  %6863 = vmatpush1.bf16.msra.mxu0 %v8628_v46  ;;  %v8712_v11 = vld [vmem:[#allocation17 + $0xba8] ss:$16 sps:$4 sm:$0xff]   ;;  %v8717_v46 = vld [vmem:[#allocation17 + $0xbc4] ss:$16 sps:$4 sm:$0xff]  }
 0xb41   :  { %6545 = vmatprep.subr.bf16.mxu1 %v8633_v51  ;;  %6873 = vmatprep.subr.bf16.mxu0 %v8636_v13  ;;  %v8720_v51 = vld [vmem:[#allocation17 + $0xbcc] ss:$16 sps:$4 sm:$0xff]   ;;  %v8715_v13 = vld [vmem:[#allocation17 + $0xbc0] ss:$16 sps:$4 sm:$0xff]  }
 0xb43   :  { %6537 = vmatmul.mubr.bf16.vlgmr.msra.gmra.mrb[128].mxu1 %v3260_v30  ;;  %6865 = vmatmul.mubr.bf16.vlgmr.msra.gmra.mrb[96].mxu0 %v3260_v30  ;;  %v8723_v30 = vld [vmem:[#allocation17 + $0xbe4] ss:$16 sps:$4 sm:$0xff]  }
 0xb44   :  { %6546 = vmatpush1.bf16.msra.mxu1 %v8631_v54  ;;  %6577 = vmatprep.mubr.bf16.mxu1 %v3263_v49  ;;  %v8718_v54 = vld [vmem:[#allocation17 + $0xbc8] ss:$16 sps:$4 sm:$0xff]  }
 0xb45   :  { %6874 = vmatpush1.bf16.msra.mxu0 %v8634_v17  ;;  %6905 = vmatprep.mubr.bf16.mxu0 %v3263_v49  ;;  %v8726_v17 = vld [vmem:[#allocation17 + $0xbec] ss:$16 sps:$4 sm:$0xff]   ;;  %v8721_v49 = vld [vmem:[#allocation17 + $0xbe0] ss:$16 sps:$4 sm:$0xff]  }
 0xb46   :  { %6547 = vmatprep.subr.bf16.mxu1 %v8639_v9  ;;  %6875 = vmatprep.subr.bf16.mxu0 %v8642_v18  ;;  %v8724_v9 = vld [vmem:[#allocation17 + $0xbe8] ss:$16 sps:$4 sm:$0xff]   ;;  %v8729_v18 = vld [vmem:[#allocation17 + $0xc04] ss:$16 sps:$4 sm:$0xff]  }
 0xb48   :  { %6548 = vmatpush1.bf16.msra.mxu1 %v8637_v19  ;;  %v8732_v19 = vld [vmem:[#allocation17 + $0xc0c] ss:$16 sps:$4 sm:$0xff]  }
 0xb49   :  { %6876 = vmatpush1.bf16.msra.mxu0 %v8640_v21  ;;  %6549 = vmatprep.subr.bf16.mxu1 %v8645_v20  ;;  %v8727_v21 = vld [vmem:[#allocation17 + $0xc00] ss:$16 sps:$4 sm:$0xff]   ;;  %v3262_v20 = vpack.c.bf16 %v9808_v41, %v9808_v41  ;;  %v8744_v41 = vld [vmem:[#allocation17 + $0xc4c] ss:$16 sps:$4 sm:$0xff]  }
 0xb4a   :  { %6877 = vmatprep.subr.bf16.mxu0 %v8648_v26  ;;  %v8730_v26 = vld [vmem:[#allocation17 + $0xc08] ss:$16 sps:$4 sm:$0xff]  }
 0xb4c   :  { %6550 = vmatpush1.bf16.msra.mxu1 %v8643_v62  ;;  %v8735_v62 = vld [vmem:[#allocation17 + $0xc24] ss:$16 sps:$4 sm:$0xff]  }
 0xb4d   :  { %6878 = vmatpush1.bf16.msra.mxu0 %v8646_v24  ;;  %6551 = vmatprep.subr.bf16.mxu1 %v8651_v29  ;;  %v3265_v24 = vpack.c.bf16 %v9822_v2, %v9822_v2  ;;  %v8738_v29 = vld [vmem:[#allocation17 + $0xc2c] ss:$16 sps:$4 sm:$0xff]  }
 0xb4e   :  { %6879 = vmatprep.subr.bf16.mxu0 %v8654_v25  ;;  %v8733_v25 = vld [vmem:[#allocation17 + $0xc20] ss:$16 sps:$4 sm:$0xff]   ;;  %v8750_v2 = vld [vmem:[#allocation17 + $0xc6c] ss:$16 sps:$4 sm:$0xff]  }
 0xb50   :  { %6552 = vmatpush1.bf16.msra.mxu1 %v8649_v57  ;;  %v8736_v57 = vld [vmem:[#allocation17 + $0xc28] ss:$16 sps:$4 sm:$0xff]  }
 0xb51   :  { %6880 = vmatpush1.bf16.msra.mxu0 %v8652_v1  ;;  %6553 = vmatprep.subr.bf16.mxu1 %v8657_v60  ;;  %v8741_v1 = vld [vmem:[#allocation17 + $0xc44] ss:$16 sps:$4 sm:$0xff]   ;;  %v8739_v60 = vld [vmem:[#allocation17 + $0xc40] ss:$16 sps:$4 sm:$0xff]  }
 0xb52   :  { %6881 = vmatprep.subr.bf16.mxu0 %v8660_v32  ;;  %v8742_v32 = vld [vmem:[#allocation17 + $0xc48] ss:$16 sps:$4 sm:$0xff]  }
 0xb54   :  { %6554 = vmatpush1.bf16.msra.mxu1 %v8655_v33  ;;  %v8747_v33 = vld [vmem:[#allocation17 + $0xc64] ss:$16 sps:$4 sm:$0xff]  }
 0xb55   :  { %6882 = vmatpush1.bf16.msra.mxu0 %v8658_v35  ;;  %6555 = vmatprep.subr.bf16.mxu1 %v8663_v14  ;;  %v8745_v35 = vld [vmem:[#allocation17 + $0xc60] ss:$16 sps:$4 sm:$0xff]   ;;  %v8748_v14 = vld [vmem:[#allocation17 + $0xc68] ss:$16 sps:$4 sm:$0xff]  }
 0xb56   :  { %6883 = vmatprep.subr.bf16.mxu0 %v8666_v28  ;;  %v8753_v28 = vld [vmem:[#allocation17 + $0xc84] ss:$16 sps:$4 sm:$0xff]  }
 0xb58   :  { %6556 = vmatpush1.bf16.msra.mxu1 %v8661_v37  ;;  %v8756_v37 = vld [vmem:[#allocation17 + $0xc8c] ss:$16 sps:$4 sm:$0xff]  }
 0xb59   :  { %6884 = vmatpush1.bf16.msra.mxu0 %v8664_v39  ;;  %6557 = vmatprep.subr.bf16.mxu1 %v8669_v40  ;;  %v8751_v39 = vld [vmem:[#allocation17 + $0xc80] ss:$16 sps:$4 sm:$0xff]   ;;  %v8754_v40 = vld [vmem:[#allocation17 + $0xc88] ss:$16 sps:$4 sm:$0xff]  }
 0xb5a   :  { %6885 = vmatprep.subr.bf16.mxu0 %v8672_v16  ;;  %v8759_v16 = vld [vmem:[#allocation17 + $0xca4] ss:$16 sps:$4 sm:$0xff]  }
 0xb5c   :  { %6558 = vmatpush1.bf16.msra.mxu1 %v8667_v63  ;;  %v8762_v63 = vld [vmem:[#allocation17 + $0xcac] ss:$16 sps:$4 sm:$0xff]  }
 0xb5d   :  { %6886 = vmatpush1.bf16.msra.mxu0 %v8670_v3  ;;  %6559 = vmatprep.subr.bf16.mxu1 %v8675_v43  ;;  %v8757_v3 = vld [vmem:[#allocation17 + $0xca0] ss:$16 sps:$4 sm:$0xff]   ;;  %v8760_v43 = vld [vmem:[#allocation17 + $0xca8] ss:$16 sps:$4 sm:$0xff]  }
 0xb5e   :  { %6887 = vmatprep.subr.bf16.mxu0 %v8678_v27  ;;  %v8765_v27 = vld [vmem:[#allocation17 + $0xcc4] ss:$16 sps:$4 sm:$0xff]  }
 0xb60   :  { %6560 = vmatpush1.bf16.msra.mxu1 %v8673_v45  ;;  %v8768_v45 = vld [vmem:[#allocation17 + $0xccc] ss:$16 sps:$4 sm:$0xff]  }
 0xb61   :  { %6888 = vmatpush1.bf16.msra.mxu0 %v8676_v31  ;;  %6561 = vmatprep.subr.bf16.mxu1 %v8681_v0  ;;  %v8763_v31 = vld [vmem:[#allocation17 + $0xcc0] ss:$16 sps:$4 sm:$0xff]   ;;  %v8766_v0 = vld [vmem:[#allocation17 + $0xcc8] ss:$16 sps:$4 sm:$0xff]  }
 0xb62   :  { %6889 = vmatprep.subr.bf16.mxu0 %v8684_v50  ;;  %v8771_v50 = vld [vmem:[#allocation17 + $0xce4] ss:$16 sps:$4 sm:$0xff]  }
 0xb64   :  { %6562 = vmatpush1.bf16.msra.mxu1 %v8679_v52  ;;  %v8774_v52 = vld [vmem:[#allocation17 + $0xcec] ss:$16 sps:$4 sm:$0xff]  }
 0xb65   :  { %6890 = vmatpush1.bf16.msra.mxu0 %v8682_v6  ;;  %6563 = vmatprep.subr.bf16.mxu1 %v8687_v22  ;;  %v8769_v6 = vld [vmem:[#allocation17 + $0xce0] ss:$16 sps:$4 sm:$0xff]   ;;  %v8772_v22 = vld [vmem:[#allocation17 + $0xce8] ss:$16 sps:$4 sm:$0xff]  }
 0xb66   :  { %6891 = vmatprep.subr.bf16.mxu0 %v8690_v53  ;;  %v8777_v53 = vld [vmem:[#allocation17 + $0xd04] ss:$16 sps:$4 sm:$0xff]  }
 0xb68   :  { %6564 = vmatpush1.bf16.msra.mxu1 %v8685_v42  ;;  %v8780_v42 = vld [vmem:[#allocation17 + $0xd0c] ss:$16 sps:$4 sm:$0xff]  }
 0xb69   :  { %6892 = vmatpush1.bf16.msra.mxu0 %v8688_v58  ;;  %6565 = vmatprep.subr.bf16.mxu1 %v8693_v23  ;;  %v8775_v58 = vld [vmem:[#allocation17 + $0xd00] ss:$16 sps:$4 sm:$0xff]   ;;  %v8778_v23 = vld [vmem:[#allocation17 + $0xd08] ss:$16 sps:$4 sm:$0xff]  }
 0xb6a   :  { %6893 = vmatprep.subr.bf16.mxu0 %v8696_v59  ;;  %v8783_v59 = vld [vmem:[#allocation17 + $0xd24] ss:$16 sps:$4 sm:$0xff]  }
 0xb6c   :  { %6566 = vmatpush1.bf16.msra.mxu1 %v8691_v55  ;;  %v8786_v55 = vld [vmem:[#allocation17 + $0xd2c] ss:$16 sps:$4 sm:$0xff]  }
 0xb6d   :  { %6894 = vmatpush1.bf16.msra.mxu0 %v8694_v47  ;;  %6567 = vmatprep.subr.bf16.mxu1 %v8699_v48  ;;  %v8781_v47 = vld [vmem:[#allocation17 + $0xd20] ss:$16 sps:$4 sm:$0xff]   ;;  %v8784_v48 = vld [vmem:[#allocation17 + $0xd28] ss:$16 sps:$4 sm:$0xff]  }
 0xb6e   :  { %6895 = vmatprep.subr.bf16.mxu0 %v8702_v36  ;;  %v8789_v36 = vld [vmem:[#allocation17 + $0xd44] ss:$16 sps:$4 sm:$0xff]  }
 0xb70   :  { %6568 = vmatpush1.bf16.msra.mxu1 %v8697_v15  ;;  %v8792_v15 = vld [vmem:[#allocation17 + $0xd4c] ss:$16 sps:$4 sm:$0xff]  }
 0xb71   :  { %6896 = vmatpush1.bf16.msra.mxu0 %v8700_v4  ;;  %6569 = vmatprep.subr.bf16.mxu1 %v8705_v5  ;;  %v8787_v4 = vld [vmem:[#allocation17 + $0xd40] ss:$16 sps:$4 sm:$0xff]   ;;  %v8790_v5 = vld [vmem:[#allocation17 + $0xd48] ss:$16 sps:$4 sm:$0xff]  }
 0xb72   :  { %6897 = vmatprep.subr.bf16.mxu0 %v8708_v34  ;;  %v8795_v34 = vld [vmem:[#allocation17 + $0xd64] ss:$16 sps:$4 sm:$0xff]  }
 0xb74   :  { %6570 = vmatpush1.bf16.msra.mxu1 %v8703_v38  ;;  %v8798_v38 = vld [vmem:[#allocation17 + $0xd6c] ss:$16 sps:$4 sm:$0xff]  }
 0xb75   :  { %6898 = vmatpush1.bf16.msra.mxu0 %v8706_v7  ;;  %6571 = vmatprep.subr.bf16.mxu1 %v8711_v44  ;;  %v8793_v7 = vld [vmem:[#allocation17 + $0xd60] ss:$16 sps:$4 sm:$0xff]   ;;  %v8796_v44 = vld [vmem:[#allocation17 + $0xd68] ss:$16 sps:$4 sm:$0xff]  }
 0xb76   :  { %6899 = vmatprep.subr.bf16.mxu0 %v8714_v8  ;;  %v8801_v8 = vld [vmem:[#allocation17 + $0xd84] ss:$16 sps:$4 sm:$0xff]  }
 0xb78   :  { %6572 = vmatpush1.bf16.msra.mxu1 %v8709_v10  ;;  %v8804_v10 = vld [vmem:[#allocation17 + $0xd8c] ss:$16 sps:$4 sm:$0xff]  }
 0xb79   :  { %6900 = vmatpush1.bf16.msra.mxu0 %v8712_v11  ;;  %6573 = vmatprep.subr.bf16.mxu1 %v8717_v46  ;;  %v8799_v11 = vld [vmem:[#allocation17 + $0xd80] ss:$16 sps:$4 sm:$0xff]   ;;  %v8802_v46 = vld [vmem:[#allocation17 + $0xd88] ss:$16 sps:$4 sm:$0xff]  }
 0xb7a   :  { %6901 = vmatprep.subr.bf16.mxu0 %v8720_v51  ;;  %v8807_v51 = vld [vmem:[#allocation17 + $0xda4] ss:$16 sps:$4 sm:$0xff]  }
 0xb7c   :  { %6574 = vmatpush1.bf16.msra.mxu1 %v8715_v13  ;;  %v8810_v13 = vld [vmem:[#allocation17 + $0xdac] ss:$16 sps:$4 sm:$0xff]  }
 0xb7d   :  { %6902 = vmatpush1.bf16.msra.mxu0 %v8718_v54  ;;  %6575 = vmatprep.subr.bf16.mxu1 %v8723_v30  ;;  %v8805_v54 = vld [vmem:[#allocation17 + $0xda0] ss:$16 sps:$4 sm:$0xff]   ;;  %v8808_v30 = vld [vmem:[#allocation17 + $0xda8] ss:$16 sps:$4 sm:$0xff]  }
 0xb7e   :  { %6903 = vmatprep.subr.bf16.mxu0 %v8726_v17  ;;  %v8813_v17 = vld [vmem:[#allocation17 + $0xdc4] ss:$16 sps:$4 sm:$0xff]  }
 0xb80   :  { %6576 = vmatpush1.bf16.msra.mxu1 %v8721_v49  ;;  %v8816_v49 = vld [vmem:[#allocation17 + $0xdcc] ss:$16 sps:$4 sm:$0xff]  }
 0xb81   :  { %6904 = vmatpush1.bf16.msra.mxu0 %v8724_v9  ;;  %6586 = vmatprep.subr.bf16.mxu1 %v8729_v18  ;;  %v8811_v9 = vld [vmem:[#allocation17 + $0xdc0] ss:$16 sps:$4 sm:$0xff]   ;;  %v8814_v18 = vld [vmem:[#allocation17 + $0xdc8] ss:$16 sps:$4 sm:$0xff]  }
 0xb82   :  { %6914 = vmatprep.subr.bf16.mxu0 %v8732_v19  ;;  %v8819_v19 = vld [vmem:[#allocation17 + $0xde4] ss:$16 sps:$4 sm:$0xff]  }
 0xb83   :  { %6578 = vmatmul.mubr.bf16.vlgmr.msra.gmra.mrb[128].mxu1 %v3262_v20 }
 0xb84   :  { %6906 = vmatmul.mubr.bf16.vlgmr.msra.gmra.mrb[96].mxu0 %v3262_v20  ;;  %6587 = vmatpush1.bf16.msra.mxu1 %v8727_v21  ;;  %v8822_v21 = vld [vmem:[#allocation17 + $0xdec] ss:$16 sps:$4 sm:$0xff]   ;;  %v8817_v20 = vld [vmem:[#allocation17 + $0xde0] ss:$16 sps:$4 sm:$0xff]  }
 0xb85   :  { %6618 = vmatprep.mubr.bf16.mxu1 %v3265_v24  ;;  %6915 = vmatpush1.bf16.msra.mxu0 %v8730_v26  ;;  %v8820_v26 = vld [vmem:[#allocation17 + $0xde8] ss:$16 sps:$4 sm:$0xff]  }
 0xb86   :  { %6946 = vmatprep.mubr.bf16.mxu0 %v3265_v24  ;;  %6588 = vmatprep.subr.bf16.mxu1 %v8735_v62  ;;  %v8825_v62 = vld [vmem:[#allocation17 + $0xe04] ss:$16 sps:$4 sm:$0xff]   ;;  %v8828_v24 = vld [vmem:[#allocation17 + $0xe0c] ss:$16 sps:$4 sm:$0xff]  }
 0xb87   :  { %6916 = vmatprep.subr.bf16.mxu0 %v8738_v29  ;;  %v8823_v29 = vld [vmem:[#allocation17 + $0xe00] ss:$16 sps:$4 sm:$0xff]  }
 0xb88   :  { %6589 = vmatpush1.bf16.msra.mxu1 %v8733_v25  ;;  %v3264_v25 = vpack.c.bf16 %v9818_v12, %v9818_v12  ;;  %v8840_v12 = vld [vmem:[#allocation17 + $0xe4c] ss:$16 sps:$4 sm:$0xff]  }
 0xb89   :  { %6917 = vmatpush1.bf16.msra.mxu0 %v8736_v57  ;;  %6590 = vmatprep.subr.bf16.mxu1 %v8741_v1  ;;  %v8826_v57 = vld [vmem:[#allocation17 + $0xe08] ss:$16 sps:$4 sm:$0xff]   ;;  %v8831_v1 = vld [vmem:[#allocation17 + $0xe24] ss:$16 sps:$4 sm:$0xff]  }
 0xb8a   :  { %6918 = vmatprep.subr.bf16.mxu0 %v8744_v41  ;;  %v3267_v41 = vpack.c.bf16 %v9820_v56, %v9820_v56  ;;  %v8846_v56 = vld [vmem:[#allocation17 + $0xe6c] ss:$16 sps:$4 sm:$0xff]  }
 0xb8c   :  { %6591 = vmatpush1.bf16.msra.mxu1 %v8739_v60  ;;  %v8834_v60 = vld [vmem:[#allocation17 + $0xe2c] ss:$16 sps:$4 sm:$0xff]  }
 0xb8d   :  { %6919 = vmatpush1.bf16.msra.mxu0 %v8742_v32  ;;  %6592 = vmatprep.subr.bf16.mxu1 %v8747_v33  ;;  %v8829_v32 = vld [vmem:[#allocation17 + $0xe20] ss:$16 sps:$4 sm:$0xff]   ;;  %v8832_v33 = vld [vmem:[#allocation17 + $0xe28] ss:$16 sps:$4 sm:$0xff]  }
 0xb8e   :  { %6920 = vmatprep.subr.bf16.mxu0 %v8750_v2  ;;  %v8837_v2 = vld [vmem:[#allocation17 + $0xe44] ss:$16 sps:$4 sm:$0xff]  }
 0xb90   :  { %6593 = vmatpush1.bf16.msra.mxu1 %v8745_v35  ;;  %v8835_v35 = vld [vmem:[#allocation17 + $0xe40] ss:$16 sps:$4 sm:$0xff]  }
 0xb91   :  { %6921 = vmatpush1.bf16.msra.mxu0 %v8748_v14  ;;  %6594 = vmatprep.subr.bf16.mxu1 %v8753_v28  ;;  %v8838_v14 = vld [vmem:[#allocation17 + $0xe48] ss:$16 sps:$4 sm:$0xff]   ;;  %v8843_v28 = vld [vmem:[#allocation17 + $0xe64] ss:$16 sps:$4 sm:$0xff]  }
 0xb92   :  { %6922 = vmatprep.subr.bf16.mxu0 %v8756_v37  ;;  %v8841_v37 = vld [vmem:[#allocation17 + $0xe60] ss:$16 sps:$4 sm:$0xff]  }
 0xb94   :  { %6595 = vmatpush1.bf16.msra.mxu1 %v8751_v39  ;;  %v8844_v39 = vld [vmem:[#allocation17 + $0xe68] ss:$16 sps:$4 sm:$0xff]  }
 0xb95   :  { %6923 = vmatpush1.bf16.msra.mxu0 %v8754_v40  ;;  %6596 = vmatprep.subr.bf16.mxu1 %v8759_v16  ;;  %v8849_v40 = vld [vmem:[#allocation17 + $0xe84] ss:$16 sps:$4 sm:$0xff]   ;;  %v8852_v16 = vld [vmem:[#allocation17 + $0xe8c] ss:$16 sps:$4 sm:$0xff]  }
 0xb96   :  { %6924 = vmatprep.subr.bf16.mxu0 %v8762_v63  ;;  %v8847_v63 = vld [vmem:[#allocation17 + $0xe80] ss:$16 sps:$4 sm:$0xff]  }
 0xb98   :  { %6597 = vmatpush1.bf16.msra.mxu1 %v8757_v3  ;;  %v8850_v3 = vld [vmem:[#allocation17 + $0xe88] ss:$16 sps:$4 sm:$0xff]  }
 0xb99   :  { %6925 = vmatpush1.bf16.msra.mxu0 %v8760_v43  ;;  %6598 = vmatprep.subr.bf16.mxu1 %v8765_v27  ;;  %v8855_v43 = vld [vmem:[#allocation17 + $0xea4] ss:$16 sps:$4 sm:$0xff]   ;;  %v8858_v27 = vld [vmem:[#allocation17 + $0xeac] ss:$16 sps:$4 sm:$0xff]  }
 0xb9a   :  { %6926 = vmatprep.subr.bf16.mxu0 %v8768_v45  ;;  %v8853_v45 = vld [vmem:[#allocation17 + $0xea0] ss:$16 sps:$4 sm:$0xff]  }
 0xb9c   :  { %6599 = vmatpush1.bf16.msra.mxu1 %v8763_v31  ;;  %v8856_v31 = vld [vmem:[#allocation17 + $0xea8] ss:$16 sps:$4 sm:$0xff]  }
 0xb9d   :  { %6927 = vmatpush1.bf16.msra.mxu0 %v8766_v0  ;;  %6600 = vmatprep.subr.bf16.mxu1 %v8771_v50  ;;  %v8861_v0 = vld [vmem:[#allocation17 + $0xec4] ss:$16 sps:$4 sm:$0xff]   ;;  %v8864_v50 = vld [vmem:[#allocation17 + $0xecc] ss:$16 sps:$4 sm:$0xff]  }
 0xb9e   :  { %6928 = vmatprep.subr.bf16.mxu0 %v8774_v52  ;;  %v8859_v52 = vld [vmem:[#allocation17 + $0xec0] ss:$16 sps:$4 sm:$0xff]  }
 0xba0   :  { %6601 = vmatpush1.bf16.msra.mxu1 %v8769_v6  ;;  %v8862_v6 = vld [vmem:[#allocation17 + $0xec8] ss:$16 sps:$4 sm:$0xff]  }
 0xba1   :  { %6929 = vmatpush1.bf16.msra.mxu0 %v8772_v22  ;;  %6602 = vmatprep.subr.bf16.mxu1 %v8777_v53  ;;  %v8867_v22 = vld [vmem:[#allocation17 + $0xee4] ss:$16 sps:$4 sm:$0xff]   ;;  %v8870_v53 = vld [vmem:[#allocation17 + $0xeec] ss:$16 sps:$4 sm:$0xff]  }
 0xba2   :  { %6930 = vmatprep.subr.bf16.mxu0 %v8780_v42  ;;  %v8865_v42 = vld [vmem:[#allocation17 + $0xee0] ss:$16 sps:$4 sm:$0xff]  }
 0xba4   :  { %6603 = vmatpush1.bf16.msra.mxu1 %v8775_v58  ;;  %v8868_v58 = vld [vmem:[#allocation17 + $0xee8] ss:$16 sps:$4 sm:$0xff]  }
 0xba5   :  { %6931 = vmatpush1.bf16.msra.mxu0 %v8778_v23  ;;  %6604 = vmatprep.subr.bf16.mxu1 %v8783_v59  ;;  %v8873_v23 = vld [vmem:[#allocation17 + $0xf04] ss:$16 sps:$4 sm:$0xff]   ;;  %v8876_v59 = vld [vmem:[#allocation17 + $0xf0c] ss:$16 sps:$4 sm:$0xff]  }
 0xba6   :  { %6932 = vmatprep.subr.bf16.mxu0 %v8786_v55  ;;  %v8871_v55 = vld [vmem:[#allocation17 + $0xf00] ss:$16 sps:$4 sm:$0xff]  }
 0xba8   :  { %6605 = vmatpush1.bf16.msra.mxu1 %v8781_v47  ;;  %v8874_v47 = vld [vmem:[#allocation17 + $0xf08] ss:$16 sps:$4 sm:$0xff]  }
 0xba9   :  { %6933 = vmatpush1.bf16.msra.mxu0 %v8784_v48  ;;  %6606 = vmatprep.subr.bf16.mxu1 %v8789_v36  ;;  %v8879_v48 = vld [vmem:[#allocation17 + $0xf24] ss:$16 sps:$4 sm:$0xff]   ;;  %v8882_v36 = vld [vmem:[#allocation17 + $0xf2c] ss:$16 sps:$4 sm:$0xff]  }
 0xbaa   :  { %6934 = vmatprep.subr.bf16.mxu0 %v8792_v15  ;;  %v8877_v15 = vld [vmem:[#allocation17 + $0xf20] ss:$16 sps:$4 sm:$0xff]  }
 0xbac   :  { %6607 = vmatpush1.bf16.msra.mxu1 %v8787_v4  ;;  %v8880_v4 = vld [vmem:[#allocation17 + $0xf28] ss:$16 sps:$4 sm:$0xff]  }
 0xbad   :  { %6935 = vmatpush1.bf16.msra.mxu0 %v8790_v5  ;;  %6608 = vmatprep.subr.bf16.mxu1 %v8795_v34  ;;  %v8885_v5 = vld [vmem:[#allocation17 + $0xf44] ss:$16 sps:$4 sm:$0xff]   ;;  %v8888_v34 = vld [vmem:[#allocation17 + $0xf4c] ss:$16 sps:$4 sm:$0xff]  }
 0xbae   :  { %6936 = vmatprep.subr.bf16.mxu0 %v8798_v38  ;;  %v8883_v38 = vld [vmem:[#allocation17 + $0xf40] ss:$16 sps:$4 sm:$0xff]  }
 0xbb0   :  { %6609 = vmatpush1.bf16.msra.mxu1 %v8793_v7  ;;  %v8886_v7 = vld [vmem:[#allocation17 + $0xf48] ss:$16 sps:$4 sm:$0xff]  }
 0xbb1   :  { %6937 = vmatpush1.bf16.msra.mxu0 %v8796_v44  ;;  %6610 = vmatprep.subr.bf16.mxu1 %v8801_v8  ;;  %v8891_v44 = vld [vmem:[#allocation17 + $0xf64] ss:$16 sps:$4 sm:$0xff]   ;;  %v8894_v8 = vld [vmem:[#allocation17 + $0xf6c] ss:$16 sps:$4 sm:$0xff]  }
 0xbb2   :  { %6938 = vmatprep.subr.bf16.mxu0 %v8804_v10  ;;  %v8889_v10 = vld [vmem:[#allocation17 + $0xf60] ss:$16 sps:$4 sm:$0xff]  }
 0xbb4   :  { %6611 = vmatpush1.bf16.msra.mxu1 %v8799_v11  ;;  %v8892_v11 = vld [vmem:[#allocation17 + $0xf68] ss:$16 sps:$4 sm:$0xff]  }
 0xbb5   :  { %6939 = vmatpush1.bf16.msra.mxu0 %v8802_v46  ;;  %6612 = vmatprep.subr.bf16.mxu1 %v8807_v51  ;;  %v8897_v46 = vld [vmem:[#allocation17 + $0xf84] ss:$16 sps:$4 sm:$0xff]   ;;  %v8900_v51 = vld [vmem:[#allocation17 + $0xf8c] ss:$16 sps:$4 sm:$0xff]  }
 0xbb6   :  { %6940 = vmatprep.subr.bf16.mxu0 %v8810_v13  ;;  %v8895_v13 = vld [vmem:[#allocation17 + $0xf80] ss:$16 sps:$4 sm:$0xff]  }
 0xbb8   :  { %6613 = vmatpush1.bf16.msra.mxu1 %v8805_v54  ;;  %v8898_v54 = vld [vmem:[#allocation17 + $0xf88] ss:$16 sps:$4 sm:$0xff]  }
 0xbb9   :  { %6941 = vmatpush1.bf16.msra.mxu0 %v8808_v30  ;;  %6614 = vmatprep.subr.bf16.mxu1 %v8813_v17  ;;  %v8903_v30 = vld [vmem:[#allocation17 + $0xfa4] ss:$16 sps:$4 sm:$0xff]   ;;  %v8906_v17 = vld [vmem:[#allocation17 + $0xfac] ss:$16 sps:$4 sm:$0xff]  }
 0xbba   :  { %6942 = vmatprep.subr.bf16.mxu0 %v8816_v49  ;;  %v8901_v49 = vld [vmem:[#allocation17 + $0xfa0] ss:$16 sps:$4 sm:$0xff]  }
 0xbbc   :  { %6615 = vmatpush1.bf16.msra.mxu1 %v8811_v9  ;;  %v8904_v9 = vld [vmem:[#allocation17 + $0xfa8] ss:$16 sps:$4 sm:$0xff]  }
 0xbbd   :  { %6943 = vmatpush1.bf16.msra.mxu0 %v8814_v18  ;;  %6616 = vmatprep.subr.bf16.mxu1 %v8819_v19  ;;  %v8909_v18 = vld [vmem:[#allocation17 + $0xfc4] ss:$16 sps:$4 sm:$0xff]   ;;  %v8912_v19 = vld [vmem:[#allocation17 + $0xfcc] ss:$16 sps:$4 sm:$0xff]  }
 0xbbe   :  { %6944 = vmatprep.subr.bf16.mxu0 %v8822_v21  ;;  %v8907_v21 = vld [vmem:[#allocation17 + $0xfc0] ss:$16 sps:$4 sm:$0xff]  }
 0xbc0   :  { %6617 = vmatpush1.bf16.msra.mxu1 %v8817_v20  ;;  %v8910_v20 = vld [vmem:[#allocation17 + $0xfc8] ss:$16 sps:$4 sm:$0xff]  }
 0xbc1   :  { %6945 = vmatpush1.bf16.msra.mxu0 %v8820_v26  ;;  %6627 = vmatprep.subr.bf16.mxu1 %v8825_v62  ;;  %v8915_v26 = vld [vmem:[#allocation17 + $0xfe4] ss:$16 sps:$4 sm:$0xff]   ;;  %v8918_v62 = vld [vmem:[#allocation17 + $0xfec] ss:$16 sps:$4 sm:$0xff]  }
 0xbc2   :  { %6955 = vmatprep.subr.bf16.mxu0 %v8828_v24  ;;  %v8913_v24 = vld [vmem:[#allocation17 + $0xfe0] ss:$16 sps:$4 sm:$0xff]  }
 0xbc3   :  { %6619 = vmatmul.mubr.bf16.vlgmr.msra.gmra.mrb[128].mxu1 %v3264_v25 }
 0xbc4   :  { %6947 = vmatmul.mubr.bf16.vlgmr.msra.gmra.mrb[96].mxu0 %v3264_v25  ;;  %6628 = vmatpush1.bf16.msra.mxu1 %v8823_v29  ;;  %v8916_v29 = vld [vmem:[#allocation17 + $0xfe8] ss:$16 sps:$4 sm:$0xff]   ;;  %v3266_v25 = vpack.c.bf16 %v9816_v61, %v9816_v61 }
 0xbc5   :  { %6659 = vmatprep.mubr.bf16.mxu1 %v3267_v41  ;;  %6956 = vmatpush1.bf16.msra.mxu0 %v8826_v57 }
 0xbc6   :  { %6987 = vmatprep.mubr.bf16.mxu0 %v3267_v41  ;;  %6629 = vmatprep.subr.bf16.mxu1 %v8831_v1 }
 0xbc7   :  { %6957 = vmatprep.subr.bf16.mxu0 %v8834_v60 }
 0xbc8   :  { %6630 = vmatpush1.bf16.msra.mxu1 %v8829_v32 }
 0xbc9   :  { %6958 = vmatpush1.bf16.msra.mxu0 %v8832_v33  ;;  %6631 = vmatprep.subr.bf16.mxu1 %v8837_v2 }
 0xbca   :  { %6959 = vmatprep.subr.bf16.mxu0 %v8840_v12 }
 0xbcc   :  { %6632 = vmatpush1.bf16.msra.mxu1 %v8835_v35 }
 0xbcd   :  { %6960 = vmatpush1.bf16.msra.mxu0 %v8838_v14  ;;  %6633 = vmatprep.subr.bf16.mxu1 %v8843_v28 }
 0xbce   :  { %6961 = vmatprep.subr.bf16.mxu0 %v8846_v56 }
 0xbd0   :  { %6634 = vmatpush1.bf16.msra.mxu1 %v8841_v37 }
 0xbd1   :  { %6962 = vmatpush1.bf16.msra.mxu0 %v8844_v39  ;;  %6635 = vmatprep.subr.bf16.mxu1 %v8849_v40 }
 0xbd2   :  { %6963 = vmatprep.subr.bf16.mxu0 %v8852_v16 }
 0xbd4   :  { %6636 = vmatpush1.bf16.msra.mxu1 %v8847_v63 }
 0xbd5   :  { %6964 = vmatpush1.bf16.msra.mxu0 %v8850_v3  ;;  %6637 = vmatprep.subr.bf16.mxu1 %v8855_v43 }
 0xbd6   :  { %6965 = vmatprep.subr.bf16.mxu0 %v8858_v27 }
 0xbd8   :  { %6638 = vmatpush1.bf16.msra.mxu1 %v8853_v45 }
 0xbd9   :  { %6966 = vmatpush1.bf16.msra.mxu0 %v8856_v31  ;;  %6639 = vmatprep.subr.bf16.mxu1 %v8861_v0 }
 0xbda   :  { %6967 = vmatprep.subr.bf16.mxu0 %v8864_v50 }
 0xbdc   :  { %6640 = vmatpush1.bf16.msra.mxu1 %v8859_v52 }
 0xbdd   :  { %6968 = vmatpush1.bf16.msra.mxu0 %v8862_v6  ;;  %6641 = vmatprep.subr.bf16.mxu1 %v8867_v22 }
 0xbde   :  { %6969 = vmatprep.subr.bf16.mxu0 %v8870_v53 }
 0xbe0   :  { %6642 = vmatpush1.bf16.msra.mxu1 %v8865_v42 }
 0xbe1   :  { %6970 = vmatpush1.bf16.msra.mxu0 %v8868_v58  ;;  %6643 = vmatprep.subr.bf16.mxu1 %v8873_v23 }
 0xbe2   :  { %6971 = vmatprep.subr.bf16.mxu0 %v8876_v59 }
 0xbe4   :  { %6644 = vmatpush1.bf16.msra.mxu1 %v8871_v55 }
 0xbe5   :  { %6972 = vmatpush1.bf16.msra.mxu0 %v8874_v47  ;;  %6645 = vmatprep.subr.bf16.mxu1 %v8879_v48 }
 0xbe6   :  { %6973 = vmatprep.subr.bf16.mxu0 %v8882_v36 }
 0xbe8   :  { %6646 = vmatpush1.bf16.msra.mxu1 %v8877_v15 }
 0xbe9   :  { %6974 = vmatpush1.bf16.msra.mxu0 %v8880_v4  ;;  %6647 = vmatprep.subr.bf16.mxu1 %v8885_v5 }
 0xbea   :  { %6975 = vmatprep.subr.bf16.mxu0 %v8888_v34 }
 0xbec   :  { %6648 = vmatpush1.bf16.msra.mxu1 %v8883_v38 }
 0xbed   :  { %6976 = vmatpush1.bf16.msra.mxu0 %v8886_v7  ;;  %6649 = vmatprep.subr.bf16.mxu1 %v8891_v44 }
 0xbee   :  { %6977 = vmatprep.subr.bf16.mxu0 %v8894_v8 }
 0xbf0   :  { %6650 = vmatpush1.bf16.msra.mxu1 %v8889_v10 }
 0xbf1   :  { %6978 = vmatpush1.bf16.msra.mxu0 %v8892_v11  ;;  %6651 = vmatprep.subr.bf16.mxu1 %v8897_v46 }
 0xbf2   :  { %6979 = vmatprep.subr.bf16.mxu0 %v8900_v51 }
 0xbf4   :  { %6652 = vmatpush1.bf16.msra.mxu1 %v8895_v13 }
 0xbf5   :  { %6980 = vmatpush1.bf16.msra.mxu0 %v8898_v54  ;;  %6653 = vmatprep.subr.bf16.mxu1 %v8903_v30 }
 0xbf6   :  { %6981 = vmatprep.subr.bf16.mxu0 %v8906_v17 }
 0xbf8   :  { %6654 = vmatpush1.bf16.msra.mxu1 %v8901_v49 }
 0xbf9   :  { %6982 = vmatpush1.bf16.msra.mxu0 %v8904_v9  ;;  %6655 = vmatprep.subr.bf16.mxu1 %v8909_v18 }
 0xbfa   :  { %6983 = vmatprep.subr.bf16.mxu0 %v8912_v19 }
 0xbfc   :  { %6656 = vmatpush1.bf16.msra.mxu1 %v8907_v21 }
 0xbfd   :  { %6984 = vmatpush1.bf16.msra.mxu0 %v8910_v20  ;;  %6657 = vmatprep.subr.bf16.mxu1 %v8915_v26 }
 0xbfe   :  { %6985 = vmatprep.subr.bf16.mxu0 %v8918_v62 }
 0xc00   :  { %6658 = vmatpush1.bf16.msra.mxu1 %v8913_v24 }
 0xc01   :  { %6986 = vmatpush1.bf16.msra.mxu0 %v8916_v29 }
 0xc03   :  { %6660 = vmatmul.mubr.bf16.vlgmr.msra.gmra.mrb[128].mxu1 %v3266_v25 }
 0xc04   :  { %6988 = vmatmul.mubr.bf16.vlgmr.msra.gmra.mrb[96].mxu0 %v3266_v25 }
 0xcd6   :  { %v6661_v57 = vpop.f32.mrb[128].mxu1 }
 0xcd7   :  { %8923 = vtanh.f32 %v6661_v57  ;;  %v6989_v1 = vpop.f32.mrb[96].mxu0  ;;  %v6663_v41 = vpop.f32.mrb[129].mxu1 }
 0xcd8   :  { %8925 = vtanh.f32 %v6989_v1  ;;  %v6991_v60 = vpop.f32.mrb[97].mxu0  ;;  %v6665_v32 = vpop.f32.mrb[130].mxu1 }
 0xcd9   :  { %8927 = vtanh.f32 %v6663_v41  ;;  %v6993_v33 = vpop.f32.mrb[98].mxu0  ;;  %v6666_v2 = vpop.f32.mrb[131].mxu1 }
 0xcda   :  { %8929 = vtanh.f32 %v6991_v60  ;;  %v6994_v12 = vpop.f32.mrb[99].mxu0 }
 0xce1   :  { %v8924_v35 = vpop.eup %8923 }
 0xce2   :  { %v8926_v14 = vpop.eup %8925  ;;  %7000 = vst [vmem:[#allocation19] sm:$0xff] %v8924_v35 }
 0xce3   :  { %v8928_v61 = vpop.eup %8927  ;;  %7002 = vst [vmem:[#allocation19 + $0x10] sm:$0xff] %v8926_v14 }
 0xce4   :  { %v8930_v28 = vpop.eup %8929  ;;  %7001 = vst [vmem:[#allocation19 + $0x8] sm:$0xff] %v8928_v61 }
 0xce5   :  { %7003 = vst [vmem:[#allocation19 + $0x18] sm:$0xff] %v8930_v28 }
 0xce6   :  { %9162 = shalt.err (!%p9159_p0)
}
 0xce7   :  { %s9163_s6 = scalar_lea.hbm %s9873_s12, 512 }
 0xce8   :  { %p9164_p1 = scmp.ne.s32.totalorder %s9873_s12, %s9163_s6  ;;  %p9167_p2 = scmp.lt.u32.totalorder %s9163_s6, %s9873_s12 }
 0xcea   :  { %p9169_p3 = pnand %p9167_p2, %p9164_p1 }
 0xcec   :  { %9172 = shalt.err (!%p9169_p3)
}
 0xced   :  { %7015 = dma.vmem_to_hbm [thread:$0]  %s7010_s19, 512, %s9873_s12, [#allocation4], %s9198_s4, %s9198_s4, %s9199_s25  }
 0xcee   :  { %9185 = dma.done.wait [#allocation4], 512  }
 0xcef   :  { %9186 = vsyncadd [#allocation4], 4294966784 }
 0xcf0   :  { %7019 = vsyncpa [#allocation3], 1 }
 0xcf1   :  { %7020 = vsyncpa [#allocation6], 1 }
 0xcf2   :  { %7021 = vsyncpa [#allocation9], 1 }
 0xcf3   :  { %7022 = vsyncpa [#allocation12], 1 }
 0xcf4   :  { %7023 = vsyncpa [#allocation15], 1 }
 0xcf5   :  { %7024 = vsyncpa [#allocation18], 1 }
 0xcf6   :  { %7025 = vsyncpa [#allocation4], 1 }

</bundles_post_ra>
